<compile_context>
chip_gen: v6e
topology: v6e:2x2x1
jax: 0.10.0
libtpu: 0.0.40
codegen_flags: <defaults>
</compile_context>

<pallas_src>
import math

import jax
import jax.numpy as jnp
from jax.experimental import pallas as pl
from jax.experimental.pallas import tpu as pltpu

NUM_HEADS = 4          # attention_config.num_attention_heads
LN_EPS_FE = 1e-7       # FeatureExtractor mha_layer_norm / layer_norm eps
LN_EPS_BERT = 1e-12    # BertSelfOutput LayerNorm eps (BertConfig default)


def _layernorm(x, gamma, beta, eps):
    mu = jnp.mean(x, axis=-1, keepdims=True)
    var = jnp.mean((x - mu) ** 2, axis=-1, keepdims=True)
    return (x - mu) * jax.lax.rsqrt(var + eps) * gamma + beta


def _feature_extractor_kernel(
    lw_ref,                       # (T, L) softmax'd layer weights, SMEM
    hs_ref, mask_ref,             # (L, tb, S, H) bf16 / (tb, S) f32
    g_mha_ref, b_mha_ref,
    wqkv_ref, bqkv_ref,           # fused [Wq|Wk|Wv]: (1, H, 3H) bf16 / (1, 1, 3H) f32
    wo_ref, bo_ref,               # (1, H, H) bf16 / (1, 1, H) f32
    g_aln_ref, b_aln_ref,
    g_out_ref, b_out_ref,
    feats_ref,                    # (1, tb, H) f32
):
    """One grid step == one (batch-tile, target) FeatureExtractor."""
    L, tb, S, H = hs_ref.shape
    hd = H // NUM_HEADS
    t = pl.program_id(1)

    mask = mask_ref[...]                                        # (tb, S) f32

    # --- softmax-weighted sum over the top-L backbone layers ---
    # (weights already normalized in the wrapper, read as scalars from SMEM;
    #  no zeros init, no in-kernel exp/reduce)
    enc = lw_ref[t, 0] * hs_ref[0].astype(jnp.float32)
    for l in range(1, L):
        enc = enc + lw_ref[t, l] * hs_ref[l].astype(jnp.float32)

    # --- mha_layer_norm ---
    x = _layernorm(enc, g_mha_ref[0, 0], b_mha_ref[0, 0], LN_EPS_FE)   # (tb, S, H)

    # --- BertAttention: single fused (tb*S, H) @ (H, 3H) QKV projection ---
    x2d = x.reshape(tb * S, H).astype(jnp.bfloat16)
    qkv = jnp.dot(x2d, wqkv_ref[0], preferred_element_type=jnp.float32)
    qkv = (qkv + bqkv_ref[0, 0]).reshape(tb, S, 3 * H)
    q, k, v = qkv[:, :, :H], qkv[:, :, H:2 * H], qkv[:, :, 2 * H:]   # H-aligned splits

    ext = ((1.0 - mask) * (-10000.0))[:, None, :]               # (tb, 1, S_key)
    scale = 1.0 / math.sqrt(hd)
    wo = wo_ref[0]                                              # (H, H) bf16

    # Per-head attention; the output projection is accumulated per head through
    # the corresponding Wo row block, so no head concat / cross-lane shuffle.
    attn2d = None
    for h in range(NUM_HEADS):
        sl = slice(h * hd, (h + 1) * hd)
        qh = q[:, :, sl].astype(jnp.bfloat16)
        kh = k[:, :, sl].astype(jnp.bfloat16)
        vh = v[:, :, sl].astype(jnp.bfloat16)
        sc = jnp.einsum('bqd,bkd->bqk', qh, kh,
                        preferred_element_type=jnp.float32) * scale + ext
        sc = sc - jnp.max(sc, axis=-1, keepdims=True)
        p = jnp.exp(sc)
        p = p * pl.reciprocal(jnp.sum(p, axis=-1, keepdims=True), approx=True)
        ctx = jnp.einsum('bqk,bkd->bqd', p.astype(jnp.bfloat16), vh,
                         preferred_element_type=jnp.float32)    # (tb, S, hd)
        contrib = jnp.dot(ctx.reshape(tb * S, hd).astype(jnp.bfloat16),
                          wo[sl, :], preferred_element_type=jnp.float32)
        attn2d = contrib if attn2d is None else attn2d + contrib

    attn = attn2d.reshape(tb, S, H) + bo_ref[0, 0]
    attn = _layernorm(attn + x, g_aln_ref[0, 0], b_aln_ref[0, 0], LN_EPS_BERT)

    # --- masked mean pooling (mask broadcast built in-kernel, no (B,S,1) input) ---
    summed = jnp.sum(attn * mask[:, :, None], axis=1)           # (tb, H)
    denom = jnp.maximum(jnp.sum(mask, axis=1, keepdims=True), 1e-9)
    pooled = summed * pl.reciprocal(denom, approx=True)

    # --- final layer norm; classifier head runs in the wrapper ---
    feats_ref[0] = _layernorm(pooled, g_out_ref[0, 0], b_out_ref[0, 0], LN_EPS_FE)


def feedback_heads(hidden_states, attention_mask, params, *, batch_block=None):
    """Runs all T FeatureExtractors in one Pallas kernel; returns (embeddings, logits)."""
    L, B, S, H = hidden_states.shape
    T = params['layer_weights'].shape[0]
    tb = B if batch_block is None else batch_block
    assert B % tb == 0, "batch_block must divide the batch"
    nb = B // tb

    # tiny (T, L) softmax done once in the wrapper; lands in SMEM inside the kernel
    lw = jax.nn.softmax(params['layer_weights'].astype(jnp.float32), axis=-1)

    hs = hidden_states.astype(jnp.bfloat16)      # bf16 MXU operands, half the HBM/VMEM
    mask = attention_mask.astype(jnp.float32)

    t_map = lambda b, t: (t, 0, 0)
    spec_T1H = pl.BlockSpec((1, 1, H), t_map)
    per_target_specs = [
        spec_T1H, spec_T1H,                       # mha layer norm gamma / beta
        pl.BlockSpec((1, H, 3 * H), t_map),       # fused Wqkv
        pl.BlockSpec((1, 1, 3 * H), t_map),       # fused bqkv
        pl.BlockSpec((1, H, H), t_map),           # Wo
        spec_T1H,                                 # bo
        spec_T1H, spec_T1H,                       # attention-output layer norm
        spec_T1H, spec_T1H,                       # final layer norm
    ]
    per_target_args = (
        params['g_mha'], params['b_mha'],
        params['w_qkv'].astype(jnp.bfloat16), params['b_qkv'],
        params['wo'].astype(jnp.bfloat16), params['bo'],
        params['g_attn_ln'], params['b_attn_ln'],
        params['g_final_ln'], params['b_final_ln'],
    )

    def call(single_buffer_invariant):
        if single_buffer_invariant:
            # hidden_states / mask only change with the (outer) batch-tile index:
            # double-buffering them just doubles the largest VMEM allocation.
            hs_spec = pl.BlockSpec((L, tb, S, H), lambda b, t: (0, b, 0, 0),
                                   pipeline_mode=pl.Buffered(1))
            mask_spec = pl.BlockSpec((tb, S), lambda b, t: (b, 0),
                                     pipeline_mode=pl.Buffered(1))
        else:
            hs_spec = pl.BlockSpec((L, tb, S, H), lambda b, t: (0, b, 0, 0))
            mask_spec = pl.BlockSpec((tb, S), lambda b, t: (b, 0))
        in_specs = [pl.BlockSpec(memory_space=pltpu.MemorySpace.SMEM),
                    hs_spec, mask_spec, *per_target_specs]
        return pl.pallas_call(
            _feature_extractor_kernel,
            out_shape=jax.ShapeDtypeStruct((T, B, H), jnp.float32),
            grid_spec=pltpu.PrefetchScalarGridSpec(
                num_scalar_prefetch=0,
                grid=(nb, T),
                in_specs=in_specs,
                out_specs=pl.BlockSpec((1, tb, H), lambda b, t: (t, b, 0)),
            ),
            compiler_params=pltpu.CompilerParams(
                dimension_semantics=("parallel", "parallel"),
                vmem_limit_bytes=48 * 1024 * 1024,   # safe on v5e/v6e/v7x
            ),
        )(lw, hs, mask, *per_target_args)

    try:
        feats = call(True)
    except Exception:
        # fall back to default double buffering if this jax build rejects
        # pl.Buffered(1) on the outer pallas_call pipeline
        feats = call(False)

    embeddings = jnp.transpose(feats, (1, 0, 2))                 # torch.stack(features, dim=1)
    logits = (jnp.einsum('tbh,th->bt', feats,
                         params['w_cls'].astype(jnp.float32))
              + params['b_cls'][None, :])                        # (B, T)
    return embeddings, logits


# ---------------- plain-JAX glue: losses (tiny reductions) ----------------
def get_ranking_loss(logits, labels, margin=0.0):
    y_ij = labels[:, None] - labels[None, :]
    r_ij = ((logits[:, None] >= logits[None, :]).astype(jnp.float32)
            - (logits[:, None] < logits[None, :]).astype(jnp.float32))
    residual = jnp.maximum(-r_ij * y_ij + margin, 0.0)
    return jnp.mean(residual)


def get_sim_loss(logits, labels, eps=1e-8):
    num = jnp.sum(labels * logits)
    den = (jnp.maximum(jnp.sqrt(jnp.sum(labels ** 2)), eps)
           * jnp.maximum(jnp.sqrt(jnp.sum(logits ** 2)), eps))
    return 1.0 - num / den


def feedback_forward(params, hidden_states, attention_mask, labels, config):
    embeddings, logits = feedback_heads(hidden_states, attention_mask, params)
    loss_dict = {}
    loss = None
    if labels is not None:
        # loss_fn == 'mse'
        loss = jnp.mean((logits - labels) ** 2)
        if config.get('use_sim_loss', False):
            sim_losses = [get_sim_loss(logits[:, i], labels[:, i])
                          for i in range(logits.shape[1])]
            sim_loss = jnp.mean(jnp.stack(sim_losses))
            loss_dict['sim_loss'] = sim_loss
            loss = loss + 1.0 * sim_loss
        if config.get('use_ranking_loss', False):
            rank_losses = [get_ranking_loss(logits[:, i], labels[:, i])
                           for i in range(logits.shape[1])]
            ranking_loss = jnp.mean(jnp.stack(rank_losses))
            loss_dict['ranking_loss'] = ranking_loss
            loss = loss + 1.0 * ranking_loss
        loss_dict['loss'] = loss
        for i, name in enumerate(config['target_names']):
            loss_dict[name] = jnp.mean((logits[:, i] - labels[:, i]) ** 2)
    return logits, loss, loss_dict


def init_params(key, T, L, H):
    ks = jax.random.split(key, 6)

    def normal(k, shape, std=0.02):
        return std * jax.random.normal(k, shape, jnp.float32)

    lw = jnp.linspace(-5.0, 5.0, L, dtype=jnp.float32)    # torch.linspace(-5, 5, L) init
    w_qkv = jnp.concatenate([normal(ks[0], (T, H, H)),    # [Wq | Wk | Wv]
                             normal(ks[1], (T, H, H)),
                             normal(ks[2], (T, H, H))], axis=-1)
    return {
        'layer_weights': jnp.tile(lw[None, :], (T, 1)),            # (T, L)
        'g_mha': jnp.ones((T, 1, H), jnp.float32),
        'b_mha': jnp.zeros((T, 1, H), jnp.float32),
        'w_qkv': w_qkv.astype(jnp.bfloat16),                       # (T, H, 3H)
        'b_qkv': jnp.zeros((T, 1, 3 * H), jnp.float32),
        'wo': normal(ks[3], (T, H, H)).astype(jnp.bfloat16),
        'bo': jnp.zeros((T, 1, H), jnp.float32),
        'g_attn_ln': jnp.ones((T, 1, H), jnp.float32),
        'b_attn_ln': jnp.zeros((T, 1, H), jnp.float32),
        'g_final_ln': jnp.ones((T, 1, H), jnp.float32),
        'b_final_ln': jnp.zeros((T, 1, H), jnp.float32),
        'w_cls': normal(ks[4], (T, H), std=0.1),
        'b_cls': jnp.zeros((T,), jnp.float32),
    }


if __name__ == "__main__":
    B, S, H, L = 2, 8, 32, 3
    target_names = ['cohesion', 'syntax', 'vocabulary',
                    'phraseology', 'grammar', 'conventions']
    T = len(target_names)
    config = {'target_names': target_names, 'loss_fn': 'mse',
              'use_sim_loss': True, 'use_ranking_loss': True}

    key = jax.random.PRNGKey(0)
    kh, kl, kp = jax.random.split(key, 3)

    # TODO(synk): the pretrained HF backbone (AutoModel.from_pretrained, token-embedding
    # resize, layer re-init / freezing) is not translatable without its checkpoint; the
    # last-L hidden states it would emit are synthesized deterministically here.
    hidden_states = jax.random.normal(kh, (L, B, S, H), jnp.float32)
    attention_mask = jnp.array([[1, 1, 1, 1, 1, 1, 1, 1],
                                [1, 1, 1, 1, 1, 0, 0, 0]], jnp.float32)
    labels = 1.0 + 4.0 * jax.random.uniform(kl, (B, T), dtype=jnp.float32)

    params = init_params(kp, T, L, H)
    logits, loss, loss_dict = feedback_forward(
        params, hidden_states, attention_mask, labels, config)
    jax.block_until_ready((logits, loss, loss_dict))
    assert logits.shape == (B, T)
    print("KERNEL_OK")
</pallas_src>

<mosaic_0001>
module attributes {stable_mosaic.version = 11 : i64} {
  func.func @_feature_extractor_kernel(%arg0: i32, %arg1: i32, %arg2: memref<6x3xf32, #tpu.memory_space<smem>>, %arg3: memref<3x2x8x32xbf16, #tpu.memory_space<vmem>>, %arg4: memref<2x8xf32, #tpu.memory_space<vmem>>, %arg5: memref<1x1x32xf32, #tpu.memory_space<vmem>>, %arg6: memref<1x1x32xf32, #tpu.memory_space<vmem>>, %arg7: memref<1x32x96xbf16, #tpu.memory_space<vmem>>, %arg8: memref<1x1x96xf32, #tpu.memory_space<vmem>>, %arg9: memref<1x32x32xbf16, #tpu.memory_space<vmem>>, %arg10: memref<1x1x32xf32, #tpu.memory_space<vmem>>, %arg11: memref<1x1x32xf32, #tpu.memory_space<vmem>>, %arg12: memref<1x1x32xf32, #tpu.memory_space<vmem>>, %arg13: memref<1x1x32xf32, #tpu.memory_space<vmem>>, %arg14: memref<1x1x32xf32, #tpu.memory_space<vmem>>, %arg15: memref<1x2x32xf32, #tpu.memory_space<vmem>>) attributes {dimension_semantics = [#tpu.dimension_semantics<parallel>, #tpu.dimension_semantics<parallel>], iteration_bounds = array<i64: 1, 6>, scalar_prefetch = 0 : i64, scratch_operands = 0 : i64, tpu.core_type = #tpu.core_type<tc>, window_params = [{transform_indices = @transform_0, window_bounds = array<i64: 6, 3>}, {pipeline_mode = #tpu.pipeline_mode<synchronous>, transform_indices = @transform_1, window_bounds = array<i64: 3, 2, 8, 32>}, {pipeline_mode = #tpu.pipeline_mode<synchronous>, transform_indices = @transform_2, window_bounds = array<i64: 2, 8>}, {transform_indices = @transform_3, window_bounds = array<i64: 1, 1, 32>}, {transform_indices = @transform_4, window_bounds = array<i64: 1, 1, 32>}, {transform_indices = @transform_5, window_bounds = array<i64: 1, 32, 96>}, {transform_indices = @transform_6, window_bounds = array<i64: 1, 1, 96>}, {transform_indices = @transform_7, window_bounds = array<i64: 1, 32, 32>}, {transform_indices = @transform_8, window_bounds = array<i64: 1, 1, 32>}, {transform_indices = @transform_9, window_bounds = array<i64: 1, 1, 32>}, {transform_indices = @transform_10, window_bounds = array<i64: 1, 1, 32>}, {transform_indices = @transform_11, window_bounds = array<i64: 1, 1, 32>}, {transform_indices = @transform_12, window_bounds = array<i64: 1, 1, 32>}, {transform_indices = @transform_13, window_bounds = array<i64: 1, 2, 32>}]} {
    %c0 = arith.constant 0 : index
    %c0_0 = arith.constant 0 : index
    %0 = vector.load %arg4[%c0, %c0_0] : memref<2x8xf32, #tpu.memory_space<vmem>>, vector<2x8xf32>
    %1 = arith.index_cast %arg1 : i32 to index
    %c0_1 = arith.constant 0 : index
    %2 = memref.load %arg2[%1, %c0_1] : memref<6x3xf32, #tpu.memory_space<smem>>
    %c0_2 = arith.constant 0 : index
    %c0_3 = arith.constant 0 : index
    %c0_4 = arith.constant 0 : index
    %c0_5 = arith.constant 0 : index
    %3 = vector.load %arg3[%c0_2, %c0_3, %c0_4, %c0_5] : memref<3x2x8x32xbf16, #tpu.memory_space<vmem>>, vector<1x2x8x32xbf16>
    %4 = vector.shape_cast %3 : vector<1x2x8x32xbf16> to vector<2x8x32xbf16>
    %5 = arith.extf %4 : vector<2x8x32xbf16> to vector<2x8x32xf32>
    %6 = vector.broadcast %2 : f32 to vector<2x8x32xf32>
    %7 = arith.mulf %6, %5 : vector<2x8x32xf32>
    %8 = arith.index_cast %arg1 : i32 to index
    %c1 = arith.constant 1 : index
    %9 = memref.load %arg2[%8, %c1] : memref<6x3xf32, #tpu.memory_space<smem>>
    %c1_6 = arith.constant 1 : index
    %c0_7 = arith.constant 0 : index
    %c0_8 = arith.constant 0 : index
    %c0_9 = arith.constant 0 : index
    %10 = vector.load %arg3[%c1_6, %c0_7, %c0_8, %c0_9] : memref<3x2x8x32xbf16, #tpu.memory_space<vmem>>, vector<1x2x8x32xbf16>
    %11 = vector.shape_cast %10 : vector<1x2x8x32xbf16> to vector<2x8x32xbf16>
    %12 = arith.extf %11 : vector<2x8x32xbf16> to vector<2x8x32xf32>
    %13 = vector.broadcast %9 : f32 to vector<2x8x32xf32>
    %14 = arith.mulf %13, %12 : vector<2x8x32xf32>
    %15 = arith.addf %7, %14 : vector<2x8x32xf32>
    %16 = arith.index_cast %arg1 : i32 to index
    %c2 = arith.constant 2 : index
    %17 = memref.load %arg2[%16, %c2] : memref<6x3xf32, #tpu.memory_space<smem>>
    %c2_10 = arith.constant 2 : index
    %c0_11 = arith.constant 0 : index
    %c0_12 = arith.constant 0 : index
    %c0_13 = arith.constant 0 : index
    %18 = vector.load %arg3[%c2_10, %c0_11, %c0_12, %c0_13] : memref<3x2x8x32xbf16, #tpu.memory_space<vmem>>, vector<1x2x8x32xbf16>
    %19 = vector.shape_cast %18 : vector<1x2x8x32xbf16> to vector<2x8x32xbf16>
    %20 = arith.extf %19 : vector<2x8x32xbf16> to vector<2x8x32xf32>
    %21 = vector.broadcast %17 : f32 to vector<2x8x32xf32>
    %22 = arith.mulf %21, %20 : vector<2x8x32xf32>
    %23 = arith.addf %15, %22 : vector<2x8x32xf32>
    %c0_14 = arith.constant 0 : index
    %c0_15 = arith.constant 0 : index
    %c0_16 = arith.constant 0 : index
    %24 = vector.load %arg5[%c0_14, %c0_15, %c0_16] : memref<1x1x32xf32, #tpu.memory_space<vmem>>, vector<1x1x32xf32>
    %25 = vector.shape_cast %24 : vector<1x1x32xf32> to vector<32xf32>
    %c0_17 = arith.constant 0 : index
    %c0_18 = arith.constant 0 : index
    %c0_19 = arith.constant 0 : index
    %26 = vector.load %arg6[%c0_17, %c0_18, %c0_19] : memref<1x1x32xf32, #tpu.memory_space<vmem>>, vector<1x1x32xf32>
    %27 = vector.shape_cast %26 : vector<1x1x32xf32> to vector<32xf32>
    %cst = arith.constant dense<0.000000e+00> : vector<2x8xf32>
    %28 = vector.multi_reduction <add>, %23, %cst [2] : vector<2x8x32xf32> to vector<2x8xf32>
    %29 = vector.shape_cast %28 : vector<2x8xf32> to vector<2x8x1xf32>
    %cst_20 = arith.constant 3.200000e+01 : f32
    %30 = vector.broadcast %cst_20 : f32 to vector<2x8x1xf32>
    %31 = arith.divf %29, %30 : vector<2x8x1xf32>
    %32 = vector.broadcast %31 : vector<2x8x1xf32> to vector<2x8x32xf32>
    %33 = arith.subf %23, %32 : vector<2x8x32xf32>
    %34 = arith.mulf %33, %33 : vector<2x8x32xf32>
    %cst_21 = arith.constant dense<0.000000e+00> : vector<2x8xf32>
    %35 = vector.multi_reduction <add>, %34, %cst_21 [2] : vector<2x8x32xf32> to vector<2x8xf32>
    %36 = vector.shape_cast %35 : vector<2x8xf32> to vector<2x8x1xf32>
    %cst_22 = arith.constant 3.200000e+01 : f32
    %37 = vector.broadcast %cst_22 : f32 to vector<2x8x1xf32>
    %38 = arith.divf %36, %37 : vector<2x8x1xf32>
    %39 = vector.broadcast %31 : vector<2x8x1xf32> to vector<2x8x32xf32>
    %40 = arith.subf %23, %39 : vector<2x8x32xf32>
    %cst_23 = arith.constant 1.000000e-07 : f32
    %41 = vector.broadcast %cst_23 : f32 to vector<2x8x1xf32>
    %42 = arith.addf %38, %41 : vector<2x8x1xf32>
    %43 = math.rsqrt %42 : vector<2x8x1xf32>
    %44 = vector.broadcast %43 : vector<2x8x1xf32> to vector<2x8x32xf32>
    %45 = arith.mulf %40, %44 : vector<2x8x32xf32>
    %46 = vector.shape_cast %25 : vector<32xf32> to vector<1x1x32xf32>
    %47 = vector.broadcast %46 : vector<1x1x32xf32> to vector<2x8x32xf32>
    %48 = arith.mulf %45, %47 : vector<2x8x32xf32>
    %49 = vector.shape_cast %27 : vector<32xf32> to vector<1x1x32xf32>
    %50 = vector.broadcast %49 : vector<1x1x32xf32> to vector<2x8x32xf32>
    %51 = arith.addf %48, %50 : vector<2x8x32xf32>
    %52 = vector.shape_cast %51 : vector<2x8x32xf32> to vector<16x32xf32>
    %53 = arith.truncf %52 : vector<16x32xf32> to vector<16x32xbf16>
    %c0_24 = arith.constant 0 : index
    %c0_25 = arith.constant 0 : index
    %c0_26 = arith.constant 0 : index
    %54 = vector.load %arg7[%c0_24, %c0_25, %c0_26] : memref<1x32x96xbf16, #tpu.memory_space<vmem>>, vector<1x32x96xbf16>
    %55 = vector.shape_cast %54 : vector<1x32x96xbf16> to vector<32x96xbf16>
    %cst_27 = arith.constant dense<0.000000e+00> : vector<16x96xf32>
    %56 = tpu.matmul %53, %55, %cst_27 {dimension_numbers = #tpu.dot_dimension_numbers<[1], [0], [0], [1], [0, 0, 1, 1], [], []>} : vector<16x32xbf16>, vector<32x96xbf16>, vector<16x96xf32> -> vector<16x96xf32>
    %c0_28 = arith.constant 0 : index
    %c0_29 = arith.constant 0 : index
    %c0_30 = arith.constant 0 : index
    %57 = vector.load %arg8[%c0_28, %c0_29, %c0_30] : memref<1x1x96xf32, #tpu.memory_space<vmem>>, vector<1x1x96xf32>
    %58 = vector.shape_cast %57 : vector<1x1x96xf32> to vector<96xf32>
    %59 = vector.shape_cast %58 : vector<96xf32> to vector<1x96xf32>
    %60 = vector.broadcast %59 : vector<1x96xf32> to vector<16x96xf32>
    %61 = arith.addf %56, %60 : vector<16x96xf32>
    %62 = vector.shape_cast %61 : vector<16x96xf32> to vector<2x8x96xf32>
    %63 = vector.extract_strided_slice %62 {offsets = [0, 0, 0], sizes = [2, 8, 32], strides = [1, 1, 1]} : vector<2x8x96xf32> to vector<2x8x32xf32>
    %64 = vector.extract_strided_slice %62 {offsets = [0, 0, 32], sizes = [2, 8, 32], strides = [1, 1, 1]} : vector<2x8x96xf32> to vector<2x8x32xf32>
    %65 = vector.extract_strided_slice %62 {offsets = [0, 0, 64], sizes = [2, 8, 32], strides = [1, 1, 1]} : vector<2x8x96xf32> to vector<2x8x32xf32>
    %cst_31 = arith.constant 1.000000e+00 : f32
    %66 = vector.broadcast %cst_31 : f32 to vector<2x8xf32>
    %67 = arith.subf %66, %0 : vector<2x8xf32>
    %cst_32 = arith.constant -1.000000e+04 : f32
    %68 = vector.broadcast %cst_32 : f32 to vector<2x8xf32>
    %69 = arith.mulf %67, %68 : vector<2x8xf32>
    %70 = vector.shape_cast %69 : vector<2x8xf32> to vector<2x1x8xf32>
    %c0_33 = arith.constant 0 : index
    %c0_34 = arith.constant 0 : index
    %c0_35 = arith.constant 0 : index
    %71 = vector.load %arg9[%c0_33, %c0_34, %c0_35] : memref<1x32x32xbf16, #tpu.memory_space<vmem>>, vector<1x32x32xbf16>
    %72 = vector.shape_cast %71 : vector<1x32x32xbf16> to vector<32x32xbf16>
    %73 = vector.extract_strided_slice %63 {offsets = [0, 0, 0], sizes = [2, 8, 8], strides = [1, 1, 1]} : vector<2x8x32xf32> to vector<2x8x8xf32>
    %74 = arith.truncf %73 : vector<2x8x8xf32> to vector<2x8x8xbf16>
    %75 = vector.extract_strided_slice %64 {offsets = [0, 0, 0], sizes = [2, 8, 8], strides = [1, 1, 1]} : vector<2x8x32xf32> to vector<2x8x8xf32>
    %76 = arith.truncf %75 : vector<2x8x8xf32> to vector<2x8x8xbf16>
    %77 = vector.extract_strided_slice %65 {offsets = [0, 0, 0], sizes = [2, 8, 8], strides = [1, 1, 1]} : vector<2x8x32xf32> to vector<2x8x8xf32>
    %78 = arith.truncf %77 : vector<2x8x8xf32> to vector<2x8x8xbf16>
    "tpu.trace_start"() <{level = 10 : i32, message = "bqd,bkd->bqk"}> : () -> ()
    %cst_36 = arith.constant dense<0.000000e+00> : vector<2x8x8xf32>
    %79 = tpu.matmul %74, %76, %cst_36 {dimension_numbers = #tpu.dot_dimension_numbers<[2], [2], [1], [1], [0, 0, 0, 1, 1, 1], [0], [0]>} : vector<2x8x8xbf16>, vector<2x8x8xbf16>, vector<2x8x8xf32> -> vector<2x8x8xf32>
    "tpu.trace_stop"() : () -> ()
    %cst_37 = arith.constant 0.353553385 : f32
    %80 = vector.broadcast %cst_37 : f32 to vector<2x8x8xf32>
    %81 = arith.mulf %79, %80 : vector<2x8x8xf32>
    %82 = vector.broadcast %70 : vector<2x1x8xf32> to vector<2x8x8xf32>
    %83 = arith.addf %81, %82 : vector<2x8x8xf32>
    %cst_38 = arith.constant dense<0xFF800000> : vector<2x8xf32>
    %84 = vector.multi_reduction <maximumf>, %83, %cst_38 [2] : vector<2x8x8xf32> to vector<2x8xf32>
    %85 = vector.shape_cast %84 : vector<2x8xf32> to vector<2x8x1xf32>
    %86 = vector.broadcast %85 : vector<2x8x1xf32> to vector<2x8x8xf32>
    %87 = arith.subf %83, %86 : vector<2x8x8xf32>
    %88 = math.exp %87 : vector<2x8x8xf32>
    %cst_39 = arith.constant dense<0.000000e+00> : vector<2x8xf32>
    %89 = vector.multi_reduction <add>, %88, %cst_39 [2] : vector<2x8x8xf32> to vector<2x8xf32>
    %90 = vector.shape_cast %89 : vector<2x8xf32> to vector<2x8x1xf32>
    %91 = tpu.reciprocal %90 {approx = true} : vector<2x8x1xf32> -> vector<2x8x1xf32>
    %92 = vector.broadcast %91 : vector<2x8x1xf32> to vector<2x8x8xf32>
    %93 = arith.mulf %88, %92 : vector<2x8x8xf32>
    %94 = arith.truncf %93 : vector<2x8x8xf32> to vector<2x8x8xbf16>
    "tpu.trace_start"() <{level = 10 : i32, message = "bqk,bkd->bqd"}> : () -> ()
    %cst_40 = arith.constant dense<0.000000e+00> : vector<2x8x8xf32>
    %95 = tpu.matmul %94, %78, %cst_40 {dimension_numbers = #tpu.dot_dimension_numbers<[2], [1], [1], [2], [0, 0, 0, 1, 1, 2], [0], [0]>} : vector<2x8x8xbf16>, vector<2x8x8xbf16>, vector<2x8x8xf32> -> vector<2x8x8xf32>
    "tpu.trace_stop"() : () -> ()
    %96 = vector.shape_cast %95 : vector<2x8x8xf32> to vector<16x8xf32>
    %97 = arith.truncf %96 : vector<16x8xf32> to vector<16x8xbf16>
    %98 = vector.extract_strided_slice %72 {offsets = [0, 0], sizes = [8, 32], strides = [1, 1]} : vector<32x32xbf16> to vector<8x32xbf16>
    %cst_41 = arith.constant dense<0.000000e+00> : vector<16x32xf32>
    %99 = tpu.matmul %97, %98, %cst_41 {dimension_numbers = #tpu.dot_dimension_numbers<[1], [0], [0], [1], [0, 0, 1, 1], [], []>} : vector<16x8xbf16>, vector<8x32xbf16>, vector<16x32xf32> -> vector<16x32xf32>
    %100 = vector.extract_strided_slice %63 {offsets = [0, 0, 8], sizes = [2, 8, 8], strides = [1, 1, 1]} : vector<2x8x32xf32> to vector<2x8x8xf32>
    %101 = arith.truncf %100 : vector<2x8x8xf32> to vector<2x8x8xbf16>
    %102 = vector.extract_strided_slice %64 {offsets = [0, 0, 8], sizes = [2, 8, 8], strides = [1, 1, 1]} : vector<2x8x32xf32> to vector<2x8x8xf32>
    %103 = arith.truncf %102 : vector<2x8x8xf32> to vector<2x8x8xbf16>
    %104 = vector.extract_strided_slice %65 {offsets = [0, 0, 8], sizes = [2, 8, 8], strides = [1, 1, 1]} : vector<2x8x32xf32> to vector<2x8x8xf32>
    %105 = arith.truncf %104 : vector<2x8x8xf32> to vector<2x8x8xbf16>
    "tpu.trace_start"() <{level = 10 : i32, message = "bqd,bkd->bqk"}> : () -> ()
    %cst_42 = arith.constant dense<0.000000e+00> : vector<2x8x8xf32>
    %106 = tpu.matmul %101, %103, %cst_42 {dimension_numbers = #tpu.dot_dimension_numbers<[2], [2], [1], [1], [0, 0, 0, 1, 1, 1], [0], [0]>} : vector<2x8x8xbf16>, vector<2x8x8xbf16>, vector<2x8x8xf32> -> vector<2x8x8xf32>
    "tpu.trace_stop"() : () -> ()
    %cst_43 = arith.constant 0.353553385 : f32
    %107 = vector.broadcast %cst_43 : f32 to vector<2x8x8xf32>
    %108 = arith.mulf %106, %107 : vector<2x8x8xf32>
    %109 = vector.broadcast %70 : vector<2x1x8xf32> to vector<2x8x8xf32>
    %110 = arith.addf %108, %109 : vector<2x8x8xf32>
    %cst_44 = arith.constant dense<0xFF800000> : vector<2x8xf32>
    %111 = vector.multi_reduction <maximumf>, %110, %cst_44 [2] : vector<2x8x8xf32> to vector<2x8xf32>
    %112 = vector.shape_cast %111 : vector<2x8xf32> to vector<2x8x1xf32>
    %113 = vector.broadcast %112 : vector<2x8x1xf32> to vector<2x8x8xf32>
    %114 = arith.subf %110, %113 : vector<2x8x8xf32>
    %115 = math.exp %114 : vector<2x8x8xf32>
    %cst_45 = arith.constant dense<0.000000e+00> : vector<2x8xf32>
    %116 = vector.multi_reduction <add>, %115, %cst_45 [2] : vector<2x8x8xf32> to vector<2x8xf32>
    %117 = vector.shape_cast %116 : vector<2x8xf32> to vector<2x8x1xf32>
    %118 = tpu.reciprocal %117 {approx = true} : vector<2x8x1xf32> -> vector<2x8x1xf32>
    %119 = vector.broadcast %118 : vector<2x8x1xf32> to vector<2x8x8xf32>
    %120 = arith.mulf %115, %119 : vector<2x8x8xf32>
    %121 = arith.truncf %120 : vector<2x8x8xf32> to vector<2x8x8xbf16>
    "tpu.trace_start"() <{level = 10 : i32, message = "bqk,bkd->bqd"}> : () -> ()
    %cst_46 = arith.constant dense<0.000000e+00> : vector<2x8x8xf32>
    %122 = tpu.matmul %121, %105, %cst_46 {dimension_numbers = #tpu.dot_dimension_numbers<[2], [1], [1], [2], [0, 0, 0, 1, 1, 2], [0], [0]>} : vector<2x8x8xbf16>, vector<2x8x8xbf16>, vector<2x8x8xf32> -> vector<2x8x8xf32>
    "tpu.trace_stop"() : () -> ()
    %123 = vector.shape_cast %122 : vector<2x8x8xf32> to vector<16x8xf32>
    %124 = arith.truncf %123 : vector<16x8xf32> to vector<16x8xbf16>
    %125 = vector.extract_strided_slice %72 {offsets = [8, 0], sizes = [8, 32], strides = [1, 1]} : vector<32x32xbf16> to vector<8x32xbf16>
    %cst_47 = arith.constant dense<0.000000e+00> : vector<16x32xf32>
    %126 = tpu.matmul %124, %125, %cst_47 {dimension_numbers = #tpu.dot_dimension_numbers<[1], [0], [0], [1], [0, 0, 1, 1], [], []>} : vector<16x8xbf16>, vector<8x32xbf16>, vector<16x32xf32> -> vector<16x32xf32>
    %127 = arith.addf %99, %126 : vector<16x32xf32>
    %128 = vector.extract_strided_slice %63 {offsets = [0, 0, 16], sizes = [2, 8, 8], strides = [1, 1, 1]} : vector<2x8x32xf32> to vector<2x8x8xf32>
    %129 = arith.truncf %128 : vector<2x8x8xf32> to vector<2x8x8xbf16>
    %130 = vector.extract_strided_slice %64 {offsets = [0, 0, 16], sizes = [2, 8, 8], strides = [1, 1, 1]} : vector<2x8x32xf32> to vector<2x8x8xf32>
    %131 = arith.truncf %130 : vector<2x8x8xf32> to vector<2x8x8xbf16>
    %132 = vector.extract_strided_slice %65 {offsets = [0, 0, 16], sizes = [2, 8, 8], strides = [1, 1, 1]} : vector<2x8x32xf32> to vector<2x8x8xf32>
    %133 = arith.truncf %132 : vector<2x8x8xf32> to vector<2x8x8xbf16>
    "tpu.trace_start"() <{level = 10 : i32, message = "bqd,bkd->bqk"}> : () -> ()
    %cst_48 = arith.constant dense<0.000000e+00> : vector<2x8x8xf32>
    %134 = tpu.matmul %129, %131, %cst_48 {dimension_numbers = #tpu.dot_dimension_numbers<[2], [2], [1], [1], [0, 0, 0, 1, 1, 1], [0], [0]>} : vector<2x8x8xbf16>, vector<2x8x8xbf16>, vector<2x8x8xf32> -> vector<2x8x8xf32>
    "tpu.trace_stop"() : () -> ()
    %cst_49 = arith.constant 0.353553385 : f32
    %135 = vector.broadcast %cst_49 : f32 to vector<2x8x8xf32>
    %136 = arith.mulf %134, %135 : vector<2x8x8xf32>
    %137 = vector.broadcast %70 : vector<2x1x8xf32> to vector<2x8x8xf32>
    %138 = arith.addf %136, %137 : vector<2x8x8xf32>
    %cst_50 = arith.constant dense<0xFF800000> : vector<2x8xf32>
    %139 = vector.multi_reduction <maximumf>, %138, %cst_50 [2] : vector<2x8x8xf32> to vector<2x8xf32>
    %140 = vector.shape_cast %139 : vector<2x8xf32> to vector<2x8x1xf32>
    %141 = vector.broadcast %140 : vector<2x8x1xf32> to vector<2x8x8xf32>
    %142 = arith.subf %138, %141 : vector<2x8x8xf32>
    %143 = math.exp %142 : vector<2x8x8xf32>
    %cst_51 = arith.constant dense<0.000000e+00> : vector<2x8xf32>
    %144 = vector.multi_reduction <add>, %143, %cst_51 [2] : vector<2x8x8xf32> to vector<2x8xf32>
    %145 = vector.shape_cast %144 : vector<2x8xf32> to vector<2x8x1xf32>
    %146 = tpu.reciprocal %145 {approx = true} : vector<2x8x1xf32> -> vector<2x8x1xf32>
    %147 = vector.broadcast %146 : vector<2x8x1xf32> to vector<2x8x8xf32>
    %148 = arith.mulf %143, %147 : vector<2x8x8xf32>
    %149 = arith.truncf %148 : vector<2x8x8xf32> to vector<2x8x8xbf16>
    "tpu.trace_start"() <{level = 10 : i32, message = "bqk,bkd->bqd"}> : () -> ()
    %cst_52 = arith.constant dense<0.000000e+00> : vector<2x8x8xf32>
    %150 = tpu.matmul %149, %133, %cst_52 {dimension_numbers = #tpu.dot_dimension_numbers<[2], [1], [1], [2], [0, 0, 0, 1, 1, 2], [0], [0]>} : vector<2x8x8xbf16>, vector<2x8x8xbf16>, vector<2x8x8xf32> -> vector<2x8x8xf32>
    "tpu.trace_stop"() : () -> ()
    %151 = vector.shape_cast %150 : vector<2x8x8xf32> to vector<16x8xf32>
    %152 = arith.truncf %151 : vector<16x8xf32> to vector<16x8xbf16>
    %153 = vector.extract_strided_slice %72 {offsets = [16, 0], sizes = [8, 32], strides = [1, 1]} : vector<32x32xbf16> to vector<8x32xbf16>
    %cst_53 = arith.constant dense<0.000000e+00> : vector<16x32xf32>
    %154 = tpu.matmul %152, %153, %cst_53 {dimension_numbers = #tpu.dot_dimension_numbers<[1], [0], [0], [1], [0, 0, 1, 1], [], []>} : vector<16x8xbf16>, vector<8x32xbf16>, vector<16x32xf32> -> vector<16x32xf32>
    %155 = arith.addf %127, %154 : vector<16x32xf32>
    %156 = vector.extract_strided_slice %63 {offsets = [0, 0, 24], sizes = [2, 8, 8], strides = [1, 1, 1]} : vector<2x8x32xf32> to vector<2x8x8xf32>
    %157 = arith.truncf %156 : vector<2x8x8xf32> to vector<2x8x8xbf16>
    %158 = vector.extract_strided_slice %64 {offsets = [0, 0, 24], sizes = [2, 8, 8], strides = [1, 1, 1]} : vector<2x8x32xf32> to vector<2x8x8xf32>
    %159 = arith.truncf %158 : vector<2x8x8xf32> to vector<2x8x8xbf16>
    %160 = vector.extract_strided_slice %65 {offsets = [0, 0, 24], sizes = [2, 8, 8], strides = [1, 1, 1]} : vector<2x8x32xf32> to vector<2x8x8xf32>
    %161 = arith.truncf %160 : vector<2x8x8xf32> to vector<2x8x8xbf16>
    "tpu.trace_start"() <{level = 10 : i32, message = "bqd,bkd->bqk"}> : () -> ()
    %cst_54 = arith.constant dense<0.000000e+00> : vector<2x8x8xf32>
    %162 = tpu.matmul %157, %159, %cst_54 {dimension_numbers = #tpu.dot_dimension_numbers<[2], [2], [1], [1], [0, 0, 0, 1, 1, 1], [0], [0]>} : vector<2x8x8xbf16>, vector<2x8x8xbf16>, vector<2x8x8xf32> -> vector<2x8x8xf32>
    "tpu.trace_stop"() : () -> ()
    %cst_55 = arith.constant 0.353553385 : f32
    %163 = vector.broadcast %cst_55 : f32 to vector<2x8x8xf32>
    %164 = arith.mulf %162, %163 : vector<2x8x8xf32>
    %165 = vector.broadcast %70 : vector<2x1x8xf32> to vector<2x8x8xf32>
    %166 = arith.addf %164, %165 : vector<2x8x8xf32>
    %cst_56 = arith.constant dense<0xFF800000> : vector<2x8xf32>
    %167 = vector.multi_reduction <maximumf>, %166, %cst_56 [2] : vector<2x8x8xf32> to vector<2x8xf32>
    %168 = vector.shape_cast %167 : vector<2x8xf32> to vector<2x8x1xf32>
    %169 = vector.broadcast %168 : vector<2x8x1xf32> to vector<2x8x8xf32>
    %170 = arith.subf %166, %169 : vector<2x8x8xf32>
    %171 = math.exp %170 : vector<2x8x8xf32>
    %cst_57 = arith.constant dense<0.000000e+00> : vector<2x8xf32>
    %172 = vector.multi_reduction <add>, %171, %cst_57 [2] : vector<2x8x8xf32> to vector<2x8xf32>
    %173 = vector.shape_cast %172 : vector<2x8xf32> to vector<2x8x1xf32>
    %174 = tpu.reciprocal %173 {approx = true} : vector<2x8x1xf32> -> vector<2x8x1xf32>
    %175 = vector.broadcast %174 : vector<2x8x1xf32> to vector<2x8x8xf32>
    %176 = arith.mulf %171, %175 : vector<2x8x8xf32>
    %177 = arith.truncf %176 : vector<2x8x8xf32> to vector<2x8x8xbf16>
    "tpu.trace_start"() <{level = 10 : i32, message = "bqk,bkd->bqd"}> : () -> ()
    %cst_58 = arith.constant dense<0.000000e+00> : vector<2x8x8xf32>
    %178 = tpu.matmul %177, %161, %cst_58 {dimension_numbers = #tpu.dot_dimension_numbers<[2], [1], [1], [2], [0, 0, 0, 1, 1, 2], [0], [0]>} : vector<2x8x8xbf16>, vector<2x8x8xbf16>, vector<2x8x8xf32> -> vector<2x8x8xf32>
    "tpu.trace_stop"() : () -> ()
    %179 = vector.shape_cast %178 : vector<2x8x8xf32> to vector<16x8xf32>
    %180 = arith.truncf %179 : vector<16x8xf32> to vector<16x8xbf16>
    %181 = vector.extract_strided_slice %72 {offsets = [24, 0], sizes = [8, 32], strides = [1, 1]} : vector<32x32xbf16> to vector<8x32xbf16>
    %cst_59 = arith.constant dense<0.000000e+00> : vector<16x32xf32>
    %182 = tpu.matmul %180, %181, %cst_59 {dimension_numbers = #tpu.dot_dimension_numbers<[1], [0], [0], [1], [0, 0, 1, 1], [], []>} : vector<16x8xbf16>, vector<8x32xbf16>, vector<16x32xf32> -> vector<16x32xf32>
    %183 = arith.addf %155, %182 : vector<16x32xf32>
    %184 = vector.shape_cast %183 : vector<16x32xf32> to vector<2x8x32xf32>
    %c0_60 = arith.constant 0 : index
    %c0_61 = arith.constant 0 : index
    %c0_62 = arith.constant 0 : index
    %185 = vector.load %arg10[%c0_60, %c0_61, %c0_62] : memref<1x1x32xf32, #tpu.memory_space<vmem>>, vector<1x1x32xf32>
    %186 = vector.shape_cast %185 : vector<1x1x32xf32> to vector<32xf32>
    %187 = vector.shape_cast %186 : vector<32xf32> to vector<1x1x32xf32>
    %188 = vector.broadcast %187 : vector<1x1x32xf32> to vector<2x8x32xf32>
    %189 = arith.addf %184, %188 : vector<2x8x32xf32>
    %190 = arith.addf %189, %51 : vector<2x8x32xf32>
    %c0_63 = arith.constant 0 : index
    %c0_64 = arith.constant 0 : index
    %c0_65 = arith.constant 0 : index
    %191 = vector.load %arg11[%c0_63, %c0_64, %c0_65] : memref<1x1x32xf32, #tpu.memory_space<vmem>>, vector<1x1x32xf32>
    %192 = vector.shape_cast %191 : vector<1x1x32xf32> to vector<32xf32>
    %c0_66 = arith.constant 0 : index
    %c0_67 = arith.constant 0 : index
    %c0_68 = arith.constant 0 : index
    %193 = vector.load %arg12[%c0_66, %c0_67, %c0_68] : memref<1x1x32xf32, #tpu.memory_space<vmem>>, vector<1x1x32xf32>
    %194 = vector.shape_cast %193 : vector<1x1x32xf32> to vector<32xf32>
    %cst_69 = arith.constant dense<0.000000e+00> : vector<2x8xf32>
    %195 = vector.multi_reduction <add>, %190, %cst_69 [2] : vector<2x8x32xf32> to vector<2x8xf32>
    %196 = vector.shape_cast %195 : vector<2x8xf32> to vector<2x8x1xf32>
    %cst_70 = arith.constant 3.200000e+01 : f32
    %197 = vector.broadcast %cst_70 : f32 to vector<2x8x1xf32>
    %198 = arith.divf %196, %197 : vector<2x8x1xf32>
    %199 = vector.broadcast %198 : vector<2x8x1xf32> to vector<2x8x32xf32>
    %200 = arith.subf %190, %199 : vector<2x8x32xf32>
    %201 = arith.mulf %200, %200 : vector<2x8x32xf32>
    %cst_71 = arith.constant dense<0.000000e+00> : vector<2x8xf32>
    %202 = vector.multi_reduction <add>, %201, %cst_71 [2] : vector<2x8x32xf32> to vector<2x8xf32>
    %203 = vector.shape_cast %202 : vector<2x8xf32> to vector<2x8x1xf32>
    %cst_72 = arith.constant 3.200000e+01 : f32
    %204 = vector.broadcast %cst_72 : f32 to vector<2x8x1xf32>
    %205 = arith.divf %203, %204 : vector<2x8x1xf32>
    %206 = vector.broadcast %198 : vector<2x8x1xf32> to vector<2x8x32xf32>
    %207 = arith.subf %190, %206 : vector<2x8x32xf32>
    %cst_73 = arith.constant 9.99999996E-13 : f32
    %208 = vector.broadcast %cst_73 : f32 to vector<2x8x1xf32>
    %209 = arith.addf %205, %208 : vector<2x8x1xf32>
    %210 = math.rsqrt %209 : vector<2x8x1xf32>
    %211 = vector.broadcast %210 : vector<2x8x1xf32> to vector<2x8x32xf32>
    %212 = arith.mulf %207, %211 : vector<2x8x32xf32>
    %213 = vector.shape_cast %192 : vector<32xf32> to vector<1x1x32xf32>
    %214 = vector.broadcast %213 : vector<1x1x32xf32> to vector<2x8x32xf32>
    %215 = arith.mulf %212, %214 : vector<2x8x32xf32>
    %216 = vector.shape_cast %194 : vector<32xf32> to vector<1x1x32xf32>
    %217 = vector.broadcast %216 : vector<1x1x32xf32> to vector<2x8x32xf32>
    %218 = arith.addf %215, %217 : vector<2x8x32xf32>
    %219 = vector.shape_cast %0 : vector<2x8xf32> to vector<2x8x1xf32>
    %220 = vector.broadcast %219 : vector<2x8x1xf32> to vector<2x8x32xf32>
    %221 = arith.mulf %218, %220 : vector<2x8x32xf32>
    %cst_74 = arith.constant dense<0.000000e+00> : vector<2x32xf32>
    %222 = vector.multi_reduction <add>, %221, %cst_74 [1] : vector<2x8x32xf32> to vector<2x32xf32>
    %cst_75 = arith.constant dense<0.000000e+00> : vector<2xf32>
    %223 = vector.multi_reduction <add>, %0, %cst_75 [1] : vector<2x8xf32> to vector<2xf32>
    %224 = vector.shape_cast %223 : vector<2xf32> to vector<2x1xf32>
    %cst_76 = arith.constant 9.99999971E-10 : f32
    %225 = vector.broadcast %cst_76 : f32 to vector<2x1xf32>
    %226 = arith.maximumf %224, %225 : vector<2x1xf32>
    %227 = tpu.reciprocal %226 {approx = true} : vector<2x1xf32> -> vector<2x1xf32>
    %228 = vector.broadcast %227 : vector<2x1xf32> to vector<2x32xf32>
    %229 = arith.mulf %222, %228 : vector<2x32xf32>
    %c0_77 = arith.constant 0 : index
    %c0_78 = arith.constant 0 : index
    %c0_79 = arith.constant 0 : index
    %230 = vector.load %arg13[%c0_77, %c0_78, %c0_79] : memref<1x1x32xf32, #tpu.memory_space<vmem>>, vector<1x1x32xf32>
    %231 = vector.shape_cast %230 : vector<1x1x32xf32> to vector<32xf32>
    %c0_80 = arith.constant 0 : index
    %c0_81 = arith.constant 0 : index
    %c0_82 = arith.constant 0 : index
    %232 = vector.load %arg14[%c0_80, %c0_81, %c0_82] : memref<1x1x32xf32, #tpu.memory_space<vmem>>, vector<1x1x32xf32>
    %233 = vector.shape_cast %232 : vector<1x1x32xf32> to vector<32xf32>
    %cst_83 = arith.constant dense<0.000000e+00> : vector<2xf32>
    %234 = vector.multi_reduction <add>, %229, %cst_83 [1] : vector<2x32xf32> to vector<2xf32>
    %235 = vector.shape_cast %234 : vector<2xf32> to vector<2x1xf32>
    %cst_84 = arith.constant 3.200000e+01 : f32
    %236 = vector.broadcast %cst_84 : f32 to vector<2x1xf32>
    %237 = arith.divf %235, %236 : vector<2x1xf32>
    %238 = vector.broadcast %237 : vector<2x1xf32> to vector<2x32xf32>
    %239 = arith.subf %229, %238 : vector<2x32xf32>
    %240 = arith.mulf %239, %239 : vector<2x32xf32>
    %cst_85 = arith.constant dense<0.000000e+00> : vector<2xf32>
    %241 = vector.multi_reduction <add>, %240, %cst_85 [1] : vector<2x32xf32> to vector<2xf32>
    %242 = vector.shape_cast %241 : vector<2xf32> to vector<2x1xf32>
    %cst_86 = arith.constant 3.200000e+01 : f32
    %243 = vector.broadcast %cst_86 : f32 to vector<2x1xf32>
    %244 = arith.divf %242, %243 : vector<2x1xf32>
    %245 = vector.broadcast %237 : vector<2x1xf32> to vector<2x32xf32>
    %246 = arith.subf %229, %245 : vector<2x32xf32>
    %cst_87 = arith.constant 1.000000e-07 : f32
    %247 = vector.broadcast %cst_87 : f32 to vector<2x1xf32>
    %248 = arith.addf %244, %247 : vector<2x1xf32>
    %249 = math.rsqrt %248 : vector<2x1xf32>
    %250 = vector.broadcast %249 : vector<2x1xf32> to vector<2x32xf32>
    %251 = arith.mulf %246, %250 : vector<2x32xf32>
    %252 = vector.shape_cast %231 : vector<32xf32> to vector<1x32xf32>
    %253 = vector.broadcast %252 : vector<1x32xf32> to vector<2x32xf32>
    %254 = arith.mulf %251, %253 : vector<2x32xf32>
    %255 = vector.shape_cast %233 : vector<32xf32> to vector<1x32xf32>
    %256 = vector.broadcast %255 : vector<1x32xf32> to vector<2x32xf32>
    %257 = arith.addf %254, %256 : vector<2x32xf32>
    %c0_88 = arith.constant 0 : index
    %c0_89 = arith.constant 0 : index
    %c0_90 = arith.constant 0 : index
    %258 = vector.load %arg15[%c0_88, %c0_89, %c0_90] : memref<1x2x32xf32, #tpu.memory_space<vmem>>, vector<1x2x32xf32>
    %259 = vector.shape_cast %258 : vector<1x2x32xf32> to vector<2x32xf32>
    %260 = vector.shape_cast %257 : vector<2x32xf32> to vector<1x2x32xf32>
    tpu.vector_store %arg15[%c0_88, %c0_89, %c0_90], %260 {strides = array<i32>} : memref<1x2x32xf32, #tpu.memory_space<vmem>>, vector<1x2x32xf32>,
    return
  }
  func.func @transform_0(%arg0: i32, %arg1: i32) -> (i32, i32) {
    %c0_i32 = arith.constant 0 : i32
    %c0_i32_0 = arith.constant 0 : i32
    %c0_i32_1 = arith.constant 0 : i32
    return %c0_i32, %c0_i32_0 : i32, i32
  }
  func.func @transform_1(%arg0: i32, %arg1: i32) -> (i32, i32, i32, i32) {
    %c0_i32 = arith.constant 0 : i32
    %c0_i32_0 = arith.constant 0 : i32
    %c0_i32_1 = arith.constant 0 : i32
    %c0_i32_2 = arith.constant 0 : i32
    return %c0_i32, %arg0, %c0_i32_0, %c0_i32_1 : i32, i32, i32, i32
  }
  func.func @transform_2(%arg0: i32, %arg1: i32) -> (i32, i32) {
    %c0_i32 = arith.constant 0 : i32
    %c0_i32_0 = arith.constant 0 : i32
    return %arg0, %c0_i32 : i32, i32
  }
  func.func @transform_3(%arg0: i32, %arg1: i32) -> (i32, i32, i32) {
    %c0_i32 = arith.constant 0 : i32
    %c0_i32_0 = arith.constant 0 : i32
    %c0_i32_1 = arith.constant 0 : i32
    return %arg1, %c0_i32, %c0_i32_0 : i32, i32, i32
  }
  func.func @transform_4(%arg0: i32, %arg1: i32) -> (i32, i32, i32) {
    %c0_i32 = arith.constant 0 : i32
    %c0_i32_0 = arith.constant 0 : i32
    %c0_i32_1 = arith.constant 0 : i32
    return %arg1, %c0_i32, %c0_i32_0 : i32, i32, i32
  }
  func.func @transform_5(%arg0: i32, %arg1: i32) -> (i32, i32, i32) {
    %c0_i32 = arith.constant 0 : i32
    %c0_i32_0 = arith.constant 0 : i32
    %c0_i32_1 = arith.constant 0 : i32
    return %arg1, %c0_i32, %c0_i32_0 : i32, i32, i32
  }
  func.func @transform_6(%arg0: i32, %arg1: i32) -> (i32, i32, i32) {
    %c0_i32 = arith.constant 0 : i32
    %c0_i32_0 = arith.constant 0 : i32
    %c0_i32_1 = arith.constant 0 : i32
    return %arg1, %c0_i32, %c0_i32_0 : i32, i32, i32
  }
  func.func @transform_7(%arg0: i32, %arg1: i32) -> (i32, i32, i32) {
    %c0_i32 = arith.constant 0 : i32
    %c0_i32_0 = arith.constant 0 : i32
    %c0_i32_1 = arith.constant 0 : i32
    return %arg1, %c0_i32, %c0_i32_0 : i32, i32, i32
  }
  func.func @transform_8(%arg0: i32, %arg1: i32) -> (i32, i32, i32) {
    %c0_i32 = arith.constant 0 : i32
    %c0_i32_0 = arith.constant 0 : i32
    %c0_i32_1 = arith.constant 0 : i32
    return %arg1, %c0_i32, %c0_i32_0 : i32, i32, i32
  }
  func.func @transform_9(%arg0: i32, %arg1: i32) -> (i32, i32, i32) {
    %c0_i32 = arith.constant 0 : i32
    %c0_i32_0 = arith.constant 0 : i32
    %c0_i32_1 = arith.constant 0 : i32
    return %arg1, %c0_i32, %c0_i32_0 : i32, i32, i32
  }
  func.func @transform_10(%arg0: i32, %arg1: i32) -> (i32, i32, i32) {
    %c0_i32 = arith.constant 0 : i32
    %c0_i32_0 = arith.constant 0 : i32
    %c0_i32_1 = arith.constant 0 : i32
    return %arg1, %c0_i32, %c0_i32_0 : i32, i32, i32
  }
  func.func @transform_11(%arg0: i32, %arg1: i32) -> (i32, i32, i32) {
    %c0_i32 = arith.constant 0 : i32
    %c0_i32_0 = arith.constant 0 : i32
    %c0_i32_1 = arith.constant 0 : i32
    return %arg1, %c0_i32, %c0_i32_0 : i32, i32, i32
  }
  func.func @transform_12(%arg0: i32, %arg1: i32) -> (i32, i32, i32) {
    %c0_i32 = arith.constant 0 : i32
    %c0_i32_0 = arith.constant 0 : i32
    %c0_i32_1 = arith.constant 0 : i32
    return %arg1, %c0_i32, %c0_i32_0 : i32, i32, i32
  }
  func.func @transform_13(%arg0: i32, %arg1: i32) -> (i32, i32, i32) {
    %c0_i32 = arith.constant 0 : i32
    %c0_i32_0 = arith.constant 0 : i32
    return %arg1, %arg0, %c0_i32 : i32, i32, i32
  }
}

module attributes {stable_mosaic.version = 11 : i64} {
  func.func @_feature_extractor_kernel(%arg0: i32, %arg1: i32, %arg2: memref<6x3xf32, #tpu.memory_space<smem>>, %arg3: memref<3x2x8x32xbf16, #tpu.memory_space<vmem>>, %arg4: memref<2x8xf32, #tpu.memory_space<vmem>>, %arg5: memref<1x1x32xf32, #tpu.memory_space<vmem>>, %arg6: memref<1x1x32xf32, #tpu.memory_space<vmem>>, %arg7: memref<1x32x96xbf16, #tpu.memory_space<vmem>>, %arg8: memref<1x1x96xf32, #tpu.memory_space<vmem>>, %arg9: memref<1x32x32xbf16, #tpu.memory_space<vmem>>, %arg10: memref<1x1x32xf32, #tpu.memory_space<vmem>>, %arg11: memref<1x1x32xf32, #tpu.memory_space<vmem>>, %arg12: memref<1x1x32xf32, #tpu.memory_space<vmem>>, %arg13: memref<1x1x32xf32, #tpu.memory_space<vmem>>, %arg14: memref<1x1x32xf32, #tpu.memory_space<vmem>>, %arg15: memref<1x2x32xf32, #tpu.memory_space<vmem>>) attributes {dimension_semantics = [#tpu.dimension_semantics<parallel>, #tpu.dimension_semantics<parallel>], iteration_bounds = array<i64: 1, 6>, scalar_prefetch = 0 : i64, scratch_operands = 0 : i64, tpu.core_type = #tpu.core_type<tc>, window_params = [{transform_indices = @transform_0, window_bounds = array<i64: 6, 3>}, {transform_indices = @transform_1, window_bounds = array<i64: 3, 2, 8, 32>}, {transform_indices = @transform_2, window_bounds = array<i64: 2, 8>}, {transform_indices = @transform_3, window_bounds = array<i64: 1, 1, 32>}, {transform_indices = @transform_4, window_bounds = array<i64: 1, 1, 32>}, {transform_indices = @transform_5, window_bounds = array<i64: 1, 32, 96>}, {transform_indices = @transform_6, window_bounds = array<i64: 1, 1, 96>}, {transform_indices = @transform_7, window_bounds = array<i64: 1, 32, 32>}, {transform_indices = @transform_8, window_bounds = array<i64: 1, 1, 32>}, {transform_indices = @transform_9, window_bounds = array<i64: 1, 1, 32>}, {transform_indices = @transform_10, window_bounds = array<i64: 1, 1, 32>}, {transform_indices = @transform_11, window_bounds = array<i64: 1, 1, 32>}, {transform_indices = @transform_12, window_bounds = array<i64: 1, 1, 32>}, {transform_indices = @transform_13, window_bounds = array<i64: 1, 2, 32>}]} {
    %c0 = arith.constant 0 : index
    %c0_0 = arith.constant 0 : index
    %0 = vector.load %arg4[%c0, %c0_0] : memref<2x8xf32, #tpu.memory_space<vmem>>, vector<2x8xf32>
    %1 = arith.index_cast %arg1 : i32 to index
    %c0_1 = arith.constant 0 : index
    %2 = memref.load %arg2[%1, %c0_1] : memref<6x3xf32, #tpu.memory_space<smem>>
    %c0_2 = arith.constant 0 : index
    %c0_3 = arith.constant 0 : index
    %c0_4 = arith.constant 0 : index
    %c0_5 = arith.constant 0 : index
    %3 = vector.load %arg3[%c0_2, %c0_3, %c0_4, %c0_5] : memref<3x2x8x32xbf16, #tpu.memory_space<vmem>>, vector<1x2x8x32xbf16>
    %4 = vector.shape_cast %3 : vector<1x2x8x32xbf16> to vector<2x8x32xbf16>
    %5 = arith.extf %4 : vector<2x8x32xbf16> to vector<2x8x32xf32>
    %6 = vector.broadcast %2 : f32 to vector<2x8x32xf32>
    %7 = arith.mulf %6, %5 : vector<2x8x32xf32>
    %8 = arith.index_cast %arg1 : i32 to index
    %c1 = arith.constant 1 : index
    %9 = memref.load %arg2[%8, %c1] : memref<6x3xf32, #tpu.memory_space<smem>>
    %c1_6 = arith.constant 1 : index
    %c0_7 = arith.constant 0 : index
    %c0_8 = arith.constant 0 : index
    %c0_9 = arith.constant 0 : index
    %10 = vector.load %arg3[%c1_6, %c0_7, %c0_8, %c0_9] : memref<3x2x8x32xbf16, #tpu.memory_space<vmem>>, vector<1x2x8x32xbf16>
    %11 = vector.shape_cast %10 : vector<1x2x8x32xbf16> to vector<2x8x32xbf16>
    %12 = arith.extf %11 : vector<2x8x32xbf16> to vector<2x8x32xf32>
    %13 = vector.broadcast %9 : f32 to vector<2x8x32xf32>
    %14 = arith.mulf %13, %12 : vector<2x8x32xf32>
    %15 = arith.addf %7, %14 : vector<2x8x32xf32>
    %16 = arith.index_cast %arg1 : i32 to index
    %c2 = arith.constant 2 : index
    %17 = memref.load %arg2[%16, %c2] : memref<6x3xf32, #tpu.memory_space<smem>>
    %c2_10 = arith.constant 2 : index
    %c0_11 = arith.constant 0 : index
    %c0_12 = arith.constant 0 : index
    %c0_13 = arith.constant 0 : index
    %18 = vector.load %arg3[%c2_10, %c0_11, %c0_12, %c0_13] : memref<3x2x8x32xbf16, #tpu.memory_space<vmem>>, vector<1x2x8x32xbf16>
    %19 = vector.shape_cast %18 : vector<1x2x8x32xbf16> to vector<2x8x32xbf16>
    %20 = arith.extf %19 : vector<2x8x32xbf16> to vector<2x8x32xf32>
    %21 = vector.broadcast %17 : f32 to vector<2x8x32xf32>
    %22 = arith.mulf %21, %20 : vector<2x8x32xf32>
    %23 = arith.addf %15, %22 : vector<2x8x32xf32>
    %c0_14 = arith.constant 0 : index
    %c0_15 = arith.constant 0 : index
    %c0_16 = arith.constant 0 : index
    %24 = vector.load %arg5[%c0_14, %c0_15, %c0_16] : memref<1x1x32xf32, #tpu.memory_space<vmem>>, vector<1x1x32xf32>
    %25 = vector.shape_cast %24 : vector<1x1x32xf32> to vector<32xf32>
    %c0_17 = arith.constant 0 : index
    %c0_18 = arith.constant 0 : index
    %c0_19 = arith.constant 0 : index
    %26 = vector.load %arg6[%c0_17, %c0_18, %c0_19] : memref<1x1x32xf32, #tpu.memory_space<vmem>>, vector<1x1x32xf32>
    %27 = vector.shape_cast %26 : vector<1x1x32xf32> to vector<32xf32>
    %cst = arith.constant dense<0.000000e+00> : vector<2x8xf32>
    %28 = vector.multi_reduction <add>, %23, %cst [2] : vector<2x8x32xf32> to vector<2x8xf32>
    %29 = vector.shape_cast %28 : vector<2x8xf32> to vector<2x8x1xf32>
    %cst_20 = arith.constant 3.200000e+01 : f32
    %30 = vector.broadcast %cst_20 : f32 to vector<2x8x1xf32>
    %31 = arith.divf %29, %30 : vector<2x8x1xf32>
    %32 = vector.broadcast %31 : vector<2x8x1xf32> to vector<2x8x32xf32>
    %33 = arith.subf %23, %32 : vector<2x8x32xf32>
    %34 = arith.mulf %33, %33 : vector<2x8x32xf32>
    %cst_21 = arith.constant dense<0.000000e+00> : vector<2x8xf32>
    %35 = vector.multi_reduction <add>, %34, %cst_21 [2] : vector<2x8x32xf32> to vector<2x8xf32>
    %36 = vector.shape_cast %35 : vector<2x8xf32> to vector<2x8x1xf32>
    %cst_22 = arith.constant 3.200000e+01 : f32
    %37 = vector.broadcast %cst_22 : f32 to vector<2x8x1xf32>
    %38 = arith.divf %36, %37 : vector<2x8x1xf32>
    %39 = vector.broadcast %31 : vector<2x8x1xf32> to vector<2x8x32xf32>
    %40 = arith.subf %23, %39 : vector<2x8x32xf32>
    %cst_23 = arith.constant 1.000000e-07 : f32
    %41 = vector.broadcast %cst_23 : f32 to vector<2x8x1xf32>
    %42 = arith.addf %38, %41 : vector<2x8x1xf32>
    %43 = math.rsqrt %42 : vector<2x8x1xf32>
    %44 = vector.broadcast %43 : vector<2x8x1xf32> to vector<2x8x32xf32>
    %45 = arith.mulf %40, %44 : vector<2x8x32xf32>
    %46 = vector.shape_cast %25 : vector<32xf32> to vector<1x1x32xf32>
    %47 = vector.broadcast %46 : vector<1x1x32xf32> to vector<2x8x32xf32>
    %48 = arith.mulf %45, %47 : vector<2x8x32xf32>
    %49 = vector.shape_cast %27 : vector<32xf32> to vector<1x1x32xf32>
    %50 = vector.broadcast %49 : vector<1x1x32xf32> to vector<2x8x32xf32>
    %51 = arith.addf %48, %50 : vector<2x8x32xf32>
    %52 = vector.shape_cast %51 : vector<2x8x32xf32> to vector<16x32xf32>
    %53 = arith.truncf %52 : vector<16x32xf32> to vector<16x32xbf16>
    %c0_24 = arith.constant 0 : index
    %c0_25 = arith.constant 0 : index
    %c0_26 = arith.constant 0 : index
    %54 = vector.load %arg7[%c0_24, %c0_25, %c0_26] : memref<1x32x96xbf16, #tpu.memory_space<vmem>>, vector<1x32x96xbf16>
    %55 = vector.shape_cast %54 : vector<1x32x96xbf16> to vector<32x96xbf16>
    %cst_27 = arith.constant dense<0.000000e+00> : vector<16x96xf32>
    %56 = tpu.matmul %53, %55, %cst_27 {dimension_numbers = #tpu.dot_dimension_numbers<[1], [0], [0], [1], [0, 0, 1, 1], [], []>} : vector<16x32xbf16>, vector<32x96xbf16>, vector<16x96xf32> -> vector<16x96xf32>
    %c0_28 = arith.constant 0 : index
    %c0_29 = arith.constant 0 : index
    %c0_30 = arith.constant 0 : index
    %57 = vector.load %arg8[%c0_28, %c0_29, %c0_30] : memref<1x1x96xf32, #tpu.memory_space<vmem>>, vector<1x1x96xf32>
    %58 = vector.shape_cast %57 : vector<1x1x96xf32> to vector<96xf32>
    %59 = vector.shape_cast %58 : vector<96xf32> to vector<1x96xf32>
    %60 = vector.broadcast %59 : vector<1x96xf32> to vector<16x96xf32>
    %61 = arith.addf %56, %60 : vector<16x96xf32>
    %62 = vector.shape_cast %61 : vector<16x96xf32> to vector<2x8x96xf32>
    %63 = vector.extract_strided_slice %62 {offsets = [0, 0, 0], sizes = [2, 8, 32], strides = [1, 1, 1]} : vector<2x8x96xf32> to vector<2x8x32xf32>
    %64 = vector.extract_strided_slice %62 {offsets = [0, 0, 32], sizes = [2, 8, 32], strides = [1, 1, 1]} : vector<2x8x96xf32> to vector<2x8x32xf32>
    %65 = vector.extract_strided_slice %62 {offsets = [0, 0, 64], sizes = [2, 8, 32], strides = [1, 1, 1]} : vector<2x8x96xf32> to vector<2x8x32xf32>
    %cst_31 = arith.constant 1.000000e+00 : f32
    %66 = vector.broadcast %cst_31 : f32 to vector<2x8xf32>
    %67 = arith.subf %66, %0 : vector<2x8xf32>
    %cst_32 = arith.constant -1.000000e+04 : f32
    %68 = vector.broadcast %cst_32 : f32 to vector<2x8xf32>
    %69 = arith.mulf %67, %68 : vector<2x8xf32>
    %70 = vector.shape_cast %69 : vector<2x8xf32> to vector<2x1x8xf32>
    %c0_33 = arith.constant 0 : index
    %c0_34 = arith.constant 0 : index
    %c0_35 = arith.constant 0 : index
    %71 = vector.load %arg9[%c0_33, %c0_34, %c0_35] : memref<1x32x32xbf16, #tpu.memory_space<vmem>>, vector<1x32x32xbf16>
    %72 = vector.shape_cast %71 : vector<1x32x32xbf16> to vector<32x32xbf16>
    %73 = vector.extract_strided_slice %63 {offsets = [0, 0, 0], sizes = [2, 8, 8], strides = [1, 1, 1]} : vector<2x8x32xf32> to vector<2x8x8xf32>
    %74 = arith.truncf %73 : vector<2x8x8xf32> to vector<2x8x8xbf16>
    %75 = vector.extract_strided_slice %64 {offsets = [0, 0, 0], sizes = [2, 8, 8], strides = [1, 1, 1]} : vector<2x8x32xf32> to vector<2x8x8xf32>
    %76 = arith.truncf %75 : vector<2x8x8xf32> to vector<2x8x8xbf16>
    %77 = vector.extract_strided_slice %65 {offsets = [0, 0, 0], sizes = [2, 8, 8], strides = [1, 1, 1]} : vector<2x8x32xf32> to vector<2x8x8xf32>
    %78 = arith.truncf %77 : vector<2x8x8xf32> to vector<2x8x8xbf16>
    "tpu.trace_start"() <{level = 10 : i32, message = "bqd,bkd->bqk"}> : () -> ()
    %cst_36 = arith.constant dense<0.000000e+00> : vector<2x8x8xf32>
    %79 = tpu.matmul %74, %76, %cst_36 {dimension_numbers = #tpu.dot_dimension_numbers<[2], [2], [1], [1], [0, 0, 0, 1, 1, 1], [0], [0]>} : vector<2x8x8xbf16>, vector<2x8x8xbf16>, vector<2x8x8xf32> -> vector<2x8x8xf32>
    "tpu.trace_stop"() : () -> ()
    %cst_37 = arith.constant 0.353553385 : f32
    %80 = vector.broadcast %cst_37 : f32 to vector<2x8x8xf32>
    %81 = arith.mulf %79, %80 : vector<2x8x8xf32>
    %82 = vector.broadcast %70 : vector<2x1x8xf32> to vector<2x8x8xf32>
    %83 = arith.addf %81, %82 : vector<2x8x8xf32>
    %cst_38 = arith.constant dense<0xFF800000> : vector<2x8xf32>
    %84 = vector.multi_reduction <maximumf>, %83, %cst_38 [2] : vector<2x8x8xf32> to vector<2x8xf32>
    %85 = vector.shape_cast %84 : vector<2x8xf32> to vector<2x8x1xf32>
    %86 = vector.broadcast %85 : vector<2x8x1xf32> to vector<2x8x8xf32>
    %87 = arith.subf %83, %86 : vector<2x8x8xf32>
    %88 = math.exp %87 : vector<2x8x8xf32>
    %cst_39 = arith.constant dense<0.000000e+00> : vector<2x8xf32>
    %89 = vector.multi_reduction <add>, %88, %cst_39 [2] : vector<2x8x8xf32> to vector<2x8xf32>
    %90 = vector.shape_cast %89 : vector<2x8xf32> to vector<2x8x1xf32>
    %91 = tpu.reciprocal %90 {approx = true} : vector<2x8x1xf32> -> vector<2x8x1xf32>
    %92 = vector.broadcast %91 : vector<2x8x1xf32> to vector<2x8x8xf32>
    %93 = arith.mulf %88, %92 : vector<2x8x8xf32>
    %94 = arith.truncf %93 : vector<2x8x8xf32> to vector<2x8x8xbf16>
    "tpu.trace_start"() <{level = 10 : i32, message = "bqk,bkd->bqd"}> : () -> ()
    %cst_40 = arith.constant dense<0.000000e+00> : vector<2x8x8xf32>
    %95 = tpu.matmul %94, %78, %cst_40 {dimension_numbers = #tpu.dot_dimension_numbers<[2], [1], [1], [2], [0, 0, 0, 1, 1, 2], [0], [0]>} : vector<2x8x8xbf16>, vector<2x8x8xbf16>, vector<2x8x8xf32> -> vector<2x8x8xf32>
    "tpu.trace_stop"() : () -> ()
    %96 = vector.shape_cast %95 : vector<2x8x8xf32> to vector<16x8xf32>
    %97 = arith.truncf %96 : vector<16x8xf32> to vector<16x8xbf16>
    %98 = vector.extract_strided_slice %72 {offsets = [0, 0], sizes = [8, 32], strides = [1, 1]} : vector<32x32xbf16> to vector<8x32xbf16>
    %cst_41 = arith.constant dense<0.000000e+00> : vector<16x32xf32>
    %99 = tpu.matmul %97, %98, %cst_41 {dimension_numbers = #tpu.dot_dimension_numbers<[1], [0], [0], [1], [0, 0, 1, 1], [], []>} : vector<16x8xbf16>, vector<8x32xbf16>, vector<16x32xf32> -> vector<16x32xf32>
    %100 = vector.extract_strided_slice %63 {offsets = [0, 0, 8], sizes = [2, 8, 8], strides = [1, 1, 1]} : vector<2x8x32xf32> to vector<2x8x8xf32>
    %101 = arith.truncf %100 : vector<2x8x8xf32> to vector<2x8x8xbf16>
    %102 = vector.extract_strided_slice %64 {offsets = [0, 0, 8], sizes = [2, 8, 8], strides = [1, 1, 1]} : vector<2x8x32xf32> to vector<2x8x8xf32>
    %103 = arith.truncf %102 : vector<2x8x8xf32> to vector<2x8x8xbf16>
    %104 = vector.extract_strided_slice %65 {offsets = [0, 0, 8], sizes = [2, 8, 8], strides = [1, 1, 1]} : vector<2x8x32xf32> to vector<2x8x8xf32>
    %105 = arith.truncf %104 : vector<2x8x8xf32> to vector<2x8x8xbf16>
    "tpu.trace_start"() <{level = 10 : i32, message = "bqd,bkd->bqk"}> : () -> ()
    %cst_42 = arith.constant dense<0.000000e+00> : vector<2x8x8xf32>
    %106 = tpu.matmul %101, %103, %cst_42 {dimension_numbers = #tpu.dot_dimension_numbers<[2], [2], [1], [1], [0, 0, 0, 1, 1, 1], [0], [0]>} : vector<2x8x8xbf16>, vector<2x8x8xbf16>, vector<2x8x8xf32> -> vector<2x8x8xf32>
    "tpu.trace_stop"() : () -> ()
    %cst_43 = arith.constant 0.353553385 : f32
    %107 = vector.broadcast %cst_43 : f32 to vector<2x8x8xf32>
    %108 = arith.mulf %106, %107 : vector<2x8x8xf32>
    %109 = vector.broadcast %70 : vector<2x1x8xf32> to vector<2x8x8xf32>
    %110 = arith.addf %108, %109 : vector<2x8x8xf32>
    %cst_44 = arith.constant dense<0xFF800000> : vector<2x8xf32>
    %111 = vector.multi_reduction <maximumf>, %110, %cst_44 [2] : vector<2x8x8xf32> to vector<2x8xf32>
    %112 = vector.shape_cast %111 : vector<2x8xf32> to vector<2x8x1xf32>
    %113 = vector.broadcast %112 : vector<2x8x1xf32> to vector<2x8x8xf32>
    %114 = arith.subf %110, %113 : vector<2x8x8xf32>
    %115 = math.exp %114 : vector<2x8x8xf32>
    %cst_45 = arith.constant dense<0.000000e+00> : vector<2x8xf32>
    %116 = vector.multi_reduction <add>, %115, %cst_45 [2] : vector<2x8x8xf32> to vector<2x8xf32>
    %117 = vector.shape_cast %116 : vector<2x8xf32> to vector<2x8x1xf32>
    %118 = tpu.reciprocal %117 {approx = true} : vector<2x8x1xf32> -> vector<2x8x1xf32>
    %119 = vector.broadcast %118 : vector<2x8x1xf32> to vector<2x8x8xf32>
    %120 = arith.mulf %115, %119 : vector<2x8x8xf32>
    %121 = arith.truncf %120 : vector<2x8x8xf32> to vector<2x8x8xbf16>
    "tpu.trace_start"() <{level = 10 : i32, message = "bqk,bkd->bqd"}> : () -> ()
    %cst_46 = arith.constant dense<0.000000e+00> : vector<2x8x8xf32>
    %122 = tpu.matmul %121, %105, %cst_46 {dimension_numbers = #tpu.dot_dimension_numbers<[2], [1], [1], [2], [0, 0, 0, 1, 1, 2], [0], [0]>} : vector<2x8x8xbf16>, vector<2x8x8xbf16>, vector<2x8x8xf32> -> vector<2x8x8xf32>
    "tpu.trace_stop"() : () -> ()
    %123 = vector.shape_cast %122 : vector<2x8x8xf32> to vector<16x8xf32>
    %124 = arith.truncf %123 : vector<16x8xf32> to vector<16x8xbf16>
    %125 = vector.extract_strided_slice %72 {offsets = [8, 0], sizes = [8, 32], strides = [1, 1]} : vector<32x32xbf16> to vector<8x32xbf16>
    %cst_47 = arith.constant dense<0.000000e+00> : vector<16x32xf32>
    %126 = tpu.matmul %124, %125, %cst_47 {dimension_numbers = #tpu.dot_dimension_numbers<[1], [0], [0], [1], [0, 0, 1, 1], [], []>} : vector<16x8xbf16>, vector<8x32xbf16>, vector<16x32xf32> -> vector<16x32xf32>
    %127 = arith.addf %99, %126 : vector<16x32xf32>
    %128 = vector.extract_strided_slice %63 {offsets = [0, 0, 16], sizes = [2, 8, 8], strides = [1, 1, 1]} : vector<2x8x32xf32> to vector<2x8x8xf32>
    %129 = arith.truncf %128 : vector<2x8x8xf32> to vector<2x8x8xbf16>
    %130 = vector.extract_strided_slice %64 {offsets = [0, 0, 16], sizes = [2, 8, 8], strides = [1, 1, 1]} : vector<2x8x32xf32> to vector<2x8x8xf32>
    %131 = arith.truncf %130 : vector<2x8x8xf32> to vector<2x8x8xbf16>
    %132 = vector.extract_strided_slice %65 {offsets = [0, 0, 16], sizes = [2, 8, 8], strides = [1, 1, 1]} : vector<2x8x32xf32> to vector<2x8x8xf32>
    %133 = arith.truncf %132 : vector<2x8x8xf32> to vector<2x8x8xbf16>
    "tpu.trace_start"() <{level = 10 : i32, message = "bqd,bkd->bqk"}> : () -> ()
    %cst_48 = arith.constant dense<0.000000e+00> : vector<2x8x8xf32>
    %134 = tpu.matmul %129, %131, %cst_48 {dimension_numbers = #tpu.dot_dimension_numbers<[2], [2], [1], [1], [0, 0, 0, 1, 1, 1], [0], [0]>} : vector<2x8x8xbf16>, vector<2x8x8xbf16>, vector<2x8x8xf32> -> vector<2x8x8xf32>
    "tpu.trace_stop"() : () -> ()
    %cst_49 = arith.constant 0.353553385 : f32
    %135 = vector.broadcast %cst_49 : f32 to vector<2x8x8xf32>
    %136 = arith.mulf %134, %135 : vector<2x8x8xf32>
    %137 = vector.broadcast %70 : vector<2x1x8xf32> to vector<2x8x8xf32>
    %138 = arith.addf %136, %137 : vector<2x8x8xf32>
    %cst_50 = arith.constant dense<0xFF800000> : vector<2x8xf32>
    %139 = vector.multi_reduction <maximumf>, %138, %cst_50 [2] : vector<2x8x8xf32> to vector<2x8xf32>
    %140 = vector.shape_cast %139 : vector<2x8xf32> to vector<2x8x1xf32>
    %141 = vector.broadcast %140 : vector<2x8x1xf32> to vector<2x8x8xf32>
    %142 = arith.subf %138, %141 : vector<2x8x8xf32>
    %143 = math.exp %142 : vector<2x8x8xf32>
    %cst_51 = arith.constant dense<0.000000e+00> : vector<2x8xf32>
    %144 = vector.multi_reduction <add>, %143, %cst_51 [2] : vector<2x8x8xf32> to vector<2x8xf32>
    %145 = vector.shape_cast %144 : vector<2x8xf32> to vector<2x8x1xf32>
    %146 = tpu.reciprocal %145 {approx = true} : vector<2x8x1xf32> -> vector<2x8x1xf32>
    %147 = vector.broadcast %146 : vector<2x8x1xf32> to vector<2x8x8xf32>
    %148 = arith.mulf %143, %147 : vector<2x8x8xf32>
    %149 = arith.truncf %148 : vector<2x8x8xf32> to vector<2x8x8xbf16>
    "tpu.trace_start"() <{level = 10 : i32, message = "bqk,bkd->bqd"}> : () -> ()
    %cst_52 = arith.constant dense<0.000000e+00> : vector<2x8x8xf32>
    %150 = tpu.matmul %149, %133, %cst_52 {dimension_numbers = #tpu.dot_dimension_numbers<[2], [1], [1], [2], [0, 0, 0, 1, 1, 2], [0], [0]>} : vector<2x8x8xbf16>, vector<2x8x8xbf16>, vector<2x8x8xf32> -> vector<2x8x8xf32>
    "tpu.trace_stop"() : () -> ()
    %151 = vector.shape_cast %150 : vector<2x8x8xf32> to vector<16x8xf32>
    %152 = arith.truncf %151 : vector<16x8xf32> to vector<16x8xbf16>
    %153 = vector.extract_strided_slice %72 {offsets = [16, 0], sizes = [8, 32], strides = [1, 1]} : vector<32x32xbf16> to vector<8x32xbf16>
    %cst_53 = arith.constant dense<0.000000e+00> : vector<16x32xf32>
    %154 = tpu.matmul %152, %153, %cst_53 {dimension_numbers = #tpu.dot_dimension_numbers<[1], [0], [0], [1], [0, 0, 1, 1], [], []>} : vector<16x8xbf16>, vector<8x32xbf16>, vector<16x32xf32> -> vector<16x32xf32>
    %155 = arith.addf %127, %154 : vector<16x32xf32>
    %156 = vector.extract_strided_slice %63 {offsets = [0, 0, 24], sizes = [2, 8, 8], strides = [1, 1, 1]} : vector<2x8x32xf32> to vector<2x8x8xf32>
    %157 = arith.truncf %156 : vector<2x8x8xf32> to vector<2x8x8xbf16>
    %158 = vector.extract_strided_slice %64 {offsets = [0, 0, 24], sizes = [2, 8, 8], strides = [1, 1, 1]} : vector<2x8x32xf32> to vector<2x8x8xf32>
    %159 = arith.truncf %158 : vector<2x8x8xf32> to vector<2x8x8xbf16>
    %160 = vector.extract_strided_slice %65 {offsets = [0, 0, 24], sizes = [2, 8, 8], strides = [1, 1, 1]} : vector<2x8x32xf32> to vector<2x8x8xf32>
    %161 = arith.truncf %160 : vector<2x8x8xf32> to vector<2x8x8xbf16>
    "tpu.trace_start"() <{level = 10 : i32, message = "bqd,bkd->bqk"}> : () -> ()
    %cst_54 = arith.constant dense<0.000000e+00> : vector<2x8x8xf32>
    %162 = tpu.matmul %157, %159, %cst_54 {dimension_numbers = #tpu.dot_dimension_numbers<[2], [2], [1], [1], [0, 0, 0, 1, 1, 1], [0], [0]>} : vector<2x8x8xbf16>, vector<2x8x8xbf16>, vector<2x8x8xf32> -> vector<2x8x8xf32>
    "tpu.trace_stop"() : () -> ()
    %cst_55 = arith.constant 0.353553385 : f32
    %163 = vector.broadcast %cst_55 : f32 to vector<2x8x8xf32>
    %164 = arith.mulf %162, %163 : vector<2x8x8xf32>
    %165 = vector.broadcast %70 : vector<2x1x8xf32> to vector<2x8x8xf32>
    %166 = arith.addf %164, %165 : vector<2x8x8xf32>
    %cst_56 = arith.constant dense<0xFF800000> : vector<2x8xf32>
    %167 = vector.multi_reduction <maximumf>, %166, %cst_56 [2] : vector<2x8x8xf32> to vector<2x8xf32>
    %168 = vector.shape_cast %167 : vector<2x8xf32> to vector<2x8x1xf32>
    %169 = vector.broadcast %168 : vector<2x8x1xf32> to vector<2x8x8xf32>
    %170 = arith.subf %166, %169 : vector<2x8x8xf32>
    %171 = math.exp %170 : vector<2x8x8xf32>
    %cst_57 = arith.constant dense<0.000000e+00> : vector<2x8xf32>
    %172 = vector.multi_reduction <add>, %171, %cst_57 [2] : vector<2x8x8xf32> to vector<2x8xf32>
    %173 = vector.shape_cast %172 : vector<2x8xf32> to vector<2x8x1xf32>
    %174 = tpu.reciprocal %173 {approx = true} : vector<2x8x1xf32> -> vector<2x8x1xf32>
    %175 = vector.broadcast %174 : vector<2x8x1xf32> to vector<2x8x8xf32>
    %176 = arith.mulf %171, %175 : vector<2x8x8xf32>
    %177 = arith.truncf %176 : vector<2x8x8xf32> to vector<2x8x8xbf16>
    "tpu.trace_start"() <{level = 10 : i32, message = "bqk,bkd->bqd"}> : () -> ()
    %cst_58 = arith.constant dense<0.000000e+00> : vector<2x8x8xf32>
    %178 = tpu.matmul %177, %161, %cst_58 {dimension_numbers = #tpu.dot_dimension_numbers<[2], [1], [1], [2], [0, 0, 0, 1, 1, 2], [0], [0]>} : vector<2x8x8xbf16>, vector<2x8x8xbf16>, vector<2x8x8xf32> -> vector<2x8x8xf32>
    "tpu.trace_stop"() : () -> ()
    %179 = vector.shape_cast %178 : vector<2x8x8xf32> to vector<16x8xf32>
    %180 = arith.truncf %179 : vector<16x8xf32> to vector<16x8xbf16>
    %181 = vector.extract_strided_slice %72 {offsets = [24, 0], sizes = [8, 32], strides = [1, 1]} : vector<32x32xbf16> to vector<8x32xbf16>
    %cst_59 = arith.constant dense<0.000000e+00> : vector<16x32xf32>
    %182 = tpu.matmul %180, %181, %cst_59 {dimension_numbers = #tpu.dot_dimension_numbers<[1], [0], [0], [1], [0, 0, 1, 1], [], []>} : vector<16x8xbf16>, vector<8x32xbf16>, vector<16x32xf32> -> vector<16x32xf32>
    %183 = arith.addf %155, %182 : vector<16x32xf32>
    %184 = vector.shape_cast %183 : vector<16x32xf32> to vector<2x8x32xf32>
    %c0_60 = arith.constant 0 : index
    %c0_61 = arith.constant 0 : index
    %c0_62 = arith.constant 0 : index
    %185 = vector.load %arg10[%c0_60, %c0_61, %c0_62] : memref<1x1x32xf32, #tpu.memory_space<vmem>>, vector<1x1x32xf32>
    %186 = vector.shape_cast %185 : vector<1x1x32xf32> to vector<32xf32>
    %187 = vector.shape_cast %186 : vector<32xf32> to vector<1x1x32xf32>
    %188 = vector.broadcast %187 : vector<1x1x32xf32> to vector<2x8x32xf32>
    %189 = arith.addf %184, %188 : vector<2x8x32xf32>
    %190 = arith.addf %189, %51 : vector<2x8x32xf32>
    %c0_63 = arith.constant 0 : index
    %c0_64 = arith.constant 0 : index
    %c0_65 = arith.constant 0 : index
    %191 = vector.load %arg11[%c0_63, %c0_64, %c0_65] : memref<1x1x32xf32, #tpu.memory_space<vmem>>, vector<1x1x32xf32>
    %192 = vector.shape_cast %191 : vector<1x1x32xf32> to vector<32xf32>
    %c0_66 = arith.constant 0 : index
    %c0_67 = arith.constant 0 : index
    %c0_68 = arith.constant 0 : index
    %193 = vector.load %arg12[%c0_66, %c0_67, %c0_68] : memref<1x1x32xf32, #tpu.memory_space<vmem>>, vector<1x1x32xf32>
    %194 = vector.shape_cast %193 : vector<1x1x32xf32> to vector<32xf32>
    %cst_69 = arith.constant dense<0.000000e+00> : vector<2x8xf32>
    %195 = vector.multi_reduction <add>, %190, %cst_69 [2] : vector<2x8x32xf32> to vector<2x8xf32>
    %196 = vector.shape_cast %195 : vector<2x8xf32> to vector<2x8x1xf32>
    %cst_70 = arith.constant 3.200000e+01 : f32
    %197 = vector.broadcast %cst_70 : f32 to vector<2x8x1xf32>
    %198 = arith.divf %196, %197 : vector<2x8x1xf32>
    %199 = vector.broadcast %198 : vector<2x8x1xf32> to vector<2x8x32xf32>
    %200 = arith.subf %190, %199 : vector<2x8x32xf32>
    %201 = arith.mulf %200, %200 : vector<2x8x32xf32>
    %cst_71 = arith.constant dense<0.000000e+00> : vector<2x8xf32>
    %202 = vector.multi_reduction <add>, %201, %cst_71 [2] : vector<2x8x32xf32> to vector<2x8xf32>
    %203 = vector.shape_cast %202 : vector<2x8xf32> to vector<2x8x1xf32>
    %cst_72 = arith.constant 3.200000e+01 : f32
    %204 = vector.broadcast %cst_72 : f32 to vector<2x8x1xf32>
    %205 = arith.divf %203, %204 : vector<2x8x1xf32>
    %206 = vector.broadcast %198 : vector<2x8x1xf32> to vector<2x8x32xf32>
    %207 = arith.subf %190, %206 : vector<2x8x32xf32>
    %cst_73 = arith.constant 9.99999996E-13 : f32
    %208 = vector.broadcast %cst_73 : f32 to vector<2x8x1xf32>
    %209 = arith.addf %205, %208 : vector<2x8x1xf32>
    %210 = math.rsqrt %209 : vector<2x8x1xf32>
    %211 = vector.broadcast %210 : vector<2x8x1xf32> to vector<2x8x32xf32>
    %212 = arith.mulf %207, %211 : vector<2x8x32xf32>
    %213 = vector.shape_cast %192 : vector<32xf32> to vector<1x1x32xf32>
    %214 = vector.broadcast %213 : vector<1x1x32xf32> to vector<2x8x32xf32>
    %215 = arith.mulf %212, %214 : vector<2x8x32xf32>
    %216 = vector.shape_cast %194 : vector<32xf32> to vector<1x1x32xf32>
    %217 = vector.broadcast %216 : vector<1x1x32xf32> to vector<2x8x32xf32>
    %218 = arith.addf %215, %217 : vector<2x8x32xf32>
    %219 = vector.shape_cast %0 : vector<2x8xf32> to vector<2x8x1xf32>
    %220 = vector.broadcast %219 : vector<2x8x1xf32> to vector<2x8x32xf32>
    %221 = arith.mulf %218, %220 : vector<2x8x32xf32>
    %cst_74 = arith.constant dense<0.000000e+00> : vector<2x32xf32>
    %222 = vector.multi_reduction <add>, %221, %cst_74 [1] : vector<2x8x32xf32> to vector<2x32xf32>
    %cst_75 = arith.constant dense<0.000000e+00> : vector<2xf32>
    %223 = vector.multi_reduction <add>, %0, %cst_75 [1] : vector<2x8xf32> to vector<2xf32>
    %224 = vector.shape_cast %223 : vector<2xf32> to vector<2x1xf32>
    %cst_76 = arith.constant 9.99999971E-10 : f32
    %225 = vector.broadcast %cst_76 : f32 to vector<2x1xf32>
    %226 = arith.maximumf %224, %225 : vector<2x1xf32>
    %227 = tpu.reciprocal %226 {approx = true} : vector<2x1xf32> -> vector<2x1xf32>
    %228 = vector.broadcast %227 : vector<2x1xf32> to vector<2x32xf32>
    %229 = arith.mulf %222, %228 : vector<2x32xf32>
    %c0_77 = arith.constant 0 : index
    %c0_78 = arith.constant 0 : index
    %c0_79 = arith.constant 0 : index
    %230 = vector.load %arg13[%c0_77, %c0_78, %c0_79] : memref<1x1x32xf32, #tpu.memory_space<vmem>>, vector<1x1x32xf32>
    %231 = vector.shape_cast %230 : vector<1x1x32xf32> to vector<32xf32>
    %c0_80 = arith.constant 0 : index
    %c0_81 = arith.constant 0 : index
    %c0_82 = arith.constant 0 : index
    %232 = vector.load %arg14[%c0_80, %c0_81, %c0_82] : memref<1x1x32xf32, #tpu.memory_space<vmem>>, vector<1x1x32xf32>
    %233 = vector.shape_cast %232 : vector<1x1x32xf32> to vector<32xf32>
    %cst_83 = arith.constant dense<0.000000e+00> : vector<2xf32>
    %234 = vector.multi_reduction <add>, %229, %cst_83 [1] : vector<2x32xf32> to vector<2xf32>
    %235 = vector.shape_cast %234 : vector<2xf32> to vector<2x1xf32>
    %cst_84 = arith.constant 3.200000e+01 : f32
    %236 = vector.broadcast %cst_84 : f32 to vector<2x1xf32>
    %237 = arith.divf %235, %236 : vector<2x1xf32>
    %238 = vector.broadcast %237 : vector<2x1xf32> to vector<2x32xf32>
    %239 = arith.subf %229, %238 : vector<2x32xf32>
    %240 = arith.mulf %239, %239 : vector<2x32xf32>
    %cst_85 = arith.constant dense<0.000000e+00> : vector<2xf32>
    %241 = vector.multi_reduction <add>, %240, %cst_85 [1] : vector<2x32xf32> to vector<2xf32>
    %242 = vector.shape_cast %241 : vector<2xf32> to vector<2x1xf32>
    %cst_86 = arith.constant 3.200000e+01 : f32
    %243 = vector.broadcast %cst_86 : f32 to vector<2x1xf32>
    %244 = arith.divf %242, %243 : vector<2x1xf32>
    %245 = vector.broadcast %237 : vector<2x1xf32> to vector<2x32xf32>
    %246 = arith.subf %229, %245 : vector<2x32xf32>
    %cst_87 = arith.constant 1.000000e-07 : f32
    %247 = vector.broadcast %cst_87 : f32 to vector<2x1xf32>
    %248 = arith.addf %244, %247 : vector<2x1xf32>
    %249 = math.rsqrt %248 : vector<2x1xf32>
    %250 = vector.broadcast %249 : vector<2x1xf32> to vector<2x32xf32>
    %251 = arith.mulf %246, %250 : vector<2x32xf32>
    %252 = vector.shape_cast %231 : vector<32xf32> to vector<1x32xf32>
    %253 = vector.broadcast %252 : vector<1x32xf32> to vector<2x32xf32>
    %254 = arith.mulf %251, %253 : vector<2x32xf32>
    %255 = vector.shape_cast %233 : vector<32xf32> to vector<1x32xf32>
    %256 = vector.broadcast %255 : vector<1x32xf32> to vector<2x32xf32>
    %257 = arith.addf %254, %256 : vector<2x32xf32>
    %c0_88 = arith.constant 0 : index
    %c0_89 = arith.constant 0 : index
    %c0_90 = arith.constant 0 : index
    %258 = vector.load %arg15[%c0_88, %c0_89, %c0_90] : memref<1x2x32xf32, #tpu.memory_space<vmem>>, vector<1x2x32xf32>
    %259 = vector.shape_cast %258 : vector<1x2x32xf32> to vector<2x32xf32>
    %260 = vector.shape_cast %257 : vector<2x32xf32> to vector<1x2x32xf32>
    tpu.vector_store %arg15[%c0_88, %c0_89, %c0_90], %260 {strides = array<i32>} : memref<1x2x32xf32, #tpu.memory_space<vmem>>, vector<1x2x32xf32>,
    return
  }
  func.func @transform_0(%arg0: i32, %arg1: i32) -> (i32, i32) {
    %c0_i32 = arith.constant 0 : i32
    %c0_i32_0 = arith.constant 0 : i32
    %c0_i32_1 = arith.constant 0 : i32
    return %c0_i32, %c0_i32_0 : i32, i32
  }
  func.func @transform_1(%arg0: i32, %arg1: i32) -> (i32, i32, i32, i32) {
    %c0_i32 = arith.constant 0 : i32
    %c0_i32_0 = arith.constant 0 : i32
    %c0_i32_1 = arith.constant 0 : i32
    %c0_i32_2 = arith.constant 0 : i32
    return %c0_i32, %arg0, %c0_i32_0, %c0_i32_1 : i32, i32, i32, i32
  }
  func.func @transform_2(%arg0: i32, %arg1: i32) -> (i32, i32) {
    %c0_i32 = arith.constant 0 : i32
    %c0_i32_0 = arith.constant 0 : i32
    return %arg0, %c0_i32 : i32, i32
  }
  func.func @transform_3(%arg0: i32, %arg1: i32) -> (i32, i32, i32) {
    %c0_i32 = arith.constant 0 : i32
    %c0_i32_0 = arith.constant 0 : i32
    %c0_i32_1 = arith.constant 0 : i32
    return %arg1, %c0_i32, %c0_i32_0 : i32, i32, i32
  }
  func.func @transform_4(%arg0: i32, %arg1: i32) -> (i32, i32, i32) {
    %c0_i32 = arith.constant 0 : i32
    %c0_i32_0 = arith.constant 0 : i32
    %c0_i32_1 = arith.constant 0 : i32
    return %arg1, %c0_i32, %c0_i32_0 : i32, i32, i32
  }
  func.func @transform_5(%arg0: i32, %arg1: i32) -> (i32, i32, i32) {
    %c0_i32 = arith.constant 0 : i32
    %c0_i32_0 = arith.constant 0 : i32
    %c0_i32_1 = arith.constant 0 : i32
    return %arg1, %c0_i32, %c0_i32_0 : i32, i32, i32
  }
  func.func @transform_6(%arg0: i32, %arg1: i32) -> (i32, i32, i32) {
    %c0_i32 = arith.constant 0 : i32
    %c0_i32_0 = arith.constant 0 : i32
    %c0_i32_1 = arith.constant 0 : i32
    return %arg1, %c0_i32, %c0_i32_0 : i32, i32, i32
  }
  func.func @transform_7(%arg0: i32, %arg1: i32) -> (i32, i32, i32) {
    %c0_i32 = arith.constant 0 : i32
    %c0_i32_0 = arith.constant 0 : i32
    %c0_i32_1 = arith.constant 0 : i32
    return %arg1, %c0_i32, %c0_i32_0 : i32, i32, i32
  }
  func.func @transform_8(%arg0: i32, %arg1: i32) -> (i32, i32, i32) {
    %c0_i32 = arith.constant 0 : i32
    %c0_i32_0 = arith.constant 0 : i32
    %c0_i32_1 = arith.constant 0 : i32
    return %arg1, %c0_i32, %c0_i32_0 : i32, i32, i32
  }
  func.func @transform_9(%arg0: i32, %arg1: i32) -> (i32, i32, i32) {
    %c0_i32 = arith.constant 0 : i32
    %c0_i32_0 = arith.constant 0 : i32
    %c0_i32_1 = arith.constant 0 : i32
    return %arg1, %c0_i32, %c0_i32_0 : i32, i32, i32
  }
  func.func @transform_10(%arg0: i32, %arg1: i32) -> (i32, i32, i32) {
    %c0_i32 = arith.constant 0 : i32
    %c0_i32_0 = arith.constant 0 : i32
    %c0_i32_1 = arith.constant 0 : i32
    return %arg1, %c0_i32, %c0_i32_0 : i32, i32, i32
  }
  func.func @transform_11(%arg0: i32, %arg1: i32) -> (i32, i32, i32) {
    %c0_i32 = arith.constant 0 : i32
    %c0_i32_0 = arith.constant 0 : i32
    %c0_i32_1 = arith.constant 0 : i32
    return %arg1, %c0_i32, %c0_i32_0 : i32, i32, i32
  }
  func.func @transform_12(%arg0: i32, %arg1: i32) -> (i32, i32, i32) {
    %c0_i32 = arith.constant 0 : i32
    %c0_i32_0 = arith.constant 0 : i32
    %c0_i32_1 = arith.constant 0 : i32
    return %arg1, %c0_i32, %c0_i32_0 : i32, i32, i32
  }
  func.func @transform_13(%arg0: i32, %arg1: i32) -> (i32, i32, i32) {
    %c0_i32 = arith.constant 0 : i32
    %c0_i32_0 = arith.constant 0 : i32
    return %arg1, %arg0, %c0_i32 : i32, i32, i32
  }
}

</mosaic_0001>

<bundles_post_ra>
// kernel: tpu_custom_call.1
= control target key start
LH: loop header
LB: loop body
LE: loop exit
PB: predicated region body
PF: predicated region fallthrough
CT: control target
= control target key end

     0   :  { %s3766_s0 = inlined_call_operand.vmem [shape: f32[6,3], index: 0, kind: input, shape index: {}]   ;;  %s3767_s1 = inlined_call_operand.hbm [shape: bf16[3,2,8,32], index: 1, kind: input, shape index: {}]   ;;  %s3768_s2 = inlined_call_operand.hbm [shape: f32[2,8], index: 2, kind: input, shape index: {}]   ;;  %s3769_s3 = inlined_call_operand.vmem [shape: f32[6,1,32], index: 3, kind: input, shape index: {}]   ;;  %s3770_s4 = inlined_call_operand.vmem [shape: f32[6,1,32], index: 4, kind: input, shape index: {}]   ;;  %s3771_s5 = inlined_call_operand.hbm [shape: bf16[6,32,96], index: 5, kind: input, shape index: {}]   ;;  %s3772_s6 = inlined_call_operand.vmem [shape: f32[6,1,96], index: 6, kind: input, shape index: {}]   ;;  %s3773_s7 = inlined_call_operand.hbm [shape: bf16[6,32,32], index: 7, kind: input, shape index: {}]   ;;  %s3774_s8 = inlined_call_operand.vmem [shape: f32[6,1,32], index: 8, kind: input, shape index: {}]   ;;  %s3775_s9 = inlined_call_operand.hbm [shape: f32[6,1,32], index: 9, kind: input, shape index: {}]   ;;  %s3776_s10 = inlined_call_operand.vmem [shape: f32[6,1,32], index: 10, kind: input, shape index: {}]   ;;  %s3777_s11 = inlined_call_operand.hbm [shape: f32[6,1,32], index: 11, kind: input, shape index: {}]   ;;  %s3778_s12 = inlined_call_operand.hbm [shape: f32[6,1,32], index: 12, kind: input, shape index: {}]   ;;  %s3779_s13 = inlined_call_operand.hbm [shape: f32[6,2,32], index: 13, kind: output, shape index: {}]  }
   0x1   :  { %3798 = sst [smem:[#allocation29_spill]] %s3767_s1 }
   0x2   :  { %3799 = sst [smem:[#allocation30_spill]] %s3769_s3 }
   0x3   :  { %3800 = sst [smem:[#allocation31_spill]] %s3770_s4 }
   0x4   :  { %3801 = sst [smem:[#allocation32_spill]] %s3771_s5 }
   0x5   :  { %3802 = sst [smem:[#allocation33_spill]] %s3772_s6 }
   0x6   :  { %3803 = sst [smem:[#allocation34_spill]] %s3774_s8 }
   0x7   :  { %3804 = sst [smem:[#allocation35_spill]] %s3776_s10 }
   0x8   :  { %3805 = sst [smem:[#allocation36_spill]] %s3779_s13 }
   0x9   :  { %18 = vsyncpa [#allocation5], 0 }
   0xa   :  { %19 = vsyncpa [#allocation3], 0 }
   0xb   :  { %20 = vsyncpa [#allocation8], 0 }
   0xc   :  { %21 = vsyncpa [#allocation4], 0 }
   0xd   :  { %23 = vsyncpa [#allocation4 + $0x1], 0  ;;  %s3227_s25 = smov 0   ;;  %s3229_s26 = smov 0  }
   0xe   :  { %s3231_s27 = smov 0   ;;  %s3233_s28 = smov 0  }
   0xf   :  { %s3235_s29 = smov 0   ;;  %s3237_s30 = smov 0  }
  0x10 LB: > { %3806 = sst [smem:[#allocation20_spill]] %s3110_s25  ;;  %s3258_s14 = sadd.s32 4294967295, %s3130_s30   ;;  %s3130_s30 = sphi %s3237_s30, %s29_s30   ;;  %s3126_s29 = sphi %s3235_s29, %s3857_s29   ;;  %s3122_s28 = sphi %s3233_s28, %s3856_s28   ;;  %s3118_s27 = sphi %s3231_s27, %s3855_s27   ;;  %s3114_s26 = sphi %s3229_s26, %s3854_s26   ;;  %s3110_s25 = sphi %s3227_s25, %s3851_s25  }
  0x11   : > { %3807 = sst [smem:[#allocation21_spill]] %s3114_s26  ;;  %s2413_s15 = sadd.s32 4294967294, %s3130_s30  }
  0x12   : > { %3808 = sst [smem:[#allocation22_spill]] %s3122_s28  ;;  %p180_p0 = scmp.ne.s32.totalorder %s3118_s27, %s3114_s26 }
  0x13   : > { %3809 = sst [smem:[#allocation23_spill]] %s3258_s14  ;;  %p181_p1 = scmp.eq.s32.totalorder %s3130_s30, 0 }
  0x14   : > { %p186_p2 = scmp.ne.s32.totalorder %s3114_s26, %s3110_s25  ;;  %p3781_p3 = scmp.eq.s32.totalorder %s3258_s14, 0 }
  0x15   : > { %p394_p4 = scmp.eq.s32.totalorder %s3258_s14, 5  ;;  %p3269_p5 = por %p181_p1, %p180_p0 }
  0x16   : > { %p400_p6 = scmp.eq.s32.totalorder %s2413_s15, 5  ;;  %p3275_p7 = por %p3781_p3, %p186_p2 }
  0x17   : > { %p3279_p8 = por %p394_p4, %p180_p0  ;;  %p2414_p10 = scmp.ge.s32.totalorder %s3130_s30, 1 }
  0x18   : > { %s3811_s18 = scalar_select %p3275_p7, 1, 0 }
  0x19   : > { %s3813_s19 = scalar_select %p3279_p8, 1, 0 }
  0x1a   : > { %3812 = sst [smem:[#allocation24_spill]] %s3811_s18  ;;  %p3283_p9 = por %p400_p6, %p186_p2 }
  0x1b   : > { %3814 = sst [smem:[#allocation25_spill]] %s3813_s19  ;;  %p407_p11 = scmp.lt.s32.totalorder %s3130_s30, 7 }
  0x1c   : > { %s3815_s20 = scalar_select %p3283_p9, 1, 0 }
  0x1d   : > { %p3289_p12 = pnand %p2414_p10, %p407_p11  ;;  %s3132_s22 = smov [#allocation6]  }
  0x1e   : > { %3816 = sst [smem:[#allocation26_spill]] %s3815_s20  ;;  %s433_s23 = sshll.u32 %s3132_s22, 4  ;;  %s434_s23 = int_to_ptr.vmem [resolvable:$true] %s433_s23 }
  0x1f   : > { %s3817_s21 = scalar_select %p3289_p12, 1, 0 }
  0x20   : > { %p2680_p13 = pneg %p3289_p12  ;;  %p2713_p0 = scmp.lt.s32.totalorder %s3130_s30, 6 }
  0x21   : > { %s38_s16 = sadd.s32 1, %s3126_s29  ;;  %s2842_s22 = scalar_lea.vmem %s434_s23, 384 }
  0x22   : > { %p3298_p1 = pnand %p2680_p13, %p3781_p3  ;;  %p3304_p2 = pnand %p2713_p0, %p3269_p5 }
  0x23   : > { %p3309_p4 = scmp.ge.s32.totalorder %s38_s16, 6  ;;  %p2843_p10 = scmp.ne.s32.totalorder %s434_s23, %s2842_s22 }
  0x24   : > { %p2833_p6 = pneg %p3298_p1  ;;  %p2850_p3 = scmp.lt.s32.totalorder %s434_s23, %s434_s23 }
  0x25   : > { %p2851_p9 = scmp.lt.s32.totalorder %s2842_s22, %s2842_s22 }
  0x26   : > { %p2845_p11 = pnand %p2843_p10, %p2833_p6 }
  0x27   : > { %p2852_p8 = por %p2851_p9, %p2850_p3 }
  0x28   : > { %p2846_p13 = pneg %p2845_p11 }
  0x2a   : > { %p2853_p5 = pnand %p2852_p8, %p2846_p13 }
  0x2c   : > { %2856 = shalt.err (!%p2853_p5)
}
  0x2d   : > { %s3793_s17 = smov 64   ;;  %s3134_s25 = smov 4  }
  0x2e   : > { %s3821_s1 = sld [smem:[#allocation29_spill]]  ;;  %s472_s19 = sand.u32 1, %s3130_s30  }
  0x2f   : > { %s3859_s16 = smov (%p3309_p4, %s38_s16), 0  ;;  %s3332_s10 = sand.u32 1, %s3118_s27  }
  0x30   : > { %3822 = sst [smem:[#allocation27_spill]] %s3859_s16  ;;  %s170_s8 = ssub.s32 %s3126_s29, %s3859_s16 }
  0x31   : > { %s2419_s6 = sshll.u32 %s3332_s10, 4  ;;  %p171_p3 = scmp.eq.s32.totalorder %s170_s8, 0 }
  0x32   : > { %s2471_s4 = sshll.u32 %s3126_s29, 8  ;;  %s476_s3 = scalar_lea.vmem [#allocation9], %s2419_s6 }
  0x33   : > { %s483_s28 = sshll.u32 %s476_s3, 4  ;;  %s3823_s18 = sadd.s32 1, %s3118_s27  ;;  %s484_s28 = int_to_ptr.vmem [resolvable:$true] %s483_s28 }
  0x34   : > { %2686 = dma.hbm_to_vmem [thread:$0]  (!%p3298_p1), %s3821_s1, 384, %s434_s23, [#allocation3], %s3793_s17, %s3793_s17, %s3134_s25  }
  0x35   : > { %s3341_s26 = scalar_select %p171_p3, %s3118_s27, %s3823_s18  }
  0x36   : > { %s3825_s5 = sld [smem:[#allocation32_spill]]  ;;  %s3346_s20 = scalar_lea.sflag [#allocation3], %s472_s19 }
  0x37   : > { %3824 = sst [smem:[#allocation28_spill]] %s3341_s26  ;;  %p3350_p8 = pneg %p3304_p2 }
  0x38   : > { %s2870_s8 = scalar_lea.vmem %s484_s28, 256  ;;  %s3135_s3 = smov [#allocation9]  }
  0x39   : > { %p2871_p9 = scmp.ne.s32.totalorder %s484_s28, %s2870_s8  ;;  %s2875_s18 = sshll.u32 %s3135_s3, 4  ;;  %s2876_s18 = int_to_ptr.vmem [resolvable:$false] %s2875_s18 }
  0x3a   : > { %s2877_s17 = scalar_lea.vmem %s2876_s18, 512  ;;  %p2878_p10 = scmp.lt.s32.totalorder %s484_s28, %s2876_s18 }
  0x3b   : > { %p2873_p0 = pnand %p2871_p9, %p3350_p8  ;;  %p2879_p11 = scmp.lt.s32.totalorder %s2877_s17, %s2870_s8 }
  0x3c   : > { %s482_s23 = scalar_lea.hbm %s3825_s5, %s2471_s4 }
  0x3d   : > { %p2874_p4 = pneg %p2873_p0  ;;  %p2880_p13 = por %p2879_p11, %p2878_p10 }
  0x3f   : > { %p2881_p5 = pnand %p2880_p13, %p2874_p4 }
  0x41   : > { %2884 = shalt.err (!%p2881_p5)
}
  0x42   : > { %s3827_s14 = smov 64   ;;  %s509_s3 = scalar_lea.hbm %s3773_s7, %s2471_s4 }
  0x43   : > { %2693 = dma.hbm_to_vmem [thread:$0]  (!%p3304_p2), %s482_s23, 256, %s484_s28, %s3346_s20, %s3827_s14, %s3827_s14, %s3134_s25  }
  0x44   : > { %s503_s1 = scalar_lea.vmem [#allocation10], %s2419_s6  ;;  %s3366_s17 = sshll.u32 %s3126_s29, 4 }
  0x45   : > { %s510_s5 = sshll.u32 %s503_s1, 4  ;;  %s3136_s18 = smov [#allocation10]   ;;  %s511_s5 = int_to_ptr.vmem [resolvable:$true] %s510_s5 }
  0x46   : > { %s2898_s8 = scalar_lea.vmem %s511_s5, 256  ;;  %s2903_s16 = sshll.u32 %s3136_s18, 4  ;;  %s2904_s16 = int_to_ptr.vmem [resolvable:$false] %s2903_s16 }
  0x47   : > { %p2899_p3 = scmp.ne.s32.totalorder %s511_s5, %s2898_s8  ;;  %s2905_s26 = scalar_lea.vmem %s2904_s16, 512 }
  0x48   : > { %p2906_p4 = scmp.lt.s32.totalorder %s511_s5, %s2904_s16  ;;  %p2907_p10 = scmp.lt.s32.totalorder %s2905_s26, %s2898_s8 }
  0x49   : > { %p2901_p9 = pnand %p2899_p3, %p3350_p8 }
  0x4a   : > { %p2908_p11 = por %p2907_p10, %p2906_p4 }
  0x4b   : > { %p2902_p0 = pneg %p2901_p9 }
  0x4d   : > { %p2909_p13 = pnand %p2908_p11, %p2902_p0 }
  0x4f   : > { %2912 = shalt.err (!%p2909_p13)
}
  0x50   : > { %2696 = dma.hbm_to_vmem [thread:$0]  (!%p3304_p2), %s509_s3, 256, %s511_s5, %s3346_s20, %s3827_s14, %s3827_s14, %s3134_s25  }
  0x51   : > { %s534_s6 = scalar_lea.hbm %s3775_s9, %s3366_s17  ;;  %s529_s28 = scalar_lea.vmem [#allocation11], %s3332_s10 }
  0x52   : > { %s536_s16 = sshll.u32 %s529_s28, 4  ;;  %s3137_s23 = smov [#allocation11]   ;;  %s537_s16 = int_to_ptr.vmem [resolvable:$true] %s536_s16 }
  0x53   : > { %s2926_s26 = scalar_lea.vmem %s537_s16, 16  ;;  %s2931_s19 = sshll.u32 %s3137_s23, 4  ;;  %s2932_s19 = int_to_ptr.vmem [resolvable:$false] %s2931_s19 }
  0x54   : > { %p2927_p5 = scmp.ne.s32.totalorder %s537_s16, %s2926_s26  ;;  %s2933_s13 = scalar_lea.vmem %s2932_s19, 32 }
  0x55   : > { %p2934_p0 = scmp.lt.s32.totalorder %s537_s16, %s2932_s19  ;;  %p2935_p4 = scmp.lt.s32.totalorder %s2933_s13, %s2926_s26 }
  0x56   : > { %p2929_p3 = pnand %p2927_p5, %p3350_p8 }
  0x57   : > { %p2936_p10 = por %p2935_p4, %p2934_p0 }
  0x58   : > { %p2930_p9 = pneg %p2929_p3 }
  0x5a   : > { %p2937_p11 = pnand %p2936_p10, %p2930_p9 }
  0x5c   : > { %2940 = shalt.err (!%p2937_p11)
}
  0x5d   : > { %2699 = dma.hbm_to_vmem [thread:$0]  (!%p3304_p2), %s534_s6, 16, %s537_s16, %s3346_s20  }
  0x5e   : > { %s557_s14 = scalar_lea.hbm %s3777_s11, %s3366_s17  ;;  %s552_s3 = scalar_lea.vmem [#allocation12], %s3332_s10 }
  0x5f   : > { %s559_s8 = sshll.u32 %s552_s3, 4  ;;  %s3138_s1 = smov [#allocation12]   ;;  %s560_s8 = int_to_ptr.vmem [resolvable:$true] %s559_s8 }
  0x60   : > { %s2954_s18 = scalar_lea.vmem %s560_s8, 16  ;;  %s2959_s4 = sshll.u32 %s3138_s1, 4  ;;  %s2960_s4 = int_to_ptr.vmem [resolvable:$false] %s2959_s4 }
  0x61   : > { %p2955_p13 = scmp.ne.s32.totalorder %s560_s8, %s2954_s18  ;;  %s2961_s28 = scalar_lea.vmem %s2960_s4, 32 }
  0x62   : > { %p2962_p9 = scmp.lt.s32.totalorder %s560_s8, %s2960_s4  ;;  %p2963_p0 = scmp.lt.s32.totalorder %s2961_s28, %s2954_s18 }
  0x63   : > { %p2957_p5 = pnand %p2955_p13, %p3350_p8 }
  0x64   : > { %p2964_p4 = por %p2963_p0, %p2962_p9 }
  0x65   : > { %p2958_p3 = pneg %p2957_p5 }
  0x67   : > { %p2965_p10 = pnand %p2964_p4, %p2958_p3 }
  0x69   : > { %2968 = shalt.err (!%p2965_p10)
}
  0x6a   : > { %2702 = dma.hbm_to_vmem [thread:$0]  (!%p3304_p2), %s557_s14, 16, %s560_s8, %s3346_s20  }
  0x6b   : > { %s420_s26 = sshll.u32 %s3766_s0, 4  ;;  %s421_s26 = int_to_ptr.vmem [resolvable:$true] %s420_s26 }
  0x6c   : > { %s2969_s23 = scalar_lea.vmem %s421_s26, 128  ;;  %p2977_p7 = scmp.lt.s32.totalorder %s421_s26, %s421_s26 }
  0x6d   : > { %p2970_p11 = scmp.ne.s32.totalorder %s421_s26, %s2969_s23  ;;  %p2978_p9 = scmp.lt.s32.totalorder %s2969_s23, %s2969_s23 }
  0x6f   : > { %p2972_p13 = pnand %p2970_p11, %p2833_p6  ;;  %p2979_p3 = por %p2978_p9, %p2977_p7 }
  0x71   : > { %p2973_p5 = pneg %p2972_p13 }
  0x73   : > { %p2980_p0 = pnand %p2979_p3, %p2973_p5 }
  0x75   : > { %2983 = shalt.err (!%p2980_p0)
}
  0x76   : > { %s3139_s19 = smov [#allocation2]   ;;  %s3140_s13 = smov [#allocation7]  }
  0x77   : > { %2683 = dma.vmem_to_smem (!%p3298_p1), %s421_s26, 128, %s3139_s19, [#allocation5]  }
  0x78   : > { %s449_s5 = sshll.u32 %s3140_s13, 4  ;;  %s574_s3 = scalar_lea.hbm %s3778_s12, %s3366_s17  ;;  %s450_s5 = int_to_ptr.vmem [resolvable:$true] %s449_s5 }
  0x79   : > { %s569_s8 = scalar_lea.vmem [#allocation13], %s3332_s10  ;;  %s2995_s1 = scalar_lea.vmem %s450_s5, 32 }
  0x7a   : > { %s576_s18 = sshll.u32 %s569_s8, 4  ;;  %p2996_p7 = scmp.ne.s32.totalorder %s450_s5, %s2995_s1  ;;  %s577_s18 = int_to_ptr.vmem [resolvable:$true] %s576_s18 }
  0x7b   : > { %p3003_p11 = scmp.lt.s32.totalorder %s450_s5, %s450_s5  ;;  %p3004_p13 = scmp.lt.s32.totalorder %s2995_s1, %s2995_s1 }
  0x7c   : > { %p2998_p4 = pnand %p2996_p7, %p2833_p6 }
  0x7d   : > { %p3005_p5 = por %p3004_p13, %p3003_p11 }
  0x7e   : > { %p2999_p10 = pneg %p2998_p4 }
  0x80   : > { %p3006_p9 = pnand %p3005_p5, %p2999_p10 }
  0x82   : > { %3009 = shalt.err (!%p3006_p9)
}
  0x83   : > { %2689 = dma.hbm_to_vmem [thread:$0]  (!%p3298_p1), %s3768_s2, 32, %s450_s5, [#allocation8]  }
  0x84   : > { %s3023_s10 = scalar_lea.vmem %s577_s18, 16  ;;  %s3141_s6 = smov [#allocation13]  }
  0x85   : > { %p3024_p3 = scmp.ne.s32.totalorder %s577_s18, %s3023_s10  ;;  %s3028_s16 = sshll.u32 %s3141_s6, 4  ;;  %s3029_s16 = int_to_ptr.vmem [resolvable:$false] %s3028_s16 }
  0x86   : > { %s3030_s26 = scalar_lea.vmem %s3029_s16, 32  ;;  %p3031_p6 = scmp.lt.s32.totalorder %s577_s18, %s3029_s16 }
  0x87   : > { %p3026_p0 = pnand %p3024_p3, %p3350_p8  ;;  %p3032_p7 = scmp.lt.s32.totalorder %s3030_s26, %s3023_s10 }
  0x89   : > { %p3027_p12 = pneg %p3026_p0  ;;  %p3033_p4 = por %p3032_p7, %p3031_p6 }
  0x8b   : > { %p3034_p10 = pnand %p3033_p4, %p3027_p12 }
  0x8d   : > { %3037 = shalt.err (!%p3034_p10)
}
  0x8e   : > { %2705 = dma.hbm_to_vmem [thread:$0]  (!%p3304_p2), %s574_s3, 16, %s577_s18, %s3346_s20  }
  0x8f   : > { %p3828_p1 = scmp.ne.s32.totalorder %s3817_s21, 0 }
  0x90   : > { %s3829_s22 = sld [smem:[#allocation23_spill]] (!%p3828_p1) }
  0x91   : > { %585 = sbr.rel (%p3828_p1) target bundleno = 4346 (0x10fa), region = 72 }
  0x96   : > { %p3830_p8 = scmp.eq.s32.totalorder %s3829_s22, 0 }
  0x98   : > { %3089 = dma.done.wait (%p3830_p8), [#allocation5], 128   ;;  %p3831_p11 = pmov %p3830_p8 }
  0x99   : > { %p3832_p12 = pmov %p3830_p8 }
  0x9a   : > { %3091 = vsyncadd (%p3831_p11), [#allocation5], 4294967168 }
  0x9b   : > { %3093 = dma.done.wait (%p3832_p12), [#allocation3], 384   ;;  %p3833_p13 = pmov %p3830_p8 }
  0x9c   : > { %p3834_p5 = pmov %p3830_p8 }
  0x9d   : > { %3095 = vsyncadd (%p3833_p13), [#allocation3], 4294966912 }
  0x9e   : > { %3097 = dma.done.wait (%p3834_p5), [#allocation8], 32   ;;  %p3835_p2 = pmov %p3834_p5 }
  0x9f   : > { %s3836_s21 = sld [smem:[#allocation21_spill]]  ;;  %s599_s20 = sand.u32 1, %s3829_s22  }
  0xa0   : > { %3099 = vsyncadd (%p3835_p2), [#allocation8], 4294967264  ;;  %s3837_s15 = sld [smem:[#allocation24_spill]]  ;;  %s600_s13 = scalar_lea.sflag [#allocation3], %s599_s20 }
  0xa5   : > { %s3443_s17 = sand.u32 1, %s3836_s21  }
  0xa6   : > { %s2432_s19 = sshll.u32 %s3443_s17, 4  ;;  %p3838_p9 = scmp.ne.s32.totalorder %s3837_s15, 0 }
  0xa7   : > { %s3446_s5 = scalar_lea.vmem [#allocation9], %s2432_s19 }
  0xa8   : > { %3101 = dma.done.wait (%p3838_p9), %s600_s13, 560  }
  0xa9   : > { %3103 = vsyncadd (%p3838_p9), %s600_s13, 4294966736  ;;  %s3452_s25 = scalar_lea.vmem [#allocation10], %s2432_s19  ;;  %s620_s14 = scalar_lea.vmem [#allocation11], %s3443_s17 }
  0xaa   : > { %s628_s3 = scalar_lea.vmem [#allocation12], %s3443_s17  ;;  %s636_s8 = scalar_lea.vmem [#allocation13], %s3443_s17 }
  0xab   : > { %641 = sfence }
  0xac   : > { %s3839_s18 = sld [smem:[#allocation22_spill]]  ;;  %v2474_v0 = vld [vmem:[#allocation6] sm:$0xff]   ;;  %v2478_v1 = vld [vmem:[#allocation6 + $0x8] sm:$0xff]   ;;  %v2482_v2 = vld [vmem:[#allocation6 + $0x10] sm:$0xff]   ;;  %vm765_vm0 = vcmask 261120   ;;  %v3142_v35 = vmov 0.0  }
  0xad   : > { %v2475_v3 = vunpack.c.l.bf16 %v2474_v0  ;;  %v2476_v4 = vunpack.c.h.bf16 %v2474_v0  ;;  %v2479_v5 = vunpack.c.l.bf16 %v2478_v1  ;;  %v2480_v6 = vunpack.c.h.bf16 %v2478_v1  ;;  %v2785_v34 = vld [vmem:[%s3446_s5 + $0x8] sm:$0xff]   ;;  %2528 = vmatprep.subr.bf16.mxu0 %v3142_v35  ;;  %v2786_v36 = vld [vmem:[%s3446_s5] sm:$0xff]   ;;  %2536 = vmatprep.subr.bf16.mxu1 %v3142_v35  ;;  %s3840_s22 = sld [smem:[#allocation30_spill]]  ;;  %s3148_s24 = smov 120  }
  0xae   : > { %v2483_v7 = vunpack.c.l.bf16 %v2482_v2  ;;  %v2484_v8 = vunpack.c.h.bf16 %v2482_v2  ;;  %vm3143_vm1 = vmmov 0   ;;  %2529 = vmatpush3.bf16.msra.mxu0 %v2785_v34  ;;  %s3841_s19 = sld [smem:[#allocation31_spill]]  ;;  %vm911_vm2 = vcmask 64512   ;;  %s3149_s23 = smov 56  }
  0xaf   : > { %2532 = vmatprep.mubr.msk.bf16.mxu0 %vm3143_vm1, %v3142_v35  ;;  %2530 = vmatprep.subr.bf16.mxu0 %v3142_v35  ;;  %vm1050_vm3 = vcmask 1043456   ;;  %s3152_s15 = smov 48   ;;  %s3153_s20 = smov 72   ;;  %vm2095_vm4 = vcmask 58368   ;;  %vm2112_vm5 = vcmask 1041409   ;;  %vm2115_vm6 = vcmask 254976  }
  0xb0   : > { %2538 = vmatprep.mubr.msk.bf16.mxu1 %vm3143_vm1, %v3142_v35 }
  0xb2   : > { %s2435_s1 = sshll.u32 %s3839_s18, 7  ;;  %2531 = vmatpush3.bf16.msra.mxu0 %v2786_v36  ;;  %p713_p3 = scmp.lt.s32.totalorder %s3839_s18, 5 }
  0xb3   : > { %s731_s4 = sld [smem:[#allocation2 + %s2435_s1]]  ;;  %s739_s28 = sadd.s32 1, %s2435_s1  ;;  %2542 = vmatprep.subr.bf16.mxu0 %v3142_v35 }
  0xb4   : > { %s740_s10 = sld [smem:[#allocation2 + %s739_s28]]  ;;  %s751_s6 = sadd.s32 2, %s2435_s1 }
  0xb5   : > { %s752_s16 = sld [smem:[#allocation2 + %s751_s6]]  ;;  %s3146_s6 = smov 64  }
  0xb6   : > { %s3474_s26 = scalar_select %p713_p3, %s3839_s18, 5 }
  0xb8   : > { %s715_s21 = scalar_lea.vmem %s3840_s22, %s3474_s26  ;;  %s718_s13 = scalar_lea.vmem %s3841_s19, %s3474_s26 }
  0xb9   : > { %v736_v9 = vstv %s731_s4  ;;  %v2436_v45 = vld [vmem:[%s715_s21] ss:$0 sm:$0xff]  ;;  %s3842_s4 = sld [smem:[#allocation33_spill]]  ;;  %s3150_s22 = smov 80  }
  0xba   : > { %v737_v10 = vmul.f32 %v2475_v3, %v736_v9  ;;  %v746_v11 = vstv %s740_s10  ;;  %v738_v12 = vmul.f32 %v2476_v4, %v736_v9  ;;  %v2437_v49 = vld [vmem:[%s718_s13] ss:$0 sm:$0xff]  ;;  %s3144_s10 = smov 96   ;;  %v3145_v3 = vmov 1966171168   ;;  %s3151_s21 = smov 112  }
  0xbb   : > { %v747_v13 = vmul.f32 %v2479_v5, %v746_v11  ;;  %v758_v14 = vstv %s752_s16  ;;  %v748_v15 = vmul.f32 %v2480_v6, %v746_v11  ;;  %v881_v4 = vunpack.c.l.s4 %v3145_v3  ;;  %v3515_v6 = vld [vmem:[#allocation7] sm:$0x3]  ;;  %s3147_s16 = smov 88   ;;  %s3154_s19 = smov 104  }
  0xbc   : > { %v759_v16 = vmul.f32 %v2483_v7, %v758_v14  ;;  %v760_v17 = vmul.f32 %v2484_v8, %v758_v14  ;;  %v883_v5 = vlaneseq  ;;  %v877_v7 = vsub.f32 1.0, %v3515_v6  ;;  %s3155_s13 = smov 40  }
  0xbd   : > { %v749_v18 = vadd.f32 %v747_v13, %v737_v10  ;;  %v750_v19 = vadd.f32 %v748_v15, %v738_v12  ;;  %v882_v8 = vunpack.c.0.s8 %v881_v4 }
  0xbe   : > { %v3518_v9 = vshrl.u32 %v883_v5, 7  ;;  %v878_v10 = vmul.f32 -10000.0, %v877_v7 }
  0xbf   : > { %v761_v20 = vadd.f32 %v759_v16, %v749_v18  ;;  %v762_v21 = vadd.f32 %v760_v17, %v750_v19  ;;  %s721_s28 = scalar_lea.vmem %s3842_s4, %s3474_s26  ;;  %s3843_s4 = sld [smem:[#allocation34_spill]] }
  0xc0   : > { %v2438_v54 = vld [vmem:[%s721_s28] ss:$0 sm:$0xff]  ;;  %v885_v11 = vsub.s32 %v882_v8, %v3518_v9  ;;  %v3522_v14 = vsub.s32 0, %v3518_v9 }
  0xc1   : > { %v766_v22 = vsel %vm765_vm0, %v761_v20, 0.0  ;;  %v769_v23 = vsel %vm765_vm0, %v762_v21, 0.0 }
  0xc2   : > { %767 = vadd.xlane.f32.xlu0 %v766_v22  ;;  %v886_v12 = vrot.slane %v878_v10, %v885_v11 }
  0xc4   : > { %v894_v13 = vrot.slane %v886_v12, %v885_v11  ;;  %v887_v15 = vcombine.high %v886_v12, %v886_v12 }
  0xc5   : > { %s724_s28 = scalar_lea.vmem %s3843_s4, %s3474_s26 }
  0xc6   : > { %770 = vadd.xlane.f32.xlu0 %v769_v23  ;;  %v3525_v16 = vrot.slane %v894_v13, %v3522_v14  ;;  %v901_v17 = vrot.slane %v887_v15, %v885_v11 }
  0xc8   : > { %v3529_v22 = vrot.slane %v901_v17, %v3522_v14 }
 0x14b   : > { %v768_v24 = vpop.xlane.xlu0 %767 }
 0x14c   : > { %v773_v25 = vmul.f32 0.03125, %v768_v24 }
 0x14e   : > { %v775_v26 = vsub.f32 %v761_v20, %v773_v25 }
 0x14f   : > { %v771_v27 = vpop.xlane.xlu0 %770 }
 0x150   : > { %v774_v28 = vmul.f32 0.03125, %v771_v27  ;;  %v777_v29 = vmul.f32 %v775_v26, %v775_v26 }
 0x152   : > { %v776_v30 = vsub.f32 %v762_v21, %v774_v28  ;;  %v779_v31 = vsel %vm765_vm0, %v777_v29, 0.0 }
 0x153   : > { %780 = vadd.xlane.f32.xlu1 %v779_v31 }
 0x154   : > { %v778_v32 = vmul.f32 %v776_v30, %v776_v30 }
 0x156   : > { %v782_v33 = vsel %vm765_vm0, %v778_v32, 0.0 }
 0x157   : > { %783 = vadd.xlane.f32.xlu1 %v782_v33 }
 0x1dc   : > { %v781_v37 = vpop.xlane.xlu1 %780 }
 0x1dd   : > { %v785_v38 = vmul.f32 0.03125, %v781_v37 }
 0x1df   : > { %v787_v39 = vadd.f32 1e-07, %v785_v38 }
 0x1e0   : > { %v784_v40 = vpop.xlane.xlu1 %783 }
 0x1e1   : > { %2787 = vrsqrt.f32 %v787_v39  ;;  %v786_v41 = vmul.f32 0.03125, %v784_v40 }
 0x1e3   : > { %v788_v42 = vadd.f32 1e-07, %v786_v41 }
 0x1e5   : > { %2789 = vrsqrt.f32 %v788_v42 }
 0x1ee   : > { %v2788_v43 = vpop.eup %2787 }
 0x1ef   : > { %v791_v44 = vmul.f32 %v2788_v43, %v775_v26 }
 0x1f1   : > { %v799_v48 = vmul.f32 %v2436_v45, %v791_v44 }
 0x1f2   : > { %v2790_v46 = vpop.eup %2789 }
 0x1f3   : > { %v792_v47 = vmul.f32 %v2790_v46, %v776_v30  ;;  %v3484_v51 = vadd.f32 %v2437_v49, %v799_v48 }
 0x1f5   : > { %v800_v50 = vmul.f32 %v2436_v45, %v792_v47 }
 0x1f7   : > { %v3486_v52 = vadd.f32 %v2437_v49, %v800_v50 }
 0x1f9   : > { %v809_v53 = vpack.c.bf16 %v3486_v52, %v3484_v51 }
 0x1fb   : > { %2533 = vmatmul.mubr.msk.bf16.vlgmr.msra.gmra.mxu0 %vm765_vm0, %v809_v53 }
 0x1fc   : > { %2544 = vmatprep.mubr.msk.bf16.mxu0 %vm3143_vm1, %v3142_v35 }
 0x2bb   : > { %v870_v55 = vpop.f32.mrf.mxu0 }
 0x2bc   : > { %v871_v56 = vadd.f32 %v2438_v54, %v870_v55 }
 0x2bd   : > { %v2534_v57 = vpop.f32.mrf.mxu0 }
 0x2be   : > { %v3497_v58 = vpack.c.bf16 %v871_v56, %v871_v56 }
 0x2bf   : > { %v873_v59 = vpop.f32.mrf.mxu0 }
 0x2c0   : > { %v874_v60 = vadd.f32 %v2438_v54, %v873_v59  ;;  %909 = vrot.lane.b32.xlu0 %v3497_v58, %s3144_s10 }
 0x2c1   : > { %v2535_v61 = vpop.f32.mrf.mxu0 }
 0x2c2   : > { %v3500_v62 = vpack.c.bf16 %v874_v60, %v874_v60 }
 0x2c4   : > { %959 = vrot.lane.b32.xlu1 %v3500_v62, %s3144_s10 }
 0x332   : > { %v910_v63 = vpop.permute.xlu0 %909 }
 0x333   : > { %v916_v0 = vsel %vm911_vm2, %v910_v63, 0 }
 0x334   : > { %2537 = vmatpush3.bf16.xpose.msra.mxu1 %v916_v0 }
 0x335   : > { %2548 = vmatprep.subr.bf16.mxu1 %v3142_v35 }
 0x336   : > { %v960_v1 = vpop.permute.xlu1 %959 }
 0x337   : > { %v965_v2 = vsel %vm911_vm2, %v960_v1, 0 }
 0x338   : > { %2543 = vmatpush3.bf16.xpose.msra.mxu0 %v965_v2 }
 0x339   : > { %2554 = vmatprep.subr.bf16.mxu0 %v3142_v35 }
 0x33b   : > { %2539 = vmatmul.mubr.msk.bf16.vlgmr.msra.gmra.mxu1 %vm911_vm2, %v3497_v58 }
 0x33c   : > { %2550 = vmatprep.mubr.msk.bf16.mxu1 %vm3143_vm1, %v3142_v35 }
 0x33f   : > { %2545 = vmatmul.mubr.msk.bf16.vlgmr.msra.gmra.mxu0 %vm911_vm2, %v3500_v62 }
 0x340   : > { %2556 = vmatprep.mubr.msk.bf16.mxu0 %vm3143_vm1, %v3142_v35 }
 0x3fb   : > { %v952_v18 = vpop.f32.mrf.mxu1 }
 0x3fc   : > { %v1007_v19 = vmul.f32 0.35355338, %v952_v18 }
 0x3fd   : > { %v2540_v20 = vpop.f32.mrf.mxu1 }
 0x3fe   : > { %v1019_v21 = vadd.f32 %v3525_v16, %v1007_v19 }
 0x3ff   : > { %v955_v23 = vpop.f32.mrf.mxu1  ;;  %v1001_v24 = vpop.f32.mrf.mxu0 }
 0x400   : > { %v1008_v25 = vmul.f32 0.35355338, %v1001_v24  ;;  %v1021_v26 = vsel %vm911_vm2, %v1019_v21, -inf }
 0x401   : > { %v2541_v27 = vpop.f32.mrf.mxu1  ;;  %1022 = vmax.xlane.f32.xlu1 %v1021_v26  ;;  %v2546_v28 = vpop.f32.mrf.mxu0 }
 0x402   : > { %v1020_v29 = vadd.f32 %v3529_v22, %v1008_v25 }
 0x403   : > { %v1004_v30 = vpop.f32.mrf.mxu0 }
 0x404   : > { %v1024_v31 = vsel %vm911_vm2, %v1020_v29, -inf }
 0x405   : > { %1025 = vmax.xlane.f32.xlu0 %v1024_v31  ;;  %v2547_v32 = vpop.f32.mrf.mxu0 }
 0x412   : > { %1094 = vrot.lane.b32.xlu1 %v3500_v62, %s3146_s6 }
 0x416   : > { %1145 = vrot.lane.b32.xlu1 %v3497_v58, %s3147_s16 }
 0x48a   : > { %v1023_v33 = vpop.xlane.xlu1 %1022 }
 0x48b   : > { %v1027_v34 = vsub.f32 %v1019_v21, %v1023_v33 }
 0x48d   : > { %v1029_v36 = vmul.f32 1.442695, %v1027_v34 }
 0x48e   : > { %v1095_v37 = vpop.permute.xlu1 %1094  ;;  %v1026_v38 = vpop.xlane.xlu0 %1025 }
 0x48f   : > { %2791 = vpow2.f32 %v1029_v36  ;;  %v1100_v39 = vsel %vm1050_vm3, %v1095_v37, 0  ;;  %v1028_v40 = vsub.f32 %v1020_v29, %v1026_v38 }
 0x490   : > { %2555 = vmatpush3.bf16.msra.mxu0 %v1100_v39 }
 0x491   : > { %v1031_v41 = vmul.f32 1.442695, %v1028_v40  ;;  %2566 = vmatprep.subr.bf16.mxu0 %v3142_v35 }
 0x492   : > { %v1146_v46 = vpop.permute.xlu1 %1145 }
 0x493   : > { %2793 = vpow2.f32 %v1031_v41  ;;  %v1151_v57 = vsel %vm911_vm2, %v1146_v46, 0 }
 0x49c   : > { %v2792_v42 = vpop.eup %2791 }
 0x49d   : > { %v1033_v43 = vsel %vm911_vm2, %v2792_v42, 0.0 }
 0x49e   : > { %1034 = vadd.xlane.f32.xlu0 %v1033_v43 }
 0x4a0   : > { %v2794_v44 = vpop.eup %2793 }
 0x4a1   : > { %v1036_v45 = vsel %vm911_vm2, %v2794_v44, 0.0 }
 0x4a2   : > { %1037 = vadd.xlane.f32.xlu1 %v1036_v45 }
 0x4b3   : > { %1195 = vrot.lane.b32.xlu1 %v3500_v62, %s3147_s16 }
 0x4b4   : > { %1045 = vrot.lane.b32.xlu0 %v3497_v58, %s3146_s6  ;;  %s3844_s6 = sld [smem:[#allocation35_spill]] }
 0x4b7   : > { %1193 = vrot.lane.b32.xlu1 %v3500_v62, %s3148_s24 }
 0x4b8   : > { %1143 = vrot.lane.b32.xlu0 %v3497_v58, %s3148_s24  ;;  %s2468_s24 = sshll.u32 %s3839_s18, 5 }
 0x4ba   : > { %s727_s16 = scalar_lea.vmem %s3844_s6, %s3474_s26  ;;  %s3845_s26 = sld [smem:[#allocation25_spill]] }
 0x4c0   : > { %p3847_p6 = scmp.ne.s32.totalorder %s3845_s26, 0 }
 0x527   : > { %v1035_v47 = vpop.xlane.xlu0 %1034 }
 0x528   : > { %2795 = vrcp.f32 %v1035_v47 }
 0x52b   : > { %v1038_v48 = vpop.xlane.xlu1 %1037  ;;  %v1046_v49 = vpop.permute.xlu0 %1045 }
 0x52c   : > { %2797 = vrcp.f32 %v1038_v48  ;;  %v1052_v50 = vsel %vm1050_vm3, %v1046_v49, 0 }
 0x52d   : > { %2549 = vmatpush3.bf16.msra.mxu1 %v1052_v50 }
 0x52e   : > { %2560 = vmatprep.subr.bf16.mxu1 %v3142_v35 }
 0x52f   : > { %v1196_v60 = vpop.permute.xlu1 %1195  ;;  %v1144_v0 = vpop.permute.xlu0 %1143 }
 0x530   : > { %v1201_v63 = vsel %vm911_vm2, %v1196_v60, 0 }
 0x533   : > { %v1194_v1 = vpop.permute.xlu1 %1193 }
 0x535   : > { %v2796_v53 = vpop.eup %2795 }
 0x536   : > { %v1041_v54 = vmul.f32 %v2796_v53, %v2792_v42  ;;  %v902_v53 = vld [vmem:[%s3452_s25] sm:$0xf] }
 0x538   : > { %v1043_v55 = vpack.c.bf16 %v1041_v54, %v1041_v54 }
 0x539   : > { %v2798_v56 = vpop.eup %2797 }
 0x53a   : > { %2551 = vmatmul.mubr.msk.bf16.vlgmr.msra.gmra.mxu1 %vm911_vm2, %v1043_v55  ;;  %v1042_v59 = vmul.f32 %v2798_v56, %v2794_v44  ;;  %v1419_v56 = vsel %vm1050_vm3, %v902_v53, 0 }
 0x53b   : > { %2561 = vmatpush3.bf16.xpose.msra.mxu1 %v1151_v57  ;;  %2562 = vmatprep.mubr.msk.bf16.mxu1 %vm3143_vm1, %v3142_v35 }
 0x53c   : > { %v1044_v61 = vpack.c.bf16 %v1042_v59, %v1042_v59  ;;  %2572 = vmatprep.subr.bf16.mxu1 %v3142_v35 }
 0x53e   : > { %2557 = vmatmul.mubr.msk.bf16.vlgmr.msra.gmra.mxu0 %vm911_vm2, %v1044_v61 }
 0x53f   : > { %2567 = vmatpush3.bf16.xpose.msra.mxu0 %v1201_v63  ;;  %2568 = vmatprep.mubr.msk.bf16.mxu0 %vm3143_vm1, %v3142_v35  ;;  %v903_v63 = vld [vmem:[%s3452_s25 + $0x4] sm:$0xf] }
 0x540   : > { %2578 = vmatprep.subr.bf16.mxu0 %v3142_v35 }
 0x542   : > { %2563 = vmatmul.mubr.msk.bf16.vlgmr.msra.gmra.mxu1 %vm911_vm2, %v1144_v0  ;;  %v1372_v0 = vsel %vm1050_vm3, %v903_v63, 0 }
 0x543   : > { %2574 = vmatprep.mubr.msk.bf16.mxu1 %vm3143_vm1, %v3142_v35 }
 0x546   : > { %2569 = vmatmul.mubr.msk.bf16.vlgmr.msra.gmra.mxu0 %vm911_vm2, %v1194_v1 }
 0x547   : > { %2580 = vmatprep.mubr.msk.bf16.mxu0 %vm3143_vm1, %v3142_v35 }
 0x5fa   : > { %v3562_v2 = vpop.f32.mrf.mxu1 }
 0x5fc   : > { %v2552_v3 = vpop.f32.mrf.mxu1 }
 0x5fe   : > { %v1091_v4 = vpop.f32.mrf.mxu1  ;;  %v3564_v5 = vpop.f32.mrf.mxu0 }
 0x5ff   : > { %v1142_v7 = vpack.c.bf16 %v3564_v5, %v3562_v2 }
 0x600   : > { %v2553_v8 = vpop.f32.mrf.mxu1  ;;  %v2558_v10 = vpop.f32.mrf.mxu0 }
 0x602   : > { %v1139_v11 = vpop.f32.mrf.mxu0  ;;  %v1187_v12 = vpop.f32.mrf.mxu1 }
 0x603   : > { %v1243_v13 = vmul.f32 0.35355338, %v1187_v12 }
 0x604   : > { %v2559_v15 = vpop.f32.mrf.mxu0  ;;  %v2564_v17 = vpop.f32.mrf.mxu1 }
 0x605   : > { %v1245_v18 = vadd.f32 %v1243_v13, %v3525_v16 }
 0x606   : > { %v1190_v19 = vpop.f32.mrf.mxu1  ;;  %v1237_v20 = vpop.f32.mrf.mxu0 }
 0x607   : > { %v1244_v21 = vmul.f32 0.35355338, %v1237_v20  ;;  %v1247_v23 = vsel %vm911_vm2, %v1245_v18, -inf }
 0x608   : > { %1248 = vmax.xlane.f32.xlu0 %v1247_v23  ;;  %v2565_v24 = vpop.f32.mrf.mxu1  ;;  %v2570_v25 = vpop.f32.mrf.mxu0 }
 0x609   : > { %v1246_v26 = vadd.f32 %v1244_v21, %v3529_v22 }
 0x60a   : > { %v1240_v27 = vpop.f32.mrf.mxu0 }
 0x60b   : > { %v1250_v28 = vsel %vm911_vm2, %v1246_v26, -inf }
 0x60c   : > { %1251 = vmax.xlane.f32.xlu1 %v1250_v28  ;;  %v2571_v29 = vpop.f32.mrf.mxu0 }
 0x61d   : > { %1319 = vrot.lane.b32.xlu1 %v3500_v62, %s3149_s23 }
 0x621   : > { %1464 = vrot.lane.b32.xlu1 %v3497_v58, %s3150_s22 }
 0x625   : > { %1514 = vrot.lane.b32.xlu1 %v3500_v62, %s3150_s22 }
 0x629   : > { %1512 = vrot.lane.b32.xlu1 %v3500_v62, %s3151_s21 }
 0x691   : > { %v1249_v30 = vpop.xlane.xlu0 %1248 }
 0x692   : > { %v1253_v31 = vsub.f32 %v1245_v18, %v1249_v30 }
 0x694   : > { %v1255_v32 = vmul.f32 1.442695, %v1253_v31 }
 0x695   : > { %v1252_v33 = vpop.xlane.xlu1 %1251 }
 0x696   : > { %2799 = vpow2.f32 %v1255_v32  ;;  %v1254_v34 = vsub.f32 %v1246_v26, %v1252_v33 }
 0x698   : > { %v1257_v36 = vmul.f32 1.442695, %v1254_v34 }
 0x699   : > { %v1320_v37 = vpop.permute.xlu1 %1319 }
 0x69a   : > { %2801 = vpow2.f32 %v1257_v36  ;;  %v1325_v38 = vsel %vm1050_vm3, %v1320_v37, 0 }
 0x69b   : > { %2579 = vmatpush3.bf16.msra.mxu0 %v1325_v38 }
 0x69c   : > { %2590 = vmatprep.subr.bf16.mxu0 %v3142_v35 }
 0x69d   : > { %v1465_v57 = vpop.permute.xlu1 %1464 }
 0x69e   : > { %v1470_v10 = vsel %vm911_vm2, %v1465_v57, 0 }
 0x6a1   : > { %v1515_v59 = vpop.permute.xlu1 %1514 }
 0x6a2   : > { %v1520_v60 = vsel %vm911_vm2, %v1515_v59, 0 }
 0x6a3   : > { %v2800_v39 = vpop.eup %2799 }
 0x6a4   : > { %v1259_v40 = vsel %vm911_vm2, %v2800_v39, 0.0 }
 0x6a5   : > { %1260 = vadd.xlane.f32.xlu0 %v1259_v40  ;;  %v1513_v61 = vpop.permute.xlu1 %1512 }
 0x6a7   : > { %v2802_v41 = vpop.eup %2801 }
 0x6a8   : > { %v1262_v42 = vsel %vm911_vm2, %v2802_v41, 0.0 }
 0x6a9   : > { %1263 = vadd.xlane.f32.xlu0 %v1262_v42 }
 0x6bf   : > { %1271 = vrot.lane.b32.xlu0 %v3497_v58, %s3149_s23 }
 0x6c3   : > { %1462 = vrot.lane.b32.xlu0 %v3497_v58, %s3151_s21 }
 0x72e   : > { %v1261_v43 = vpop.xlane.xlu0 %1260 }
 0x72f   : > { %2803 = vrcp.f32 %v1261_v43 }
 0x732   : > { %v1264_v44 = vpop.xlane.xlu0 %1263 }
 0x733   : > { %2805 = vrcp.f32 %v1264_v44 }
 0x736   : > { %v1272_v45 = vpop.permute.xlu0 %1271 }
 0x737   : > { %v1277_v46 = vsel %vm1050_vm3, %v1272_v45, 0 }
 0x738   : > { %2573 = vmatpush3.bf16.msra.mxu1 %v1277_v46 }
 0x739   : > { %2584 = vmatprep.subr.bf16.mxu1 %v3142_v35 }
 0x73a   : > { %v1463_v15 = vpop.permute.xlu0 %1462 }
 0x73c   : > { %v2804_v47 = vpop.eup %2803 }
 0x73d   : > { %v1267_v48 = vmul.f32 %v2804_v47, %v2800_v39 }
 0x73f   : > { %v1269_v49 = vpack.c.bf16 %v1267_v48, %v1267_v48 }
 0x740   : > { %v2806_v50 = vpop.eup %2805 }
 0x741   : > { %2575 = vmatmul.mubr.msk.bf16.vlgmr.msra.gmra.mxu1 %vm911_vm2, %v1269_v49  ;;  %v1268_v54 = vmul.f32 %v2806_v50, %v2802_v41 }
 0x742   : > { %2586 = vmatprep.mubr.msk.bf16.mxu1 %vm3143_vm1, %v3142_v35  ;;  %2585 = vmatpush3.bf16.msra.mxu1 %v1372_v0 }
 0x743   : > { %v1270_v55 = vpack.c.bf16 %v1268_v54, %v1268_v54  ;;  %2596 = vmatprep.subr.bf16.mxu1 %v3142_v35 }
 0x745   : > { %2581 = vmatmul.mubr.msk.bf16.vlgmr.msra.gmra.mxu0 %vm911_vm2, %v1270_v55 }
 0x746   : > { %2591 = vmatpush3.bf16.msra.mxu0 %v1419_v56  ;;  %2592 = vmatprep.mubr.msk.bf16.mxu0 %vm3143_vm1, %v3142_v35 }
 0x747   : > { %2602 = vmatprep.subr.bf16.mxu0 %v3142_v35 }
 0x74d   : > { %2593 = vmatmul.mubr.msk.bf16.vlgmr.msra.gmra.mxu0 %vm911_vm2, %v1142_v7 }
 0x74e   : > { %2603 = vmatpush3.bf16.xpose.msra.mxu0 %v1520_v60  ;;  %2604 = vmatprep.mubr.msk.bf16.mxu0 %vm3143_vm1, %v3142_v35 }
 0x74f   : > { %2614 = vmatprep.subr.bf16.mxu0 %v3142_v35 }
 0x755   : > { %2605 = vmatmul.mubr.msk.bf16.vlgmr.msra.gmra.mxu0 %vm911_vm2, %v1513_v61 }
 0x756   : > { %2616 = vmatprep.mubr.msk.bf16.mxu0 %vm3143_vm1, %v3142_v35 }
 0x801   : > { %v1313_v1 = vpop.f32.mrf.mxu1 }
 0x803   : > { %v2576_v2 = vpop.f32.mrf.mxu1 }
 0x805   : > { %v1316_v3 = vpop.f32.mrf.mxu1  ;;  %v1361_v4 = vpop.f32.mrf.mxu0 }
 0x806   : > { %v1367_v5 = vpack.c.bf16 %v1361_v4, %v1313_v1 }
 0x807   : > { %v2577_v7 = vpop.f32.mrf.mxu1  ;;  %v2582_v8 = vpop.f32.mrf.mxu0 }
 0x808   : > { %2587 = vmatmul.mubr.msk.bf16.vlgmr.msra.gmra.mxu1 %vm911_vm2, %v1367_v5 }
 0x809   : > { %2597 = vmatpush3.bf16.xpose.msra.mxu1 %v1470_v10  ;;  %v1364_v11 = vpop.f32.mrf.mxu0  ;;  %2598 = vmatprep.mubr.msk.bf16.mxu1 %vm3143_vm1, %v3142_v35 }
 0x80a   : > { %2608 = vmatprep.subr.bf16.mxu1 %v3142_v35  ;;  %v904_v11 = vld [vmem:[%s3452_s25 + $0x8] sm:$0xf] }
 0x80b   : > { %v2583_v12 = vpop.f32.mrf.mxu0 }
 0x80c   : > { %v1691_v12 = vsel %vm1050_vm3, %v904_v11, 0 }
 0x80d   : > { %v3612_v13 = vpop.f32.mrf.mxu0 }
 0x80f   : > { %v2594_v17 = vpop.f32.mrf.mxu0 }
 0x810   : > { %2599 = vmatmul.mubr.msk.bf16.vlgmr.msra.gmra.mxu1 %vm911_vm2, %v1463_v15 }
 0x811   : > { %v3615_v18 = vpop.f32.mrf.mxu0  ;;  %2610 = vmatprep.mubr.msk.bf16.mxu1 %vm3143_vm1, %v3142_v35 }
 0x813   : > { %v2595_v19 = vpop.f32.mrf.mxu0 }
 0x815   : > { %v1556_v20 = vpop.f32.mrf.mxu0 }
 0x816   : > { %v1563_v21 = vmul.f32 0.35355338, %v1556_v20 }
 0x817   : > { %v2606_v23 = vpop.f32.mrf.mxu0 }
 0x818   : > { %v1565_v24 = vadd.f32 %v1563_v21, %v3529_v22 }
 0x819   : > { %v1559_v25 = vpop.f32.mrf.mxu0 }
 0x81a   : > { %v1569_v26 = vsel %vm911_vm2, %v1565_v24, -inf }
 0x81b   : > { %1570 = vmax.xlane.f32.xlu1 %v1569_v26  ;;  %v2607_v27 = vpop.f32.mrf.mxu0 }
 0x82c   : > { %1638 = vrot.lane.b32.xlu1 %v3500_v62, %s3152_s15 }
 0x830   : > { %1738 = vrot.lane.b32.xlu1 %v3497_v58, %s3153_s20 }
 0x834   : > { %1788 = vrot.lane.b32.xlu1 %v3500_v62, %s3153_s20  ;;  %s3846_s20 = sld [smem:[#allocation36_spill]] }
 0x838   : > { %1786 = vrot.lane.b32.xlu1 %v3500_v62, %s3154_s19 }
 0x8a4   : > { %v1571_v28 = vpop.xlane.xlu1 %1570 }
 0x8a5   : > { %v1573_v31 = vsub.f32 %v1565_v24, %v1571_v28 }
 0x8a7   : > { %v1576_v32 = vmul.f32 1.442695, %v1573_v31 }
 0x8a8   : > { %v1639_v29 = vpop.permute.xlu1 %1638 }
 0x8a9   : > { %v1644_v30 = vsel %vm1050_vm3, %v1639_v29, 0  ;;  %2807 = vpow2.f32 %v1576_v32 }
 0x8aa   : > { %2615 = vmatpush3.bf16.msra.mxu0 %v1644_v30 }
 0x8ab   : > { %2626 = vmatprep.subr.bf16.mxu0 %v3142_v35 }
 0x8ac   : > { %v1739_v57 = vpop.permute.xlu1 %1738 }
 0x8ad   : > { %v1744_v60 = vsel %vm911_vm2, %v1739_v57, 0 }
 0x8b0   : > { %v1789_v25 = vpop.permute.xlu1 %1788 }
 0x8b1   : > { %v1794_v29 = vsel %vm911_vm2, %v1789_v25, 0 }
 0x8b4   : > { %v1787_v31 = vpop.permute.xlu1 %1786 }
 0x8b6   : > { %v2808_v44 = vpop.eup %2807 }
 0x8b7   : > { %v1581_v46 = vsel %vm911_vm2, %v2808_v44, 0.0 }
 0x8c8   : > { %v3629_v33 = vpop.f32.mrf.mxu1 }
 0x8ca   : > { %v2588_v34 = vpop.f32.mrf.mxu1 }
 0x8cc   : > { %v3631_v36 = vpop.f32.mrf.mxu1 }
 0x8ce   : > { %v2589_v37 = vpop.f32.mrf.mxu1 }
 0x8d0   : > { %v1506_v38 = vpop.f32.mrf.mxu1 }
 0x8d1   : > { %v1562_v39 = vmul.f32 0.35355338, %v1506_v38 }
 0x8d2   : > { %v2600_v40 = vpop.f32.mrf.mxu1 }
 0x8d3   : > { %v1564_v41 = vadd.f32 %v1562_v39, %v3525_v16  ;;  %v1456_v40 = vadd.f32 %v3612_v13, %v3629_v33 }
 0x8d4   : > { %v1509_v42 = vpop.f32.mrf.mxu1 }
 0x8d5   : > { %v1566_v43 = vsel %vm911_vm2, %v1564_v41, -inf }
 0x8d6   : > { %1567 = vmax.xlane.f32.xlu0 %v1566_v43  ;;  %v2601_v45 = vpop.f32.mrf.mxu1 }
 0x8da   : > { %1582 = vadd.xlane.f32.xlu0 %v1581_v46 }
 0x95f   : > { %v1568_v47 = vpop.xlane.xlu0 %1567 }
 0x960   : > { %v1572_v48 = vsub.f32 %v1564_v41, %v1568_v47 }
 0x962   : > { %v1574_v49 = vmul.f32 1.442695, %v1572_v48 }
 0x963   : > { %v1583_v50 = vpop.xlane.xlu0 %1582 }
 0x964   : > { %2809 = vpow2.f32 %v1574_v49 }
 0x965   : > { %2811 = vrcp.f32 %v1583_v50 }
 0x971   : > { %v2810_v53 = vpop.eup %2809 }
 0x972   : > { %v2812_v54 = vpop.eup %2811  ;;  %v1578_v55 = vsel %vm911_vm2, %v2810_v53, 0.0 }
 0x973   : > { %1579 = vadd.xlane.f32.xlu0 %v1578_v55  ;;  %v1587_v56 = vmul.f32 %v2812_v54, %v2808_v44  ;;  %v1459_v44 = vadd.f32 %v3615_v18, %v3631_v36 }
 0x975   : > { %v1589_v59 = vpack.c.bf16 %v1587_v56, %v1587_v56 }
 0x977   : > { %2617 = vmatmul.mubr.msk.bf16.vlgmr.msra.gmra.mxu0 %vm911_vm2, %v1589_v59 }
 0x978   : > { %2627 = vmatpush3.bf16.xpose.msra.mxu0 %v1744_v60  ;;  %2628 = vmatprep.mubr.msk.bf16.mxu0 %vm3143_vm1, %v3142_v35 }
 0x979   : > { %2638 = vmatprep.subr.bf16.mxu0 %v3142_v35 }
 0x989   : > { %1590 = vrot.lane.b32.xlu0 %v3497_v58, %s3152_s15 }
 0x98d   : > { %1736 = vrot.lane.b32.xlu0 %v3497_v58, %s3154_s19  ;;  %s3723_s19 = scalar_lea.hbm %s3846_s20, %s2468_s24 }
 0x9fc   : > { %v1580_v61 = vpop.xlane.xlu0 %1579 }
 0x9fd   : > { %2813 = vrcp.f32 %v1580_v61 }
 0xa00   : > { %v1591_v63 = vpop.permute.xlu0 %1590 }
 0xa01   : > { %v1596_v0 = vsel %vm1050_vm3, %v1591_v63, 0 }
 0xa02   : > { %2609 = vmatpush3.bf16.msra.mxu1 %v1596_v0 }
 0xa03   : > { %2620 = vmatprep.subr.bf16.mxu1 %v3142_v35 }
 0xa04   : > { %v1737_v1 = vpop.permute.xlu0 %1736 }
 0xa05   : > { %2629 = vmatmul.mubr.msk.bf16.vlgmr.msra.gmra.mxu0 %vm911_vm2, %v1737_v1 }
 0xa06   : > { %2640 = vmatprep.mubr.msk.bf16.mxu0 %vm3143_vm1, %v3142_v35 }
 0xa0a   : > { %v2814_v2 = vpop.eup %2813 }
 0xa0b   : > { %v1586_v3 = vmul.f32 %v2814_v2, %v2810_v53 }
 0xa0d   : > { %v1588_v4 = vpack.c.bf16 %v1586_v3, %v1586_v3 }
 0xa0f   : > { %2611 = vmatmul.mubr.msk.bf16.vlgmr.msra.gmra.mxu1 %vm911_vm2, %v1588_v4 }
 0xa10   : > { %2622 = vmatprep.mubr.msk.bf16.mxu1 %vm3143_vm1, %v3142_v35  ;;  %2621 = vmatpush3.bf16.msra.mxu1 %v1691_v12 }
 0xa11   : > { %2632 = vmatprep.subr.bf16.mxu1 %v3142_v35 }
 0xa37   : > { %v1680_v5 = vpop.f32.mrf.mxu0 }
 0xa39   : > { %v2618_v7 = vpop.f32.mrf.mxu0 }
 0xa3b   : > { %v1683_v8 = vpop.f32.mrf.mxu0 }
 0xa3d   : > { %v2619_v10 = vpop.f32.mrf.mxu0 }
 0xac5   : > { %v1780_v15 = vpop.f32.mrf.mxu0 }
 0xac6   : > { %v1836_v17 = vmul.f32 0.35355338, %v1780_v15 }
 0xac7   : > { %v2630_v19 = vpop.f32.mrf.mxu0 }
 0xac8   : > { %v1838_v20 = vadd.f32 %v1836_v17, %v3525_v16 }
 0xac9   : > { %v1783_v21 = vpop.f32.mrf.mxu0 }
 0xaca   : > { %v1840_v23 = vsel %vm911_vm2, %v1838_v20, -inf }
 0xacb   : > { %1841 = vmax.xlane.f32.xlu0 %v1840_v23  ;;  %v2631_v24 = vpop.f32.mrf.mxu0  ;;  %v2462_v23 = vld [vmem:[%s724_s28] ss:$0 sm:$0xff] }
 0xacf   : > { %v1632_v26 = vpop.f32.mrf.mxu1 }
 0xad0   : > { %v1686_v27 = vpack.c.bf16 %v1680_v5, %v1632_v26  ;;  %v905_v5 = vld [vmem:[%s3452_s25 + $0xc] sm:$0xf] }
 0xad1   : > { %v2612_v28 = vpop.f32.mrf.mxu1  ;;  %v1965_v7 = vsel %vm1050_vm3, %v905_v5, 0 }
 0xad2   : > { %2623 = vmatmul.mubr.msk.bf16.vlgmr.msra.gmra.mxu1 %vm911_vm2, %v1686_v27 }
 0xad3   : > { %2633 = vmatpush3.bf16.xpose.msra.mxu1 %v1794_v29  ;;  %v1635_v30 = vpop.f32.mrf.mxu1  ;;  %2634 = vmatprep.mubr.msk.bf16.mxu1 %vm3143_vm1, %v3142_v35 }
 0xad4   : > { %2644 = vmatprep.subr.bf16.mxu1 %v3142_v35 }
 0xad5   : > { %v2613_v16 = vpop.f32.mrf.mxu1 }
 0xada   : > { %2635 = vmatmul.mubr.msk.bf16.vlgmr.msra.gmra.mxu1 %vm911_vm2, %v1787_v31 }
 0xadb   : > { %2646 = vmatprep.mubr.msk.bf16.mxu1 %vm3143_vm1, %v3142_v35 }
 0xb54   : > { %v1842_v32 = vpop.xlane.xlu0 %1841 }
 0xb55   : > { %v1846_v34 = vsub.f32 %v1838_v20, %v1842_v32 }
 0xb57   : > { %v1848_v37 = vmul.f32 1.442695, %v1846_v34 }
 0xb59   : > { %2815 = vpow2.f32 %v1848_v37 }
 0xb66   : > { %v2816_v38 = vpop.eup %2815 }
 0xb67   : > { %v1852_v39 = vsel %vm911_vm2, %v2816_v38, 0.0 }
 0xb68   : > { %1853 = vadd.xlane.f32.xlu0 %v1852_v39 }
 0xb92   : > { %v1727_v41 = vpop.f32.mrf.mxu1 }
 0xb93   : > { %v1734_v42 = vadd.f32 %v1727_v41, %v1456_v40 }
 0xb94   : > { %v2624_v43 = vpop.f32.mrf.mxu1 }
 0xb96   : > { %v1730_v45 = vpop.f32.mrf.mxu1 }
 0xb97   : > { %v1735_v46 = vadd.f32 %v1730_v45, %v1459_v44 }
 0xb98   : > { %v2625_v47 = vpop.f32.mrf.mxu1 }
 0xb9a   : > { %v1830_v48 = vpop.f32.mrf.mxu1 }
 0xb9b   : > { %v1837_v49 = vmul.f32 0.35355338, %v1830_v48  ;;  %v2068_v48 = vrot.slane %v3515_v6, %v3522_v14 }
 0xb9c   : > { %v2636_v50 = vpop.f32.mrf.mxu1 }
 0xb9d   : > { %v1839_v53 = vadd.f32 %v1837_v49, %v3529_v22 }
 0xb9e   : > { %v1833_v54 = vpop.f32.mrf.mxu1 }
 0xb9f   : > { %v1843_v55 = vsel %vm911_vm2, %v1839_v53, -inf }
 0xba0   : > { %1844 = vmax.xlane.f32.xlu1 %v1843_v55  ;;  %v2637_v56 = vpop.f32.mrf.mxu1 }
 0xbb1   : > { %1912 = vrot.lane.b32.xlu1 %v3500_v62, %s3155_s13 }
 0xbf1   : > { %v1854_v22 = vpop.xlane.xlu0 %1853 }
 0xc29   : > { %v1845_v13 = vpop.xlane.xlu1 %1844 }
 0xc2a   : > { %v1847_v33 = vsub.f32 %v1839_v53, %v1845_v13 }
 0xc2c   : > { %v1850_v57 = vmul.f32 1.442695, %v1847_v33  ;;  %v2463_v33 = vld [vmem:[%s620_s14] ss:$0 sm:$0xff]  ;;  %s2434_s14 = sshll.u32 %s3443_s17, 1 }
 0xc2d   : > { %v1913_v18 = vpop.permute.xlu1 %1912  ;;  %s711_s23 = scalar_lea.vmem [#allocation14], %s2434_s14 }
 0xc2e   : > { %2817 = vpow2.f32 %v1850_v57  ;;  %v1918_v36 = vsel %vm1050_vm3, %v1913_v18, 0  ;;  %v2464_v18 = vld [vmem:[%s727_s16] ss:$0 sm:$0xff]  ;;  %s2182_s22 = sshll.u32 %s711_s23, 4  ;;  %s2183_s22 = int_to_ptr.vmem [resolvable:$true] %s2182_s22 }
 0xc2f   : > { %2645 = vmatpush3.bf16.msra.mxu1 %v1918_v36  ;;  %2819 = vrcp.f32 %v1854_v22 }
 0xc3b   : > { %v2818_v59 = vpop.eup %2817 }
 0xc3c   : > { %v1855_v60 = vsel %vm911_vm2, %v2818_v59, 0.0  ;;  %v2820_v61 = vpop.eup %2819 }
 0xc3d   : > { %1856 = vadd.xlane.f32.xlu0 %v1855_v60  ;;  %v1860_v62 = vmul.f32 %v2820_v61, %v2816_v38 }
 0xc3f   : > { %v1862_v2 = vpack.c.bf16 %v1860_v62, %v1860_v62 }
 0xc53   : > { %1864 = vrot.lane.b32.xlu0 %v3497_v58, %s3155_s13  ;;  %s3038_s13 = scalar_lea.vmem %s2183_s22, 32 }
 0xc54   : > { %p3039_p0 = scmp.ne.s32.totalorder %s2183_s22, %s3038_s13 }
 0xc56   : > { %p3040_p7 = pnand %p3039_p0, %p3847_p6 }
 0xc58   : > { %p3041_p4 = pneg %p3040_p7 }
 0xcc6   : > { %v1857_v63 = vpop.xlane.xlu0 %1856 }
 0xcc7   : > { %2821 = vrcp.f32 %v1857_v63 }
 0xcca   : > { %v1865_v0 = vpop.permute.xlu0 %1864 }
 0xccb   : > { %v1870_v1 = vsel %vm1050_vm3, %v1865_v0, 0 }
 0xccc   : > { %2639 = vmatpush3.bf16.msra.mxu0 %v1870_v1 }
 0xccd   : > { %2650 = vmatprep.subr.bf16.mxu0 %v3142_v35 }
 0xccf   : > { %2641 = vmatmul.mubr.msk.bf16.vlgmr.msra.gmra.mxu0 %vm911_vm2, %v1862_v2 }
 0xcd0   : > { %2652 = vmatprep.mubr.msk.bf16.mxu0 %vm3143_vm1, %v3142_v35  ;;  %2651 = vmatpush3.bf16.msra.mxu0 %v1965_v7 }
 0xcd4   : > { %v2822_v58 = vpop.eup %2821 }
 0xcd5   : > { %v1861_v3 = vmul.f32 %v2822_v58, %v2818_v59 }
 0xcd7   : > { %v1863_v4 = vpack.c.bf16 %v1861_v3, %v1861_v3 }
 0xcd9   : > { %2647 = vmatmul.mubr.msk.bf16.vlgmr.msra.gmra.mxu1 %vm911_vm2, %v1863_v4 }
 0xd8f   : > { %v1906_v8 = vpop.f32.mrf.mxu0 }
 0xd91   : > { %v2642_v10 = vpop.f32.mrf.mxu0 }
 0xd93   : > { %v1909_v11 = vpop.f32.mrf.mxu0 }
 0xd95   : > { %v2643_v12 = vpop.f32.mrf.mxu0 }
 0xd99   : > { %v1954_v15 = vpop.f32.mrf.mxu1 }
 0xd9a   : > { %v1960_v17 = vpack.c.bf16 %v1954_v15, %v1906_v8 }
 0xd9b   : > { %v2648_v19 = vpop.f32.mrf.mxu1 }
 0xd9c   : > { %2653 = vmatmul.mubr.msk.bf16.vlgmr.msra.gmra.mxu0 %vm911_vm2, %v1960_v17 }
 0xd9d   : > { %v1957_v35 = vpop.f32.mrf.mxu1 }
 0xd9f   : > { %v2649_v20 = vpop.f32.mrf.mxu1 }
 0xe5c   : > { %v2001_v21 = vpop.f32.mrf.mxu0 }
 0xe5d   : > { %v2008_v24 = vadd.f32 %v2001_v21, %v1734_v42 }
 0xe5e   : > { %v2654_v25 = vpop.f32.mrf.mxu0 }
 0xe5f   : > { %v2017_v26 = vadd.f32 %v2462_v23, %v2008_v24 }
 0xe60   : > { %v2004_v27 = vpop.f32.mrf.mxu0 }
 0xe61   : > { %v2009_v28 = vadd.f32 %v2004_v27, %v1735_v46  ;;  %v2019_v29 = vadd.f32 %v2017_v26, %v3484_v51  ;;  %v2074_v46 = vsub.s32 1, %v3518_v9 }
 0xe62   : > { %v2655_v30 = vpop.f32.mrf.mxu0 }
 0xe63   : > { %v2018_v16 = vadd.f32 %v2462_v23, %v2009_v28  ;;  %v2023_v31 = vsel %vm765_vm0, %v2019_v29, 0.0  ;;  %v2075_v47 = vrot.slane %v3515_v6, %v2074_v46 }
 0xe64   : > { %2024 = vadd.xlane.f32.xlu0 %v2023_v31 }
 0xe65   : > { %v2020_v32 = vadd.f32 %v2018_v16, %v3486_v52  ;;  %v2096_v52 = vsel %vm2095_vm4, %v3515_v6, 0.0 }
 0xe67   : > { %v2026_v34 = vsel %vm765_vm0, %v2020_v32, 0.0 }
 0xe68   : > { %2027 = vadd.xlane.f32.xlu1 %v2026_v34 }
 0xeed   : > { %v2025_v37 = vpop.xlane.xlu0 %2024 }
 0xeee   : > { %v2029_v38 = vmul.f32 0.03125, %v2025_v37 }
 0xef0   : > { %v2031_v39 = vsub.f32 %v2019_v29, %v2029_v38 }
 0xef1   : > { %v2028_v40 = vpop.xlane.xlu1 %2027 }
 0xef2   : > { %v2030_v41 = vmul.f32 0.03125, %v2028_v40  ;;  %v2033_v42 = vmul.f32 %v2031_v39, %v2031_v39 }
 0xef4   : > { %v2032_v43 = vsub.f32 %v2020_v32, %v2030_v41  ;;  %v2035_v44 = vsel %vm765_vm0, %v2033_v42, 0.0 }
 0xef5   : > { %2036 = vadd.xlane.f32.xlu1 %v2035_v44 }
 0xef6   : > { %v2034_v51 = vmul.f32 %v2032_v43, %v2032_v43 }
 0xef8   : > { %v2038_v45 = vsel %vm765_vm0, %v2034_v51, 0.0 }
 0xef9   : > { %2039 = vadd.xlane.f32.xlu0 %v2038_v45  ;;  %v2465_v45 = vld [vmem:[%s628_s3] ss:$0 sm:$0xff]  ;;  %s2168_s3 = scalar_lea.sflag [#allocation4], %s3443_s17 }
 0xefd   : > { %2097 = vadd.xlane.f32.xlu0 %v2096_v52 }
 0xf06   : > { %2077 = vbcast.lane.b32.xlu1 %v2075_v47, 256 }
 0xf13   : > { %2070 = vbcast.lane.b32.xlu0 %v2068_v48, 256  ;;  %v2466_v48 = vld [vmem:[%s636_s8] ss:$0 sm:$0xff]  ;;  %s3156_s8 = smov [#allocation14]  }
 0xf14   : > { %s3042_s18 = sshll.u32 %s3156_s8, 4  ;;  %s3043_s18 = int_to_ptr.vmem [resolvable:$false] %s3042_s18 }
 0xf15   : > { %s3044_s5 = scalar_lea.vmem %s3043_s18, 64  ;;  %p3045_p10 = scmp.lt.s32.totalorder %s2183_s22, %s3043_s18 }
 0xf16   : > { %p3046_p1 = scmp.lt.s32.totalorder %s3044_s5, %s3038_s13 }
 0xf18   : > { %p3047_p8 = por %p3046_p1, %p3045_p10 }
 0xf1a   : > { %p3048_p11 = pnand %p3047_p8, %p3041_p4 }
 0xf7e   : > { %v2037_v49 = vpop.xlane.xlu1 %2036 }
 0xf7f   : > { %v2041_v50 = vmul.f32 0.03125, %v2037_v49 }
 0xf81   : > { %v2043_v53 = vadd.f32 1e-12, %v2041_v50 }
 0xf82   : > { %v2040_v54 = vpop.xlane.xlu0 %2039  ;;  %v2078_v62 = vpop.permute.xlu1 %2077 }
 0xf83   : > { %2823 = vrsqrt.f32 %v2043_v53  ;;  %v2042_v55 = vmul.f32 0.03125, %v2040_v54 }
 0xf85   : > { %v2044_v56 = vadd.f32 1e-12, %v2042_v55 }
 0xf86   : > { %v2098_v13 = vpop.xlane.xlu0 %2097 }
 0xf87   : > { %2825 = vrsqrt.f32 %v2044_v56  ;;  %v2099_v36 = vmax.f32 %v2098_v13, 1e-09 }
 0xf89   : > { %2827 = vrcp.f32 %v2099_v36 }
 0xf8a   : > { %v2071_v59 = vpop.permute.xlu0 %2070 }
 0xf90   : > { %v2824_v9 = vpop.eup %2823 }
 0xf91   : > { %v2047_v57 = vmul.f32 %v2824_v9, %v2031_v39 }
 0xf93   : > { %v2055_v6 = vmul.f32 %v2463_v33, %v2047_v57 }
 0xf94   : > { %v2826_v14 = vpop.eup %2825 }
 0xf95   : > { %v2063_v60 = vadd.f32 %v2464_v18, %v2055_v6  ;;  %v2048_v22 = vmul.f32 %v2826_v14, %v2032_v43 }
 0xf96   : > { %v2828_v17 = vpop.eup %2827 }
 0xf97   : > { %v2079_v61 = vmul.f32 %v2071_v59, %v2063_v60  ;;  %v2056_v63 = vmul.f32 %v2463_v33, %v2048_v22  ;;  %v2102_v35 = vrot.slane %v2828_v17, 1 }
 0xf99   : > { %v2081_v0 = vsel %vm765_vm0, %v2079_v61, 0.0  ;;  %v2064_v1 = vadd.f32 %v2464_v18, %v2056_v63 }
 0xf9a   : > { %v2082_v2 = vrot.slane %v2081_v0, 4 }
 0xf9b   : > { %v2080_v58 = vmul.f32 %v2078_v62, %v2064_v1 }
 0xf9c   : > { %v2083_v3 = vadd.f32 %v2082_v2, %v2081_v0 }
 0xf9d   : > { %v2088_v4 = vsel %vm765_vm0, %v2080_v58, 0.0 }
 0xf9e   : > { %v2084_v5 = vrot.slane %v2083_v3, 2  ;;  %v2089_v7 = vrot.slane %v2088_v4, 4 }
 0xfa0   : > { %v2085_v8 = vadd.f32 %v2084_v5, %v2083_v3  ;;  %v2090_v10 = vadd.f32 %v2089_v7, %v2088_v4 }
 0xfa2   : > { %v2091_v11 = vrot.slane %v2090_v10, 2  ;;  %v2086_v12 = vrot.slane %v2085_v8, 1 }
 0xfa4   : > { %v2092_v15 = vadd.f32 %v2091_v11, %v2090_v10  ;;  %v2087_v20 = vadd.f32 %v2086_v12, %v2085_v8 }
 0xfa6   : > { %v2093_v19 = vrot.slane %v2092_v15, 1  ;;  %v2105_v24 = vmul.f32 %v2828_v17, %v2087_v20 }
 0xfa8   : > { %v2094_v21 = vadd.f32 %v2093_v19, %v2092_v15 }
 0xfaa   : > { %v2106_v23 = vmul.f32 %v2102_v35, %v2094_v21 }
 0xfac   : > { %v2111_v25 = vrot.slane %v2106_v23, 7 }
 0xfae   : > { %v2113_v26 = vsel %vm2112_vm5, %v2111_v25, %v2105_v24 }
 0xfaf   : > { %v2116_v27 = vsel %vm2115_vm6, %v2113_v26, 0.0 }
 0xfb0   : > { %2117 = vadd.xlane.f32.xlu1 %v2116_v27 }
0x1039   : > { %v2118_v28 = vpop.xlane.xlu1 %2117 }
0x103a   : > { %v2119_v29 = vmul.f32 0.03125, %v2118_v28 }
0x103c   : > { %v2121_v30 = vrot.slane %v2119_v29, 1  ;;  %v2124_v16 = vsub.f32 %v2105_v24, %v2119_v29 }
0x103e   : > { %v2125_v31 = vsub.f32 %v2106_v23, %v2121_v30  ;;  %v2126_v34 = vmul.f32 %v2124_v16, %v2124_v16 }
0x1040   : > { %v2127_v32 = vmul.f32 %v2125_v31, %v2125_v31 }
0x1042   : > { %v2130_v37 = vrot.slane %v2127_v32, 7 }
0x1044   : > { %v2131_v38 = vsel %vm2112_vm5, %v2130_v37, %v2126_v34 }
0x1045   : > { %v2133_v39 = vsel %vm2115_vm6, %v2131_v38, 0.0 }
0x1046   : > { %2134 = vadd.xlane.f32.xlu0 %v2133_v39 }
0x10cf   : > { %v2135_v40 = vpop.xlane.xlu0 %2134 }
0x10d0   : > { %v2136_v41 = vmul.f32 0.03125, %v2135_v40 }
0x10d2   : > { %v2137_v42 = vadd.f32 1e-07, %v2136_v41 }
0x10d4   : > { %2829 = vrsqrt.f32 %v2137_v42 }
0x10e1   : > { %v2830_v43 = vpop.eup %2829 }
0x10e2   : > { %v2140_v44 = vrot.slane %v2830_v43, 1  ;;  %v2143_v51 = vmul.f32 %v2830_v43, %v2124_v16 }
0x10e4   : > { %v2144_v52 = vmul.f32 %v2140_v44, %v2125_v31  ;;  %v2151_v46 = vmul.f32 %v2465_v45, %v2143_v51 }
0x10e6   : > { %v2152_v47 = vmul.f32 %v2465_v45, %v2144_v52  ;;  %v2159_v50 = vadd.f32 %v2466_v48, %v2151_v46 }
0x10e8   : > { %v2160_v49 = vadd.f32 %v2466_v48, %v2152_v47 }
0x10ea   : > { %v2163_v53 = vrot.slane %v2160_v49, 7 }
0x10ec   : > { %v2164_v54 = vsel %vm2112_vm5, %v2163_v53, %v2159_v50 }
0x10ed   : > { %2166 = vst.msk [vmem:[%s711_s23] sm:$0x3] %vm2115_vm6, %v2164_v54 }
0x10ee   : > { %3051 = shalt.err (!%p3048_p11)
}
0x10ef   : > { %s3052_s1 = scalar_lea.hbm %s3723_s19, 32  ;;  %s3056_s28 = scalar_lea.hbm %s3846_s20, 192 }
0x10f0   : > { %p3053_p12 = scmp.ne.s32.totalorder %s3723_s19, %s3052_s1  ;;  %p3057_p2 = scmp.lt.s32.totalorder %s3723_s19, %s3846_s20 }
0x10f1   : > { %p3058_p9 = scmp.lt.s32.totalorder %s3056_s28, %s3052_s1 }
0x10f2   : > { %p3054_p13 = pnand %p3053_p12, %p3847_p6 }
0x10f3   : > { %p3059_p3 = por %p3058_p9, %p3057_p2 }
0x10f4   : > { %p3055_p5 = pneg %p3054_p13 }
0x10f6   : > { %p3060_p0 = pnand %p3059_p3, %p3055_p5 }
0x10f8   : > { %3063 = shalt.err (!%p3060_p0)
}
0x10f9   : > { %2678 = dma.vmem_to_hbm [thread:$0]  (%p3847_p6), %s2183_s22, 32, %s3723_s19, %s2168_s3  }
0x10fa PF: > { %s3848_s6 = sld [smem:[#allocation20_spill]]  ;;  %p2717_p7 = scmp.ge.s32.totalorder %s3130_s30, 2 }
0x10fb   : > { %s3849_s16 = sld [smem:[#allocation26_spill]] }
0x1100   : > { %s2194_s14 = sand.u32 1, %s3848_s6  }
0x1101   : > { %p3850_p4 = scmp.ne.s32.totalorder %s3849_s16, 0  ;;  %s2195_s24 = scalar_lea.sflag [#allocation4], %s2194_s14 }
0x1103   : > { %p2707_p10 = pnand %p2717_p7, %p3850_p4 }
0x1105   : > { %p2708_p1 = pneg %p2707_p10 }
0x1107   : > { %3105 = dma.done.wait (%p2708_p1), %s2195_s24, 32  }
0x1108   : > { %3107 = vsyncadd (%p2708_p1), %s2195_s24, 4294967264  ;;  %s29_s30 = sadd.s32 1, %s3130_s30   ;;  %s3851_s25 = sld [smem:[#allocation21_spill]] }
0x1109   : > { %p26_p8 = scmp.ge.s32.totalorder %s29_s30, 8   ;;  %s3852_s23 = sld [smem:[#allocation28_spill]] }
0x110a   : > { %s3853_s22 = sld [smem:[#allocation27_spill]]  ;;  %s3854_s26 = smov %s3118_s27 }
0x110b   : > { %s3856_s28 = smov %s3126_s29 }
0x110c   :  { %28 = sbr.rel (!%p26_p8) target bundleno = 16 (0x10), region = 192 }
0x110f   : > { %s3855_s27 = smov %s3852_s23 }
0x1110   : > { %s3857_s29 = smov %s3853_s22 }
0x1111   :  { %2200 = vsyncpa [#allocation3], 1 }
0x1112   :  { %2202 = vsyncpa [#allocation3 + $0x1], 1 }
0x1113   :  { %2203 = vsyncpa [#allocation8], 1 }
0x1114   :  { %2204 = vsyncpa [#allocation4], 1 }
0x1115   :  { %2206 = vsyncpa [#allocation4 + $0x1], 1 }
0x1116   :  { %2207 = vsyncpa [#allocation5], 1 }
0x1117   :  { %2209 = vsyncpa [#allocation5 + $0x1], 1 }

// kernel: tpu_custom_call.1
= control target key start
LH: loop header
LB: loop body
LE: loop exit
PB: predicated region body
PF: predicated region fallthrough
CT: control target
= control target key end

     0   :  { %s3766_s0 = inlined_call_operand.vmem [shape: f32[6,3], index: 0, kind: input, shape index: {}]   ;;  %s3767_s1 = inlined_call_operand.hbm [shape: bf16[3,2,8,32], index: 1, kind: input, shape index: {}]   ;;  %s3768_s2 = inlined_call_operand.hbm [shape: f32[2,8], index: 2, kind: input, shape index: {}]   ;;  %s3769_s3 = inlined_call_operand.vmem [shape: f32[6,1,32], index: 3, kind: input, shape index: {}]   ;;  %s3770_s4 = inlined_call_operand.vmem [shape: f32[6,1,32], index: 4, kind: input, shape index: {}]   ;;  %s3771_s5 = inlined_call_operand.hbm [shape: bf16[6,32,96], index: 5, kind: input, shape index: {}]   ;;  %s3772_s6 = inlined_call_operand.vmem [shape: f32[6,1,96], index: 6, kind: input, shape index: {}]   ;;  %s3773_s7 = inlined_call_operand.hbm [shape: bf16[6,32,32], index: 7, kind: input, shape index: {}]   ;;  %s3774_s8 = inlined_call_operand.vmem [shape: f32[6,1,32], index: 8, kind: input, shape index: {}]   ;;  %s3775_s9 = inlined_call_operand.hbm [shape: f32[6,1,32], index: 9, kind: input, shape index: {}]   ;;  %s3776_s10 = inlined_call_operand.vmem [shape: f32[6,1,32], index: 10, kind: input, shape index: {}]   ;;  %s3777_s11 = inlined_call_operand.hbm [shape: f32[6,1,32], index: 11, kind: input, shape index: {}]   ;;  %s3778_s12 = inlined_call_operand.hbm [shape: f32[6,1,32], index: 12, kind: input, shape index: {}]   ;;  %s3779_s13 = inlined_call_operand.hbm [shape: f32[6,2,32], index: 13, kind: output, shape index: {}]  }
   0x1   :  { %3798 = sst [smem:[#allocation29_spill]] %s3767_s1 }
   0x2   :  { %3799 = sst [smem:[#allocation30_spill]] %s3769_s3 }
   0x3   :  { %3800 = sst [smem:[#allocation31_spill]] %s3770_s4 }
   0x4   :  { %3801 = sst [smem:[#allocation32_spill]] %s3771_s5 }
   0x5   :  { %3802 = sst [smem:[#allocation33_spill]] %s3772_s6 }
   0x6   :  { %3803 = sst [smem:[#allocation34_spill]] %s3774_s8 }
   0x7   :  { %3804 = sst [smem:[#allocation35_spill]] %s3776_s10 }
   0x8   :  { %3805 = sst [smem:[#allocation36_spill]] %s3779_s13 }
   0x9   :  { %18 = vsyncpa [#allocation5], 0 }
   0xa   :  { %19 = vsyncpa [#allocation3], 0 }
   0xb   :  { %20 = vsyncpa [#allocation8], 0 }
   0xc   :  { %21 = vsyncpa [#allocation4], 0 }
   0xd   :  { %23 = vsyncpa [#allocation4 + $0x1], 0  ;;  %s3227_s25 = smov 0   ;;  %s3229_s26 = smov 0  }
   0xe   :  { %s3231_s27 = smov 0   ;;  %s3233_s28 = smov 0  }
   0xf   :  { %s3235_s29 = smov 0   ;;  %s3237_s30 = smov 0  }
  0x10 LB: > { %3806 = sst [smem:[#allocation20_spill]] %s3110_s25  ;;  %s3258_s14 = sadd.s32 4294967295, %s3130_s30   ;;  %s3130_s30 = sphi %s3237_s30, %s29_s30   ;;  %s3126_s29 = sphi %s3235_s29, %s3857_s29   ;;  %s3122_s28 = sphi %s3233_s28, %s3856_s28   ;;  %s3118_s27 = sphi %s3231_s27, %s3855_s27   ;;  %s3114_s26 = sphi %s3229_s26, %s3854_s26   ;;  %s3110_s25 = sphi %s3227_s25, %s3851_s25  }
  0x11   : > { %3807 = sst [smem:[#allocation21_spill]] %s3114_s26  ;;  %s2413_s15 = sadd.s32 4294967294, %s3130_s30  }
  0x12   : > { %3808 = sst [smem:[#allocation22_spill]] %s3122_s28  ;;  %p180_p0 = scmp.ne.s32.totalorder %s3118_s27, %s3114_s26 }
  0x13   : > { %3809 = sst [smem:[#allocation23_spill]] %s3258_s14  ;;  %p181_p1 = scmp.eq.s32.totalorder %s3130_s30, 0 }
  0x14   : > { %p186_p2 = scmp.ne.s32.totalorder %s3114_s26, %s3110_s25  ;;  %p3781_p3 = scmp.eq.s32.totalorder %s3258_s14, 0 }
  0x15   : > { %p394_p4 = scmp.eq.s32.totalorder %s3258_s14, 5  ;;  %p3269_p5 = por %p181_p1, %p180_p0 }
  0x16   : > { %p400_p6 = scmp.eq.s32.totalorder %s2413_s15, 5  ;;  %p3275_p7 = por %p3781_p3, %p186_p2 }
  0x17   : > { %p3279_p8 = por %p394_p4, %p180_p0  ;;  %p2414_p10 = scmp.ge.s32.totalorder %s3130_s30, 1 }
  0x18   : > { %s3811_s18 = scalar_select %p3275_p7, 1, 0 }
  0x19   : > { %s3813_s19 = scalar_select %p3279_p8, 1, 0 }
  0x1a   : > { %3812 = sst [smem:[#allocation24_spill]] %s3811_s18  ;;  %p3283_p9 = por %p400_p6, %p186_p2 }
  0x1b   : > { %3814 = sst [smem:[#allocation25_spill]] %s3813_s19  ;;  %p407_p11 = scmp.lt.s32.totalorder %s3130_s30, 7 }
  0x1c   : > { %s3815_s20 = scalar_select %p3283_p9, 1, 0 }
  0x1d   : > { %p3289_p12 = pnand %p2414_p10, %p407_p11  ;;  %s3132_s22 = smov [#allocation6]  }
  0x1e   : > { %3816 = sst [smem:[#allocation26_spill]] %s3815_s20  ;;  %s433_s23 = sshll.u32 %s3132_s22, 4  ;;  %s434_s23 = int_to_ptr.vmem [resolvable:$true] %s433_s23 }
  0x1f   : > { %s3817_s21 = scalar_select %p3289_p12, 1, 0 }
  0x20   : > { %p2680_p13 = pneg %p3289_p12  ;;  %p2713_p0 = scmp.lt.s32.totalorder %s3130_s30, 6 }
  0x21   : > { %s38_s16 = sadd.s32 1, %s3126_s29  ;;  %s2842_s22 = scalar_lea.vmem %s434_s23, 384 }
  0x22   : > { %p3298_p1 = pnand %p2680_p13, %p3781_p3  ;;  %p3304_p2 = pnand %p2713_p0, %p3269_p5 }
  0x23   : > { %p3309_p4 = scmp.ge.s32.totalorder %s38_s16, 6  ;;  %p2843_p10 = scmp.ne.s32.totalorder %s434_s23, %s2842_s22 }
  0x24   : > { %p2833_p6 = pneg %p3298_p1  ;;  %p2850_p3 = scmp.lt.s32.totalorder %s434_s23, %s434_s23 }
  0x25   : > { %p2851_p9 = scmp.lt.s32.totalorder %s2842_s22, %s2842_s22 }
  0x26   : > { %p2845_p11 = pnand %p2843_p10, %p2833_p6 }
  0x27   : > { %p2852_p8 = por %p2851_p9, %p2850_p3 }
  0x28   : > { %p2846_p13 = pneg %p2845_p11 }
  0x2a   : > { %p2853_p5 = pnand %p2852_p8, %p2846_p13 }
  0x2c   : > { %2856 = shalt.err (!%p2853_p5)
}
  0x2d   : > { %s3793_s17 = smov 64   ;;  %s3134_s25 = smov 4  }
  0x2e   : > { %s3821_s1 = sld [smem:[#allocation29_spill]]  ;;  %s472_s19 = sand.u32 1, %s3130_s30  }
  0x2f   : > { %s3859_s16 = smov (%p3309_p4, %s38_s16), 0  ;;  %s3332_s10 = sand.u32 1, %s3118_s27  }
  0x30   : > { %3822 = sst [smem:[#allocation27_spill]] %s3859_s16  ;;  %s170_s8 = ssub.s32 %s3126_s29, %s3859_s16 }
  0x31   : > { %s2419_s6 = sshll.u32 %s3332_s10, 4  ;;  %p171_p3 = scmp.eq.s32.totalorder %s170_s8, 0 }
  0x32   : > { %s2471_s4 = sshll.u32 %s3126_s29, 8  ;;  %s476_s3 = scalar_lea.vmem [#allocation9], %s2419_s6 }
  0x33   : > { %s483_s28 = sshll.u32 %s476_s3, 4  ;;  %s3823_s18 = sadd.s32 1, %s3118_s27  ;;  %s484_s28 = int_to_ptr.vmem [resolvable:$true] %s483_s28 }
  0x34   : > { %2686 = dma.hbm_to_vmem [thread:$0]  (!%p3298_p1), %s3821_s1, 384, %s434_s23, [#allocation3], %s3793_s17, %s3793_s17, %s3134_s25  }
  0x35   : > { %s3341_s26 = scalar_select %p171_p3, %s3118_s27, %s3823_s18  }
  0x36   : > { %s3825_s5 = sld [smem:[#allocation32_spill]]  ;;  %s3346_s20 = scalar_lea.sflag [#allocation3], %s472_s19 }
  0x37   : > { %3824 = sst [smem:[#allocation28_spill]] %s3341_s26  ;;  %p3350_p8 = pneg %p3304_p2 }
  0x38   : > { %s2870_s8 = scalar_lea.vmem %s484_s28, 256  ;;  %s3135_s3 = smov [#allocation9]  }
  0x39   : > { %p2871_p9 = scmp.ne.s32.totalorder %s484_s28, %s2870_s8  ;;  %s2875_s18 = sshll.u32 %s3135_s3, 4  ;;  %s2876_s18 = int_to_ptr.vmem [resolvable:$false] %s2875_s18 }
  0x3a   : > { %s2877_s17 = scalar_lea.vmem %s2876_s18, 512  ;;  %p2878_p10 = scmp.lt.s32.totalorder %s484_s28, %s2876_s18 }
  0x3b   : > { %p2873_p0 = pnand %p2871_p9, %p3350_p8  ;;  %p2879_p11 = scmp.lt.s32.totalorder %s2877_s17, %s2870_s8 }
  0x3c   : > { %s482_s23 = scalar_lea.hbm %s3825_s5, %s2471_s4 }
  0x3d   : > { %p2874_p4 = pneg %p2873_p0  ;;  %p2880_p13 = por %p2879_p11, %p2878_p10 }
  0x3f   : > { %p2881_p5 = pnand %p2880_p13, %p2874_p4 }
  0x41   : > { %2884 = shalt.err (!%p2881_p5)
}
  0x42   : > { %s3827_s14 = smov 64   ;;  %s509_s3 = scalar_lea.hbm %s3773_s7, %s2471_s4 }
  0x43   : > { %2693 = dma.hbm_to_vmem [thread:$0]  (!%p3304_p2), %s482_s23, 256, %s484_s28, %s3346_s20, %s3827_s14, %s3827_s14, %s3134_s25  }
  0x44   : > { %s503_s1 = scalar_lea.vmem [#allocation10], %s2419_s6  ;;  %s3366_s17 = sshll.u32 %s3126_s29, 4 }
  0x45   : > { %s510_s5 = sshll.u32 %s503_s1, 4  ;;  %s3136_s18 = smov [#allocation10]   ;;  %s511_s5 = int_to_ptr.vmem [resolvable:$true] %s510_s5 }
  0x46   : > { %s2898_s8 = scalar_lea.vmem %s511_s5, 256  ;;  %s2903_s16 = sshll.u32 %s3136_s18, 4  ;;  %s2904_s16 = int_to_ptr.vmem [resolvable:$false] %s2903_s16 }
  0x47   : > { %p2899_p3 = scmp.ne.s32.totalorder %s511_s5, %s2898_s8  ;;  %s2905_s26 = scalar_lea.vmem %s2904_s16, 512 }
  0x48   : > { %p2906_p4 = scmp.lt.s32.totalorder %s511_s5, %s2904_s16  ;;  %p2907_p10 = scmp.lt.s32.totalorder %s2905_s26, %s2898_s8 }
  0x49   : > { %p2901_p9 = pnand %p2899_p3, %p3350_p8 }
  0x4a   : > { %p2908_p11 = por %p2907_p10, %p2906_p4 }
  0x4b   : > { %p2902_p0 = pneg %p2901_p9 }
  0x4d   : > { %p2909_p13 = pnand %p2908_p11, %p2902_p0 }
  0x4f   : > { %2912 = shalt.err (!%p2909_p13)
}
  0x50   : > { %2696 = dma.hbm_to_vmem [thread:$0]  (!%p3304_p2), %s509_s3, 256, %s511_s5, %s3346_s20, %s3827_s14, %s3827_s14, %s3134_s25  }
  0x51   : > { %s534_s6 = scalar_lea.hbm %s3775_s9, %s3366_s17  ;;  %s529_s28 = scalar_lea.vmem [#allocation11], %s3332_s10 }
  0x52   : > { %s536_s16 = sshll.u32 %s529_s28, 4  ;;  %s3137_s23 = smov [#allocation11]   ;;  %s537_s16 = int_to_ptr.vmem [resolvable:$true] %s536_s16 }
  0x53   : > { %s2926_s26 = scalar_lea.vmem %s537_s16, 16  ;;  %s2931_s19 = sshll.u32 %s3137_s23, 4  ;;  %s2932_s19 = int_to_ptr.vmem [resolvable:$false] %s2931_s19 }
  0x54   : > { %p2927_p5 = scmp.ne.s32.totalorder %s537_s16, %s2926_s26  ;;  %s2933_s13 = scalar_lea.vmem %s2932_s19, 32 }
  0x55   : > { %p2934_p0 = scmp.lt.s32.totalorder %s537_s16, %s2932_s19  ;;  %p2935_p4 = scmp.lt.s32.totalorder %s2933_s13, %s2926_s26 }
  0x56   : > { %p2929_p3 = pnand %p2927_p5, %p3350_p8 }
  0x57   : > { %p2936_p10 = por %p2935_p4, %p2934_p0 }
  0x58   : > { %p2930_p9 = pneg %p2929_p3 }
  0x5a   : > { %p2937_p11 = pnand %p2936_p10, %p2930_p9 }
  0x5c   : > { %2940 = shalt.err (!%p2937_p11)
}
  0x5d   : > { %2699 = dma.hbm_to_vmem [thread:$0]  (!%p3304_p2), %s534_s6, 16, %s537_s16, %s3346_s20  }
  0x5e   : > { %s557_s14 = scalar_lea.hbm %s3777_s11, %s3366_s17  ;;  %s552_s3 = scalar_lea.vmem [#allocation12], %s3332_s10 }
  0x5f   : > { %s559_s8 = sshll.u32 %s552_s3, 4  ;;  %s3138_s1 = smov [#allocation12]   ;;  %s560_s8 = int_to_ptr.vmem [resolvable:$true] %s559_s8 }
  0x60   : > { %s2954_s18 = scalar_lea.vmem %s560_s8, 16  ;;  %s2959_s4 = sshll.u32 %s3138_s1, 4  ;;  %s2960_s4 = int_to_ptr.vmem [resolvable:$false] %s2959_s4 }
  0x61   : > { %p2955_p13 = scmp.ne.s32.totalorder %s560_s8, %s2954_s18  ;;  %s2961_s28 = scalar_lea.vmem %s2960_s4, 32 }
  0x62   : > { %p2962_p9 = scmp.lt.s32.totalorder %s560_s8, %s2960_s4  ;;  %p2963_p0 = scmp.lt.s32.totalorder %s2961_s28, %s2954_s18 }
  0x63   : > { %p2957_p5 = pnand %p2955_p13, %p3350_p8 }
  0x64   : > { %p2964_p4 = por %p2963_p0, %p2962_p9 }
  0x65   : > { %p2958_p3 = pneg %p2957_p5 }
  0x67   : > { %p2965_p10 = pnand %p2964_p4, %p2958_p3 }
  0x69   : > { %2968 = shalt.err (!%p2965_p10)
}
  0x6a   : > { %2702 = dma.hbm_to_vmem [thread:$0]  (!%p3304_p2), %s557_s14, 16, %s560_s8, %s3346_s20  }
  0x6b   : > { %s420_s26 = sshll.u32 %s3766_s0, 4  ;;  %s421_s26 = int_to_ptr.vmem [resolvable:$true] %s420_s26 }
  0x6c   : > { %s2969_s23 = scalar_lea.vmem %s421_s26, 128  ;;  %p2977_p7 = scmp.lt.s32.totalorder %s421_s26, %s421_s26 }
  0x6d   : > { %p2970_p11 = scmp.ne.s32.totalorder %s421_s26, %s2969_s23  ;;  %p2978_p9 = scmp.lt.s32.totalorder %s2969_s23, %s2969_s23 }
  0x6f   : > { %p2972_p13 = pnand %p2970_p11, %p2833_p6  ;;  %p2979_p3 = por %p2978_p9, %p2977_p7 }
  0x71   : > { %p2973_p5 = pneg %p2972_p13 }
  0x73   : > { %p2980_p0 = pnand %p2979_p3, %p2973_p5 }
  0x75   : > { %2983 = shalt.err (!%p2980_p0)
}
  0x76   : > { %s3139_s19 = smov [#allocation2]   ;;  %s3140_s13 = smov [#allocation7]  }
  0x77   : > { %2683 = dma.vmem_to_smem (!%p3298_p1), %s421_s26, 128, %s3139_s19, [#allocation5]  }
  0x78   : > { %s449_s5 = sshll.u32 %s3140_s13, 4  ;;  %s574_s3 = scalar_lea.hbm %s3778_s12, %s3366_s17  ;;  %s450_s5 = int_to_ptr.vmem [resolvable:$true] %s449_s5 }
  0x79   : > { %s569_s8 = scalar_lea.vmem [#allocation13], %s3332_s10  ;;  %s2995_s1 = scalar_lea.vmem %s450_s5, 32 }
  0x7a   : > { %s576_s18 = sshll.u32 %s569_s8, 4  ;;  %p2996_p7 = scmp.ne.s32.totalorder %s450_s5, %s2995_s1  ;;  %s577_s18 = int_to_ptr.vmem [resolvable:$true] %s576_s18 }
  0x7b   : > { %p3003_p11 = scmp.lt.s32.totalorder %s450_s5, %s450_s5  ;;  %p3004_p13 = scmp.lt.s32.totalorder %s2995_s1, %s2995_s1 }
  0x7c   : > { %p2998_p4 = pnand %p2996_p7, %p2833_p6 }
  0x7d   : > { %p3005_p5 = por %p3004_p13, %p3003_p11 }
  0x7e   : > { %p2999_p10 = pneg %p2998_p4 }
  0x80   : > { %p3006_p9 = pnand %p3005_p5, %p2999_p10 }
  0x82   : > { %3009 = shalt.err (!%p3006_p9)
}
  0x83   : > { %2689 = dma.hbm_to_vmem [thread:$0]  (!%p3298_p1), %s3768_s2, 32, %s450_s5, [#allocation8]  }
  0x84   : > { %s3023_s10 = scalar_lea.vmem %s577_s18, 16  ;;  %s3141_s6 = smov [#allocation13]  }
  0x85   : > { %p3024_p3 = scmp.ne.s32.totalorder %s577_s18, %s3023_s10  ;;  %s3028_s16 = sshll.u32 %s3141_s6, 4  ;;  %s3029_s16 = int_to_ptr.vmem [resolvable:$false] %s3028_s16 }
  0x86   : > { %s3030_s26 = scalar_lea.vmem %s3029_s16, 32  ;;  %p3031_p6 = scmp.lt.s32.totalorder %s577_s18, %s3029_s16 }
  0x87   : > { %p3026_p0 = pnand %p3024_p3, %p3350_p8  ;;  %p3032_p7 = scmp.lt.s32.totalorder %s3030_s26, %s3023_s10 }
  0x89   : > { %p3027_p12 = pneg %p3026_p0  ;;  %p3033_p4 = por %p3032_p7, %p3031_p6 }
  0x8b   : > { %p3034_p10 = pnand %p3033_p4, %p3027_p12 }
  0x8d   : > { %3037 = shalt.err (!%p3034_p10)
}
  0x8e   : > { %2705 = dma.hbm_to_vmem [thread:$0]  (!%p3304_p2), %s574_s3, 16, %s577_s18, %s3346_s20  }
  0x8f   : > { %p3828_p1 = scmp.ne.s32.totalorder %s3817_s21, 0 }
  0x90   : > { %s3829_s22 = sld [smem:[#allocation23_spill]] (!%p3828_p1) }
  0x91   : > { %585 = sbr.rel (%p3828_p1) target bundleno = 4346 (0x10fa), region = 72 }
  0x96   : > { %p3830_p8 = scmp.eq.s32.totalorder %s3829_s22, 0 }
  0x98   : > { %3089 = dma.done.wait (%p3830_p8), [#allocation5], 128   ;;  %p3831_p11 = pmov %p3830_p8 }
  0x99   : > { %p3832_p12 = pmov %p3830_p8 }
  0x9a   : > { %3091 = vsyncadd (%p3831_p11), [#allocation5], 4294967168 }
  0x9b   : > { %3093 = dma.done.wait (%p3832_p12), [#allocation3], 384   ;;  %p3833_p13 = pmov %p3830_p8 }
  0x9c   : > { %p3834_p5 = pmov %p3830_p8 }
  0x9d   : > { %3095 = vsyncadd (%p3833_p13), [#allocation3], 4294966912 }
  0x9e   : > { %3097 = dma.done.wait (%p3834_p5), [#allocation8], 32   ;;  %p3835_p2 = pmov %p3834_p5 }
  0x9f   : > { %s3836_s21 = sld [smem:[#allocation21_spill]]  ;;  %s599_s20 = sand.u32 1, %s3829_s22  }
  0xa0   : > { %3099 = vsyncadd (%p3835_p2), [#allocation8], 4294967264  ;;  %s3837_s15 = sld [smem:[#allocation24_spill]]  ;;  %s600_s13 = scalar_lea.sflag [#allocation3], %s599_s20 }
  0xa5   : > { %s3443_s17 = sand.u32 1, %s3836_s21  }
  0xa6   : > { %s2432_s19 = sshll.u32 %s3443_s17, 4  ;;  %p3838_p9 = scmp.ne.s32.totalorder %s3837_s15, 0 }
  0xa7   : > { %s3446_s5 = scalar_lea.vmem [#allocation9], %s2432_s19 }
  0xa8   : > { %3101 = dma.done.wait (%p3838_p9), %s600_s13, 560  }
  0xa9   : > { %3103 = vsyncadd (%p3838_p9), %s600_s13, 4294966736  ;;  %s3452_s25 = scalar_lea.vmem [#allocation10], %s2432_s19  ;;  %s620_s14 = scalar_lea.vmem [#allocation11], %s3443_s17 }
  0xaa   : > { %s628_s3 = scalar_lea.vmem [#allocation12], %s3443_s17  ;;  %s636_s8 = scalar_lea.vmem [#allocation13], %s3443_s17 }
  0xab   : > { %641 = sfence }
  0xac   : > { %s3839_s18 = sld [smem:[#allocation22_spill]]  ;;  %v2474_v0 = vld [vmem:[#allocation6] sm:$0xff]   ;;  %v2478_v1 = vld [vmem:[#allocation6 + $0x8] sm:$0xff]   ;;  %v2482_v2 = vld [vmem:[#allocation6 + $0x10] sm:$0xff]   ;;  %vm765_vm0 = vcmask 261120   ;;  %v3142_v35 = vmov 0.0  }
  0xad   : > { %v2475_v3 = vunpack.c.l.bf16 %v2474_v0  ;;  %v2476_v4 = vunpack.c.h.bf16 %v2474_v0  ;;  %v2479_v5 = vunpack.c.l.bf16 %v2478_v1  ;;  %v2480_v6 = vunpack.c.h.bf16 %v2478_v1  ;;  %v2785_v34 = vld [vmem:[%s3446_s5 + $0x8] sm:$0xff]   ;;  %2528 = vmatprep.subr.bf16.mxu0 %v3142_v35  ;;  %v2786_v36 = vld [vmem:[%s3446_s5] sm:$0xff]   ;;  %2536 = vmatprep.subr.bf16.mxu1 %v3142_v35  ;;  %s3840_s22 = sld [smem:[#allocation30_spill]]  ;;  %s3148_s24 = smov 120  }
  0xae   : > { %v2483_v7 = vunpack.c.l.bf16 %v2482_v2  ;;  %v2484_v8 = vunpack.c.h.bf16 %v2482_v2  ;;  %vm3143_vm1 = vmmov 0   ;;  %2529 = vmatpush3.bf16.msra.mxu0 %v2785_v34  ;;  %s3841_s19 = sld [smem:[#allocation31_spill]]  ;;  %vm911_vm2 = vcmask 64512   ;;  %s3149_s23 = smov 56  }
  0xaf   : > { %2532 = vmatprep.mubr.msk.bf16.mxu0 %vm3143_vm1, %v3142_v35  ;;  %2530 = vmatprep.subr.bf16.mxu0 %v3142_v35  ;;  %vm1050_vm3 = vcmask 1043456   ;;  %s3152_s15 = smov 48   ;;  %s3153_s20 = smov 72   ;;  %vm2095_vm4 = vcmask 58368   ;;  %vm2112_vm5 = vcmask 1041409   ;;  %vm2115_vm6 = vcmask 254976  }
  0xb0   : > { %2538 = vmatprep.mubr.msk.bf16.mxu1 %vm3143_vm1, %v3142_v35 }
  0xb2   : > { %s2435_s1 = sshll.u32 %s3839_s18, 7  ;;  %2531 = vmatpush3.bf16.msra.mxu0 %v2786_v36  ;;  %p713_p3 = scmp.lt.s32.totalorder %s3839_s18, 5 }
  0xb3   : > { %s731_s4 = sld [smem:[#allocation2 + %s2435_s1]]  ;;  %s739_s28 = sadd.s32 1, %s2435_s1  ;;  %2542 = vmatprep.subr.bf16.mxu0 %v3142_v35 }
  0xb4   : > { %s740_s10 = sld [smem:[#allocation2 + %s739_s28]]  ;;  %s751_s6 = sadd.s32 2, %s2435_s1 }
  0xb5   : > { %s752_s16 = sld [smem:[#allocation2 + %s751_s6]]  ;;  %s3146_s6 = smov 64  }
  0xb6   : > { %s3474_s26 = scalar_select %p713_p3, %s3839_s18, 5 }
  0xb8   : > { %s715_s21 = scalar_lea.vmem %s3840_s22, %s3474_s26  ;;  %s718_s13 = scalar_lea.vmem %s3841_s19, %s3474_s26 }
  0xb9   : > { %v736_v9 = vstv %s731_s4  ;;  %v2436_v45 = vld [vmem:[%s715_s21] ss:$0 sm:$0xff]  ;;  %s3842_s4 = sld [smem:[#allocation33_spill]]  ;;  %s3150_s22 = smov 80  }
  0xba   : > { %v737_v10 = vmul.f32 %v2475_v3, %v736_v9  ;;  %v746_v11 = vstv %s740_s10  ;;  %v738_v12 = vmul.f32 %v2476_v4, %v736_v9  ;;  %v2437_v49 = vld [vmem:[%s718_s13] ss:$0 sm:$0xff]  ;;  %s3144_s10 = smov 96   ;;  %v3145_v3 = vmov 1966171168   ;;  %s3151_s21 = smov 112  }
  0xbb   : > { %v747_v13 = vmul.f32 %v2479_v5, %v746_v11  ;;  %v758_v14 = vstv %s752_s16  ;;  %v748_v15 = vmul.f32 %v2480_v6, %v746_v11  ;;  %v881_v4 = vunpack.c.l.s4 %v3145_v3  ;;  %v3515_v6 = vld [vmem:[#allocation7] sm:$0x3]  ;;  %s3147_s16 = smov 88   ;;  %s3154_s19 = smov 104  }
  0xbc   : > { %v759_v16 = vmul.f32 %v2483_v7, %v758_v14  ;;  %v760_v17 = vmul.f32 %v2484_v8, %v758_v14  ;;  %v883_v5 = vlaneseq  ;;  %v877_v7 = vsub.f32 1.0, %v3515_v6  ;;  %s3155_s13 = smov 40  }
  0xbd   : > { %v749_v18 = vadd.f32 %v747_v13, %v737_v10  ;;  %v750_v19 = vadd.f32 %v748_v15, %v738_v12  ;;  %v882_v8 = vunpack.c.0.s8 %v881_v4 }
  0xbe   : > { %v3518_v9 = vshrl.u32 %v883_v5, 7  ;;  %v878_v10 = vmul.f32 -10000.0, %v877_v7 }
  0xbf   : > { %v761_v20 = vadd.f32 %v759_v16, %v749_v18  ;;  %v762_v21 = vadd.f32 %v760_v17, %v750_v19  ;;  %s721_s28 = scalar_lea.vmem %s3842_s4, %s3474_s26  ;;  %s3843_s4 = sld [smem:[#allocation34_spill]] }
  0xc0   : > { %v2438_v54 = vld [vmem:[%s721_s28] ss:$0 sm:$0xff]  ;;  %v885_v11 = vsub.s32 %v882_v8, %v3518_v9  ;;  %v3522_v14 = vsub.s32 0, %v3518_v9 }
  0xc1   : > { %v766_v22 = vsel %vm765_vm0, %v761_v20, 0.0  ;;  %v769_v23 = vsel %vm765_vm0, %v762_v21, 0.0 }
  0xc2   : > { %767 = vadd.xlane.f32.xlu0 %v766_v22  ;;  %v886_v12 = vrot.slane %v878_v10, %v885_v11 }
  0xc4   : > { %v894_v13 = vrot.slane %v886_v12, %v885_v11  ;;  %v887_v15 = vcombine.high %v886_v12, %v886_v12 }
  0xc5   : > { %s724_s28 = scalar_lea.vmem %s3843_s4, %s3474_s26 }
  0xc6   : > { %770 = vadd.xlane.f32.xlu0 %v769_v23  ;;  %v3525_v16 = vrot.slane %v894_v13, %v3522_v14  ;;  %v901_v17 = vrot.slane %v887_v15, %v885_v11 }
  0xc8   : > { %v3529_v22 = vrot.slane %v901_v17, %v3522_v14 }
 0x14b   : > { %v768_v24 = vpop.xlane.xlu0 %767 }
 0x14c   : > { %v773_v25 = vmul.f32 0.03125, %v768_v24 }
 0x14e   : > { %v775_v26 = vsub.f32 %v761_v20, %v773_v25 }
 0x14f   : > { %v771_v27 = vpop.xlane.xlu0 %770 }
 0x150   : > { %v774_v28 = vmul.f32 0.03125, %v771_v27  ;;  %v777_v29 = vmul.f32 %v775_v26, %v775_v26 }
 0x152   : > { %v776_v30 = vsub.f32 %v762_v21, %v774_v28  ;;  %v779_v31 = vsel %vm765_vm0, %v777_v29, 0.0 }
 0x153   : > { %780 = vadd.xlane.f32.xlu1 %v779_v31 }
 0x154   : > { %v778_v32 = vmul.f32 %v776_v30, %v776_v30 }
 0x156   : > { %v782_v33 = vsel %vm765_vm0, %v778_v32, 0.0 }
 0x157   : > { %783 = vadd.xlane.f32.xlu1 %v782_v33 }
 0x1dc   : > { %v781_v37 = vpop.xlane.xlu1 %780 }
 0x1dd   : > { %v785_v38 = vmul.f32 0.03125, %v781_v37 }
 0x1df   : > { %v787_v39 = vadd.f32 1e-07, %v785_v38 }
 0x1e0   : > { %v784_v40 = vpop.xlane.xlu1 %783 }
 0x1e1   : > { %2787 = vrsqrt.f32 %v787_v39  ;;  %v786_v41 = vmul.f32 0.03125, %v784_v40 }
 0x1e3   : > { %v788_v42 = vadd.f32 1e-07, %v786_v41 }
 0x1e5   : > { %2789 = vrsqrt.f32 %v788_v42 }
 0x1ee   : > { %v2788_v43 = vpop.eup %2787 }
 0x1ef   : > { %v791_v44 = vmul.f32 %v2788_v43, %v775_v26 }
 0x1f1   : > { %v799_v48 = vmul.f32 %v2436_v45, %v791_v44 }
 0x1f2   : > { %v2790_v46 = vpop.eup %2789 }
 0x1f3   : > { %v792_v47 = vmul.f32 %v2790_v46, %v776_v30  ;;  %v3484_v51 = vadd.f32 %v2437_v49, %v799_v48 }
 0x1f5   : > { %v800_v50 = vmul.f32 %v2436_v45, %v792_v47 }
 0x1f7   : > { %v3486_v52 = vadd.f32 %v2437_v49, %v800_v50 }
 0x1f9   : > { %v809_v53 = vpack.c.bf16 %v3486_v52, %v3484_v51 }
 0x1fb   : > { %2533 = vmatmul.mubr.msk.bf16.vlgmr.msra.gmra.mxu0 %vm765_vm0, %v809_v53 }
 0x1fc   : > { %2544 = vmatprep.mubr.msk.bf16.mxu0 %vm3143_vm1, %v3142_v35 }
 0x2bb   : > { %v870_v55 = vpop.f32.mrf.mxu0 }
 0x2bc   : > { %v871_v56 = vadd.f32 %v2438_v54, %v870_v55 }
 0x2bd   : > { %v2534_v57 = vpop.f32.mrf.mxu0 }
 0x2be   : > { %v3497_v58 = vpack.c.bf16 %v871_v56, %v871_v56 }
 0x2bf   : > { %v873_v59 = vpop.f32.mrf.mxu0 }
 0x2c0   : > { %v874_v60 = vadd.f32 %v2438_v54, %v873_v59  ;;  %909 = vrot.lane.b32.xlu0 %v3497_v58, %s3144_s10 }
 0x2c1   : > { %v2535_v61 = vpop.f32.mrf.mxu0 }
 0x2c2   : > { %v3500_v62 = vpack.c.bf16 %v874_v60, %v874_v60 }
 0x2c4   : > { %959 = vrot.lane.b32.xlu1 %v3500_v62, %s3144_s10 }
 0x332   : > { %v910_v63 = vpop.permute.xlu0 %909 }
 0x333   : > { %v916_v0 = vsel %vm911_vm2, %v910_v63, 0 }
 0x334   : > { %2537 = vmatpush3.bf16.xpose.msra.mxu1 %v916_v0 }
 0x335   : > { %2548 = vmatprep.subr.bf16.mxu1 %v3142_v35 }
 0x336   : > { %v960_v1 = vpop.permute.xlu1 %959 }
 0x337   : > { %v965_v2 = vsel %vm911_vm2, %v960_v1, 0 }
 0x338   : > { %2543 = vmatpush3.bf16.xpose.msra.mxu0 %v965_v2 }
 0x339   : > { %2554 = vmatprep.subr.bf16.mxu0 %v3142_v35 }
 0x33b   : > { %2539 = vmatmul.mubr.msk.bf16.vlgmr.msra.gmra.mxu1 %vm911_vm2, %v3497_v58 }
 0x33c   : > { %2550 = vmatprep.mubr.msk.bf16.mxu1 %vm3143_vm1, %v3142_v35 }
 0x33f   : > { %2545 = vmatmul.mubr.msk.bf16.vlgmr.msra.gmra.mxu0 %vm911_vm2, %v3500_v62 }
 0x340   : > { %2556 = vmatprep.mubr.msk.bf16.mxu0 %vm3143_vm1, %v3142_v35 }
 0x3fb   : > { %v952_v18 = vpop.f32.mrf.mxu1 }
 0x3fc   : > { %v1007_v19 = vmul.f32 0.35355338, %v952_v18 }
 0x3fd   : > { %v2540_v20 = vpop.f32.mrf.mxu1 }
 0x3fe   : > { %v1019_v21 = vadd.f32 %v3525_v16, %v1007_v19 }
 0x3ff   : > { %v955_v23 = vpop.f32.mrf.mxu1  ;;  %v1001_v24 = vpop.f32.mrf.mxu0 }
 0x400   : > { %v1008_v25 = vmul.f32 0.35355338, %v1001_v24  ;;  %v1021_v26 = vsel %vm911_vm2, %v1019_v21, -inf }
 0x401   : > { %v2541_v27 = vpop.f32.mrf.mxu1  ;;  %1022 = vmax.xlane.f32.xlu1 %v1021_v26  ;;  %v2546_v28 = vpop.f32.mrf.mxu0 }
 0x402   : > { %v1020_v29 = vadd.f32 %v3529_v22, %v1008_v25 }
 0x403   : > { %v1004_v30 = vpop.f32.mrf.mxu0 }
 0x404   : > { %v1024_v31 = vsel %vm911_vm2, %v1020_v29, -inf }
 0x405   : > { %1025 = vmax.xlane.f32.xlu0 %v1024_v31  ;;  %v2547_v32 = vpop.f32.mrf.mxu0 }
 0x412   : > { %1094 = vrot.lane.b32.xlu1 %v3500_v62, %s3146_s6 }
 0x416   : > { %1145 = vrot.lane.b32.xlu1 %v3497_v58, %s3147_s16 }
 0x48a   : > { %v1023_v33 = vpop.xlane.xlu1 %1022 }
 0x48b   : > { %v1027_v34 = vsub.f32 %v1019_v21, %v1023_v33 }
 0x48d   : > { %v1029_v36 = vmul.f32 1.442695, %v1027_v34 }
 0x48e   : > { %v1095_v37 = vpop.permute.xlu1 %1094  ;;  %v1026_v38 = vpop.xlane.xlu0 %1025 }
 0x48f   : > { %2791 = vpow2.f32 %v1029_v36  ;;  %v1100_v39 = vsel %vm1050_vm3, %v1095_v37, 0  ;;  %v1028_v40 = vsub.f32 %v1020_v29, %v1026_v38 }
 0x490   : > { %2555 = vmatpush3.bf16.msra.mxu0 %v1100_v39 }
 0x491   : > { %v1031_v41 = vmul.f32 1.442695, %v1028_v40  ;;  %2566 = vmatprep.subr.bf16.mxu0 %v3142_v35 }
 0x492   : > { %v1146_v46 = vpop.permute.xlu1 %1145 }
 0x493   : > { %2793 = vpow2.f32 %v1031_v41  ;;  %v1151_v57 = vsel %vm911_vm2, %v1146_v46, 0 }
 0x49c   : > { %v2792_v42 = vpop.eup %2791 }
 0x49d   : > { %v1033_v43 = vsel %vm911_vm2, %v2792_v42, 0.0 }
 0x49e   : > { %1034 = vadd.xlane.f32.xlu0 %v1033_v43 }
 0x4a0   : > { %v2794_v44 = vpop.eup %2793 }
 0x4a1   : > { %v1036_v45 = vsel %vm911_vm2, %v2794_v44, 0.0 }
 0x4a2   : > { %1037 = vadd.xlane.f32.xlu1 %v1036_v45 }
 0x4b3   : > { %1195 = vrot.lane.b32.xlu1 %v3500_v62, %s3147_s16 }
 0x4b4   : > { %1045 = vrot.lane.b32.xlu0 %v3497_v58, %s3146_s6  ;;  %s3844_s6 = sld [smem:[#allocation35_spill]] }
 0x4b7   : > { %1193 = vrot.lane.b32.xlu1 %v3500_v62, %s3148_s24 }
 0x4b8   : > { %1143 = vrot.lane.b32.xlu0 %v3497_v58, %s3148_s24  ;;  %s2468_s24 = sshll.u32 %s3839_s18, 5 }
 0x4ba   : > { %s727_s16 = scalar_lea.vmem %s3844_s6, %s3474_s26  ;;  %s3845_s26 = sld [smem:[#allocation25_spill]] }
 0x4c0   : > { %p3847_p6 = scmp.ne.s32.totalorder %s3845_s26, 0 }
 0x527   : > { %v1035_v47 = vpop.xlane.xlu0 %1034 }
 0x528   : > { %2795 = vrcp.f32 %v1035_v47 }
 0x52b   : > { %v1038_v48 = vpop.xlane.xlu1 %1037  ;;  %v1046_v49 = vpop.permute.xlu0 %1045 }
 0x52c   : > { %2797 = vrcp.f32 %v1038_v48  ;;  %v1052_v50 = vsel %vm1050_vm3, %v1046_v49, 0 }
 0x52d   : > { %2549 = vmatpush3.bf16.msra.mxu1 %v1052_v50 }
 0x52e   : > { %2560 = vmatprep.subr.bf16.mxu1 %v3142_v35 }
 0x52f   : > { %v1196_v60 = vpop.permute.xlu1 %1195  ;;  %v1144_v0 = vpop.permute.xlu0 %1143 }
 0x530   : > { %v1201_v63 = vsel %vm911_vm2, %v1196_v60, 0 }
 0x533   : > { %v1194_v1 = vpop.permute.xlu1 %1193 }
 0x535   : > { %v2796_v53 = vpop.eup %2795 }
 0x536   : > { %v1041_v54 = vmul.f32 %v2796_v53, %v2792_v42  ;;  %v902_v53 = vld [vmem:[%s3452_s25] sm:$0xf] }
 0x538   : > { %v1043_v55 = vpack.c.bf16 %v1041_v54, %v1041_v54 }
 0x539   : > { %v2798_v56 = vpop.eup %2797 }
 0x53a   : > { %2551 = vmatmul.mubr.msk.bf16.vlgmr.msra.gmra.mxu1 %vm911_vm2, %v1043_v55  ;;  %v1042_v59 = vmul.f32 %v2798_v56, %v2794_v44  ;;  %v1419_v56 = vsel %vm1050_vm3, %v902_v53, 0 }
 0x53b   : > { %2561 = vmatpush3.bf16.xpose.msra.mxu1 %v1151_v57  ;;  %2562 = vmatprep.mubr.msk.bf16.mxu1 %vm3143_vm1, %v3142_v35 }
 0x53c   : > { %v1044_v61 = vpack.c.bf16 %v1042_v59, %v1042_v59  ;;  %2572 = vmatprep.subr.bf16.mxu1 %v3142_v35 }
 0x53e   : > { %2557 = vmatmul.mubr.msk.bf16.vlgmr.msra.gmra.mxu0 %vm911_vm2, %v1044_v61 }
 0x53f   : > { %2567 = vmatpush3.bf16.xpose.msra.mxu0 %v1201_v63  ;;  %2568 = vmatprep.mubr.msk.bf16.mxu0 %vm3143_vm1, %v3142_v35  ;;  %v903_v63 = vld [vmem:[%s3452_s25 + $0x4] sm:$0xf] }
 0x540   : > { %2578 = vmatprep.subr.bf16.mxu0 %v3142_v35 }
 0x542   : > { %2563 = vmatmul.mubr.msk.bf16.vlgmr.msra.gmra.mxu1 %vm911_vm2, %v1144_v0  ;;  %v1372_v0 = vsel %vm1050_vm3, %v903_v63, 0 }
 0x543   : > { %2574 = vmatprep.mubr.msk.bf16.mxu1 %vm3143_vm1, %v3142_v35 }
 0x546   : > { %2569 = vmatmul.mubr.msk.bf16.vlgmr.msra.gmra.mxu0 %vm911_vm2, %v1194_v1 }
 0x547   : > { %2580 = vmatprep.mubr.msk.bf16.mxu0 %vm3143_vm1, %v3142_v35 }
 0x5fa   : > { %v3562_v2 = vpop.f32.mrf.mxu1 }
 0x5fc   : > { %v2552_v3 = vpop.f32.mrf.mxu1 }
 0x5fe   : > { %v1091_v4 = vpop.f32.mrf.mxu1  ;;  %v3564_v5 = vpop.f32.mrf.mxu0 }
 0x5ff   : > { %v1142_v7 = vpack.c.bf16 %v3564_v5, %v3562_v2 }
 0x600   : > { %v2553_v8 = vpop.f32.mrf.mxu1  ;;  %v2558_v10 = vpop.f32.mrf.mxu0 }
 0x602   : > { %v1139_v11 = vpop.f32.mrf.mxu0  ;;  %v1187_v12 = vpop.f32.mrf.mxu1 }
 0x603   : > { %v1243_v13 = vmul.f32 0.35355338, %v1187_v12 }
 0x604   : > { %v2559_v15 = vpop.f32.mrf.mxu0  ;;  %v2564_v17 = vpop.f32.mrf.mxu1 }
 0x605   : > { %v1245_v18 = vadd.f32 %v1243_v13, %v3525_v16 }
 0x606   : > { %v1190_v19 = vpop.f32.mrf.mxu1  ;;  %v1237_v20 = vpop.f32.mrf.mxu0 }
 0x607   : > { %v1244_v21 = vmul.f32 0.35355338, %v1237_v20  ;;  %v1247_v23 = vsel %vm911_vm2, %v1245_v18, -inf }
 0x608   : > { %1248 = vmax.xlane.f32.xlu0 %v1247_v23  ;;  %v2565_v24 = vpop.f32.mrf.mxu1  ;;  %v2570_v25 = vpop.f32.mrf.mxu0 }
 0x609   : > { %v1246_v26 = vadd.f32 %v1244_v21, %v3529_v22 }
 0x60a   : > { %v1240_v27 = vpop.f32.mrf.mxu0 }
 0x60b   : > { %v1250_v28 = vsel %vm911_vm2, %v1246_v26, -inf }
 0x60c   : > { %1251 = vmax.xlane.f32.xlu1 %v1250_v28  ;;  %v2571_v29 = vpop.f32.mrf.mxu0 }
 0x61d   : > { %1319 = vrot.lane.b32.xlu1 %v3500_v62, %s3149_s23 }
 0x621   : > { %1464 = vrot.lane.b32.xlu1 %v3497_v58, %s3150_s22 }
 0x625   : > { %1514 = vrot.lane.b32.xlu1 %v3500_v62, %s3150_s22 }
 0x629   : > { %1512 = vrot.lane.b32.xlu1 %v3500_v62, %s3151_s21 }
 0x691   : > { %v1249_v30 = vpop.xlane.xlu0 %1248 }
 0x692   : > { %v1253_v31 = vsub.f32 %v1245_v18, %v1249_v30 }
 0x694   : > { %v1255_v32 = vmul.f32 1.442695, %v1253_v31 }
 0x695   : > { %v1252_v33 = vpop.xlane.xlu1 %1251 }
 0x696   : > { %2799 = vpow2.f32 %v1255_v32  ;;  %v1254_v34 = vsub.f32 %v1246_v26, %v1252_v33 }
 0x698   : > { %v1257_v36 = vmul.f32 1.442695, %v1254_v34 }
 0x699   : > { %v1320_v37 = vpop.permute.xlu1 %1319 }
 0x69a   : > { %2801 = vpow2.f32 %v1257_v36  ;;  %v1325_v38 = vsel %vm1050_vm3, %v1320_v37, 0 }
 0x69b   : > { %2579 = vmatpush3.bf16.msra.mxu0 %v1325_v38 }
 0x69c   : > { %2590 = vmatprep.subr.bf16.mxu0 %v3142_v35 }
 0x69d   : > { %v1465_v57 = vpop.permute.xlu1 %1464 }
 0x69e   : > { %v1470_v10 = vsel %vm911_vm2, %v1465_v57, 0 }
 0x6a1   : > { %v1515_v59 = vpop.permute.xlu1 %1514 }
 0x6a2   : > { %v1520_v60 = vsel %vm911_vm2, %v1515_v59, 0 }
 0x6a3   : > { %v2800_v39 = vpop.eup %2799 }
 0x6a4   : > { %v1259_v40 = vsel %vm911_vm2, %v2800_v39, 0.0 }
 0x6a5   : > { %1260 = vadd.xlane.f32.xlu0 %v1259_v40  ;;  %v1513_v61 = vpop.permute.xlu1 %1512 }
 0x6a7   : > { %v2802_v41 = vpop.eup %2801 }
 0x6a8   : > { %v1262_v42 = vsel %vm911_vm2, %v2802_v41, 0.0 }
 0x6a9   : > { %1263 = vadd.xlane.f32.xlu0 %v1262_v42 }
 0x6bf   : > { %1271 = vrot.lane.b32.xlu0 %v3497_v58, %s3149_s23 }
 0x6c3   : > { %1462 = vrot.lane.b32.xlu0 %v3497_v58, %s3151_s21 }
 0x72e   : > { %v1261_v43 = vpop.xlane.xlu0 %1260 }
 0x72f   : > { %2803 = vrcp.f32 %v1261_v43 }
 0x732   : > { %v1264_v44 = vpop.xlane.xlu0 %1263 }
 0x733   : > { %2805 = vrcp.f32 %v1264_v44 }
 0x736   : > { %v1272_v45 = vpop.permute.xlu0 %1271 }
 0x737   : > { %v1277_v46 = vsel %vm1050_vm3, %v1272_v45, 0 }
 0x738   : > { %2573 = vmatpush3.bf16.msra.mxu1 %v1277_v46 }
 0x739   : > { %2584 = vmatprep.subr.bf16.mxu1 %v3142_v35 }
 0x73a   : > { %v1463_v15 = vpop.permute.xlu0 %1462 }
 0x73c   : > { %v2804_v47 = vpop.eup %2803 }
 0x73d   : > { %v1267_v48 = vmul.f32 %v2804_v47, %v2800_v39 }
 0x73f   : > { %v1269_v49 = vpack.c.bf16 %v1267_v48, %v1267_v48 }
 0x740   : > { %v2806_v50 = vpop.eup %2805 }
 0x741   : > { %2575 = vmatmul.mubr.msk.bf16.vlgmr.msra.gmra.mxu1 %vm911_vm2, %v1269_v49  ;;  %v1268_v54 = vmul.f32 %v2806_v50, %v2802_v41 }
 0x742   : > { %2586 = vmatprep.mubr.msk.bf16.mxu1 %vm3143_vm1, %v3142_v35  ;;  %2585 = vmatpush3.bf16.msra.mxu1 %v1372_v0 }
 0x743   : > { %v1270_v55 = vpack.c.bf16 %v1268_v54, %v1268_v54  ;;  %2596 = vmatprep.subr.bf16.mxu1 %v3142_v35 }
 0x745   : > { %2581 = vmatmul.mubr.msk.bf16.vlgmr.msra.gmra.mxu0 %vm911_vm2, %v1270_v55 }
 0x746   : > { %2591 = vmatpush3.bf16.msra.mxu0 %v1419_v56  ;;  %2592 = vmatprep.mubr.msk.bf16.mxu0 %vm3143_vm1, %v3142_v35 }
 0x747   : > { %2602 = vmatprep.subr.bf16.mxu0 %v3142_v35 }
 0x74d   : > { %2593 = vmatmul.mubr.msk.bf16.vlgmr.msra.gmra.mxu0 %vm911_vm2, %v1142_v7 }
 0x74e   : > { %2603 = vmatpush3.bf16.xpose.msra.mxu0 %v1520_v60  ;;  %2604 = vmatprep.mubr.msk.bf16.mxu0 %vm3143_vm1, %v3142_v35 }
 0x74f   : > { %2614 = vmatprep.subr.bf16.mxu0 %v3142_v35 }
 0x755   : > { %2605 = vmatmul.mubr.msk.bf16.vlgmr.msra.gmra.mxu0 %vm911_vm2, %v1513_v61 }
 0x756   : > { %2616 = vmatprep.mubr.msk.bf16.mxu0 %vm3143_vm1, %v3142_v35 }
 0x801   : > { %v1313_v1 = vpop.f32.mrf.mxu1 }
 0x803   : > { %v2576_v2 = vpop.f32.mrf.mxu1 }
 0x805   : > { %v1316_v3 = vpop.f32.mrf.mxu1  ;;  %v1361_v4 = vpop.f32.mrf.mxu0 }
 0x806   : > { %v1367_v5 = vpack.c.bf16 %v1361_v4, %v1313_v1 }
 0x807   : > { %v2577_v7 = vpop.f32.mrf.mxu1  ;;  %v2582_v8 = vpop.f32.mrf.mxu0 }
 0x808   : > { %2587 = vmatmul.mubr.msk.bf16.vlgmr.msra.gmra.mxu1 %vm911_vm2, %v1367_v5 }
 0x809   : > { %2597 = vmatpush3.bf16.xpose.msra.mxu1 %v1470_v10  ;;  %v1364_v11 = vpop.f32.mrf.mxu0  ;;  %2598 = vmatprep.mubr.msk.bf16.mxu1 %vm3143_vm1, %v3142_v35 }
 0x80a   : > { %2608 = vmatprep.subr.bf16.mxu1 %v3142_v35  ;;  %v904_v11 = vld [vmem:[%s3452_s25 + $0x8] sm:$0xf] }
 0x80b   : > { %v2583_v12 = vpop.f32.mrf.mxu0 }
 0x80c   : > { %v1691_v12 = vsel %vm1050_vm3, %v904_v11, 0 }
 0x80d   : > { %v3612_v13 = vpop.f32.mrf.mxu0 }
 0x80f   : > { %v2594_v17 = vpop.f32.mrf.mxu0 }
 0x810   : > { %2599 = vmatmul.mubr.msk.bf16.vlgmr.msra.gmra.mxu1 %vm911_vm2, %v1463_v15 }
 0x811   : > { %v3615_v18 = vpop.f32.mrf.mxu0  ;;  %2610 = vmatprep.mubr.msk.bf16.mxu1 %vm3143_vm1, %v3142_v35 }
 0x813   : > { %v2595_v19 = vpop.f32.mrf.mxu0 }
 0x815   : > { %v1556_v20 = vpop.f32.mrf.mxu0 }
 0x816   : > { %v1563_v21 = vmul.f32 0.35355338, %v1556_v20 }
 0x817   : > { %v2606_v23 = vpop.f32.mrf.mxu0 }
 0x818   : > { %v1565_v24 = vadd.f32 %v1563_v21, %v3529_v22 }
 0x819   : > { %v1559_v25 = vpop.f32.mrf.mxu0 }
 0x81a   : > { %v1569_v26 = vsel %vm911_vm2, %v1565_v24, -inf }
 0x81b   : > { %1570 = vmax.xlane.f32.xlu1 %v1569_v26  ;;  %v2607_v27 = vpop.f32.mrf.mxu0 }
 0x82c   : > { %1638 = vrot.lane.b32.xlu1 %v3500_v62, %s3152_s15 }
 0x830   : > { %1738 = vrot.lane.b32.xlu1 %v3497_v58, %s3153_s20 }
 0x834   : > { %1788 = vrot.lane.b32.xlu1 %v3500_v62, %s3153_s20  ;;  %s3846_s20 = sld [smem:[#allocation36_spill]] }
 0x838   : > { %1786 = vrot.lane.b32.xlu1 %v3500_v62, %s3154_s19 }
 0x8a4   : > { %v1571_v28 = vpop.xlane.xlu1 %1570 }
 0x8a5   : > { %v1573_v31 = vsub.f32 %v1565_v24, %v1571_v28 }
 0x8a7   : > { %v1576_v32 = vmul.f32 1.442695, %v1573_v31 }
 0x8a8   : > { %v1639_v29 = vpop.permute.xlu1 %1638 }
 0x8a9   : > { %v1644_v30 = vsel %vm1050_vm3, %v1639_v29, 0  ;;  %2807 = vpow2.f32 %v1576_v32 }
 0x8aa   : > { %2615 = vmatpush3.bf16.msra.mxu0 %v1644_v30 }
 0x8ab   : > { %2626 = vmatprep.subr.bf16.mxu0 %v3142_v35 }
 0x8ac   : > { %v1739_v57 = vpop.permute.xlu1 %1738 }
 0x8ad   : > { %v1744_v60 = vsel %vm911_vm2, %v1739_v57, 0 }
 0x8b0   : > { %v1789_v25 = vpop.permute.xlu1 %1788 }
 0x8b1   : > { %v1794_v29 = vsel %vm911_vm2, %v1789_v25, 0 }
 0x8b4   : > { %v1787_v31 = vpop.permute.xlu1 %1786 }
 0x8b6   : > { %v2808_v44 = vpop.eup %2807 }
 0x8b7   : > { %v1581_v46 = vsel %vm911_vm2, %v2808_v44, 0.0 }
 0x8c8   : > { %v3629_v33 = vpop.f32.mrf.mxu1 }
 0x8ca   : > { %v2588_v34 = vpop.f32.mrf.mxu1 }
 0x8cc   : > { %v3631_v36 = vpop.f32.mrf.mxu1 }
 0x8ce   : > { %v2589_v37 = vpop.f32.mrf.mxu1 }
 0x8d0   : > { %v1506_v38 = vpop.f32.mrf.mxu1 }
 0x8d1   : > { %v1562_v39 = vmul.f32 0.35355338, %v1506_v38 }
 0x8d2   : > { %v2600_v40 = vpop.f32.mrf.mxu1 }
 0x8d3   : > { %v1564_v41 = vadd.f32 %v1562_v39, %v3525_v16  ;;  %v1456_v40 = vadd.f32 %v3612_v13, %v3629_v33 }
 0x8d4   : > { %v1509_v42 = vpop.f32.mrf.mxu1 }
 0x8d5   : > { %v1566_v43 = vsel %vm911_vm2, %v1564_v41, -inf }
 0x8d6   : > { %1567 = vmax.xlane.f32.xlu0 %v1566_v43  ;;  %v2601_v45 = vpop.f32.mrf.mxu1 }
 0x8da   : > { %1582 = vadd.xlane.f32.xlu0 %v1581_v46 }
 0x95f   : > { %v1568_v47 = vpop.xlane.xlu0 %1567 }
 0x960   : > { %v1572_v48 = vsub.f32 %v1564_v41, %v1568_v47 }
 0x962   : > { %v1574_v49 = vmul.f32 1.442695, %v1572_v48 }
 0x963   : > { %v1583_v50 = vpop.xlane.xlu0 %1582 }
 0x964   : > { %2809 = vpow2.f32 %v1574_v49 }
 0x965   : > { %2811 = vrcp.f32 %v1583_v50 }
 0x971   : > { %v2810_v53 = vpop.eup %2809 }
 0x972   : > { %v2812_v54 = vpop.eup %2811  ;;  %v1578_v55 = vsel %vm911_vm2, %v2810_v53, 0.0 }
 0x973   : > { %1579 = vadd.xlane.f32.xlu0 %v1578_v55  ;;  %v1587_v56 = vmul.f32 %v2812_v54, %v2808_v44  ;;  %v1459_v44 = vadd.f32 %v3615_v18, %v3631_v36 }
 0x975   : > { %v1589_v59 = vpack.c.bf16 %v1587_v56, %v1587_v56 }
 0x977   : > { %2617 = vmatmul.mubr.msk.bf16.vlgmr.msra.gmra.mxu0 %vm911_vm2, %v1589_v59 }
 0x978   : > { %2627 = vmatpush3.bf16.xpose.msra.mxu0 %v1744_v60  ;;  %2628 = vmatprep.mubr.msk.bf16.mxu0 %vm3143_vm1, %v3142_v35 }
 0x979   : > { %2638 = vmatprep.subr.bf16.mxu0 %v3142_v35 }
 0x989   : > { %1590 = vrot.lane.b32.xlu0 %v3497_v58, %s3152_s15 }
 0x98d   : > { %1736 = vrot.lane.b32.xlu0 %v3497_v58, %s3154_s19  ;;  %s3723_s19 = scalar_lea.hbm %s3846_s20, %s2468_s24 }
 0x9fc   : > { %v1580_v61 = vpop.xlane.xlu0 %1579 }
 0x9fd   : > { %2813 = vrcp.f32 %v1580_v61 }
 0xa00   : > { %v1591_v63 = vpop.permute.xlu0 %1590 }
 0xa01   : > { %v1596_v0 = vsel %vm1050_vm3, %v1591_v63, 0 }
 0xa02   : > { %2609 = vmatpush3.bf16.msra.mxu1 %v1596_v0 }
 0xa03   : > { %2620 = vmatprep.subr.bf16.mxu1 %v3142_v35 }
 0xa04   : > { %v1737_v1 = vpop.permute.xlu0 %1736 }
 0xa05   : > { %2629 = vmatmul.mubr.msk.bf16.vlgmr.msra.gmra.mxu0 %vm911_vm2, %v1737_v1 }
 0xa06   : > { %2640 = vmatprep.mubr.msk.bf16.mxu0 %vm3143_vm1, %v3142_v35 }
 0xa0a   : > { %v2814_v2 = vpop.eup %2813 }
 0xa0b   : > { %v1586_v3 = vmul.f32 %v2814_v2, %v2810_v53 }
 0xa0d   : > { %v1588_v4 = vpack.c.bf16 %v1586_v3, %v1586_v3 }
 0xa0f   : > { %2611 = vmatmul.mubr.msk.bf16.vlgmr.msra.gmra.mxu1 %vm911_vm2, %v1588_v4 }
 0xa10   : > { %2622 = vmatprep.mubr.msk.bf16.mxu1 %vm3143_vm1, %v3142_v35  ;;  %2621 = vmatpush3.bf16.msra.mxu1 %v1691_v12 }
 0xa11   : > { %2632 = vmatprep.subr.bf16.mxu1 %v3142_v35 }
 0xa37   : > { %v1680_v5 = vpop.f32.mrf.mxu0 }
 0xa39   : > { %v2618_v7 = vpop.f32.mrf.mxu0 }
 0xa3b   : > { %v1683_v8 = vpop.f32.mrf.mxu0 }
 0xa3d   : > { %v2619_v10 = vpop.f32.mrf.mxu0 }
 0xac5   : > { %v1780_v15 = vpop.f32.mrf.mxu0 }
 0xac6   : > { %v1836_v17 = vmul.f32 0.35355338, %v1780_v15 }
 0xac7   : > { %v2630_v19 = vpop.f32.mrf.mxu0 }
 0xac8   : > { %v1838_v20 = vadd.f32 %v1836_v17, %v3525_v16 }
 0xac9   : > { %v1783_v21 = vpop.f32.mrf.mxu0 }
 0xaca   : > { %v1840_v23 = vsel %vm911_vm2, %v1838_v20, -inf }
 0xacb   : > { %1841 = vmax.xlane.f32.xlu0 %v1840_v23  ;;  %v2631_v24 = vpop.f32.mrf.mxu0  ;;  %v2462_v23 = vld [vmem:[%s724_s28] ss:$0 sm:$0xff] }
 0xacf   : > { %v1632_v26 = vpop.f32.mrf.mxu1 }
 0xad0   : > { %v1686_v27 = vpack.c.bf16 %v1680_v5, %v1632_v26  ;;  %v905_v5 = vld [vmem:[%s3452_s25 + $0xc] sm:$0xf] }
 0xad1   : > { %v2612_v28 = vpop.f32.mrf.mxu1  ;;  %v1965_v7 = vsel %vm1050_vm3, %v905_v5, 0 }
 0xad2   : > { %2623 = vmatmul.mubr.msk.bf16.vlgmr.msra.gmra.mxu1 %vm911_vm2, %v1686_v27 }
 0xad3   : > { %2633 = vmatpush3.bf16.xpose.msra.mxu1 %v1794_v29  ;;  %v1635_v30 = vpop.f32.mrf.mxu1  ;;  %2634 = vmatprep.mubr.msk.bf16.mxu1 %vm3143_vm1, %v3142_v35 }
 0xad4   : > { %2644 = vmatprep.subr.bf16.mxu1 %v3142_v35 }
 0xad5   : > { %v2613_v16 = vpop.f32.mrf.mxu1 }
 0xada   : > { %2635 = vmatmul.mubr.msk.bf16.vlgmr.msra.gmra.mxu1 %vm911_vm2, %v1787_v31 }
 0xadb   : > { %2646 = vmatprep.mubr.msk.bf16.mxu1 %vm3143_vm1, %v3142_v35 }
 0xb54   : > { %v1842_v32 = vpop.xlane.xlu0 %1841 }
 0xb55   : > { %v1846_v34 = vsub.f32 %v1838_v20, %v1842_v32 }
 0xb57   : > { %v1848_v37 = vmul.f32 1.442695, %v1846_v34 }
 0xb59   : > { %2815 = vpow2.f32 %v1848_v37 }
 0xb66   : > { %v2816_v38 = vpop.eup %2815 }
 0xb67   : > { %v1852_v39 = vsel %vm911_vm2, %v2816_v38, 0.0 }
 0xb68   : > { %1853 = vadd.xlane.f32.xlu0 %v1852_v39 }
 0xb92   : > { %v1727_v41 = vpop.f32.mrf.mxu1 }
 0xb93   : > { %v1734_v42 = vadd.f32 %v1727_v41, %v1456_v40 }
 0xb94   : > { %v2624_v43 = vpop.f32.mrf.mxu1 }
 0xb96   : > { %v1730_v45 = vpop.f32.mrf.mxu1 }
 0xb97   : > { %v1735_v46 = vadd.f32 %v1730_v45, %v1459_v44 }
 0xb98   : > { %v2625_v47 = vpop.f32.mrf.mxu1 }
 0xb9a   : > { %v1830_v48 = vpop.f32.mrf.mxu1 }
 0xb9b   : > { %v1837_v49 = vmul.f32 0.35355338, %v1830_v48  ;;  %v2068_v48 = vrot.slane %v3515_v6, %v3522_v14 }
 0xb9c   : > { %v2636_v50 = vpop.f32.mrf.mxu1 }
 0xb9d   : > { %v1839_v53 = vadd.f32 %v1837_v49, %v3529_v22 }
 0xb9e   : > { %v1833_v54 = vpop.f32.mrf.mxu1 }
 0xb9f   : > { %v1843_v55 = vsel %vm911_vm2, %v1839_v53, -inf }
 0xba0   : > { %1844 = vmax.xlane.f32.xlu1 %v1843_v55  ;;  %v2637_v56 = vpop.f32.mrf.mxu1 }
 0xbb1   : > { %1912 = vrot.lane.b32.xlu1 %v3500_v62, %s3155_s13 }
 0xbf1   : > { %v1854_v22 = vpop.xlane.xlu0 %1853 }
 0xc29   : > { %v1845_v13 = vpop.xlane.xlu1 %1844 }
 0xc2a   : > { %v1847_v33 = vsub.f32 %v1839_v53, %v1845_v13 }
 0xc2c   : > { %v1850_v57 = vmul.f32 1.442695, %v1847_v33  ;;  %v2463_v33 = vld [vmem:[%s620_s14] ss:$0 sm:$0xff]  ;;  %s2434_s14 = sshll.u32 %s3443_s17, 1 }
 0xc2d   : > { %v1913_v18 = vpop.permute.xlu1 %1912  ;;  %s711_s23 = scalar_lea.vmem [#allocation14], %s2434_s14 }
 0xc2e   : > { %2817 = vpow2.f32 %v1850_v57  ;;  %v1918_v36 = vsel %vm1050_vm3, %v1913_v18, 0  ;;  %v2464_v18 = vld [vmem:[%s727_s16] ss:$0 sm:$0xff]  ;;  %s2182_s22 = sshll.u32 %s711_s23, 4  ;;  %s2183_s22 = int_to_ptr.vmem [resolvable:$true] %s2182_s22 }
 0xc2f   : > { %2645 = vmatpush3.bf16.msra.mxu1 %v1918_v36  ;;  %2819 = vrcp.f32 %v1854_v22 }
 0xc3b   : > { %v2818_v59 = vpop.eup %2817 }
 0xc3c   : > { %v1855_v60 = vsel %vm911_vm2, %v2818_v59, 0.0  ;;  %v2820_v61 = vpop.eup %2819 }
 0xc3d   : > { %1856 = vadd.xlane.f32.xlu0 %v1855_v60  ;;  %v1860_v62 = vmul.f32 %v2820_v61, %v2816_v38 }
 0xc3f   : > { %v1862_v2 = vpack.c.bf16 %v1860_v62, %v1860_v62 }
 0xc53   : > { %1864 = vrot.lane.b32.xlu0 %v3497_v58, %s3155_s13  ;;  %s3038_s13 = scalar_lea.vmem %s2183_s22, 32 }
 0xc54   : > { %p3039_p0 = scmp.ne.s32.totalorder %s2183_s22, %s3038_s13 }
 0xc56   : > { %p3040_p7 = pnand %p3039_p0, %p3847_p6 }
 0xc58   : > { %p3041_p4 = pneg %p3040_p7 }
 0xcc6   : > { %v1857_v63 = vpop.xlane.xlu0 %1856 }
 0xcc7   : > { %2821 = vrcp.f32 %v1857_v63 }
 0xcca   : > { %v1865_v0 = vpop.permute.xlu0 %1864 }
 0xccb   : > { %v1870_v1 = vsel %vm1050_vm3, %v1865_v0, 0 }
 0xccc   : > { %2639 = vmatpush3.bf16.msra.mxu0 %v1870_v1 }
 0xccd   : > { %2650 = vmatprep.subr.bf16.mxu0 %v3142_v35 }
 0xccf   : > { %2641 = vmatmul.mubr.msk.bf16.vlgmr.msra.gmra.mxu0 %vm911_vm2, %v1862_v2 }
 0xcd0   : > { %2652 = vmatprep.mubr.msk.bf16.mxu0 %vm3143_vm1, %v3142_v35  ;;  %2651 = vmatpush3.bf16.msra.mxu0 %v1965_v7 }
 0xcd4   : > { %v2822_v58 = vpop.eup %2821 }
 0xcd5   : > { %v1861_v3 = vmul.f32 %v2822_v58, %v2818_v59 }
 0xcd7   : > { %v1863_v4 = vpack.c.bf16 %v1861_v3, %v1861_v3 }
 0xcd9   : > { %2647 = vmatmul.mubr.msk.bf16.vlgmr.msra.gmra.mxu1 %vm911_vm2, %v1863_v4 }
 0xd8f   : > { %v1906_v8 = vpop.f32.mrf.mxu0 }
 0xd91   : > { %v2642_v10 = vpop.f32.mrf.mxu0 }
 0xd93   : > { %v1909_v11 = vpop.f32.mrf.mxu0 }
 0xd95   : > { %v2643_v12 = vpop.f32.mrf.mxu0 }
 0xd99   : > { %v1954_v15 = vpop.f32.mrf.mxu1 }
 0xd9a   : > { %v1960_v17 = vpack.c.bf16 %v1954_v15, %v1906_v8 }
 0xd9b   : > { %v2648_v19 = vpop.f32.mrf.mxu1 }
 0xd9c   : > { %2653 = vmatmul.mubr.msk.bf16.vlgmr.msra.gmra.mxu0 %vm911_vm2, %v1960_v17 }
 0xd9d   : > { %v1957_v35 = vpop.f32.mrf.mxu1 }
 0xd9f   : > { %v2649_v20 = vpop.f32.mrf.mxu1 }
 0xe5c   : > { %v2001_v21 = vpop.f32.mrf.mxu0 }
 0xe5d   : > { %v2008_v24 = vadd.f32 %v2001_v21, %v1734_v42 }
 0xe5e   : > { %v2654_v25 = vpop.f32.mrf.mxu0 }
 0xe5f   : > { %v2017_v26 = vadd.f32 %v2462_v23, %v2008_v24 }
 0xe60   : > { %v2004_v27 = vpop.f32.mrf.mxu0 }
 0xe61   : > { %v2009_v28 = vadd.f32 %v2004_v27, %v1735_v46  ;;  %v2019_v29 = vadd.f32 %v2017_v26, %v3484_v51  ;;  %v2074_v46 = vsub.s32 1, %v3518_v9 }
 0xe62   : > { %v2655_v30 = vpop.f32.mrf.mxu0 }
 0xe63   : > { %v2018_v16 = vadd.f32 %v2462_v23, %v2009_v28  ;;  %v2023_v31 = vsel %vm765_vm0, %v2019_v29, 0.0  ;;  %v2075_v47 = vrot.slane %v3515_v6, %v2074_v46 }
 0xe64   : > { %2024 = vadd.xlane.f32.xlu0 %v2023_v31 }
 0xe65   : > { %v2020_v32 = vadd.f32 %v2018_v16, %v3486_v52  ;;  %v2096_v52 = vsel %vm2095_vm4, %v3515_v6, 0.0 }
 0xe67   : > { %v2026_v34 = vsel %vm765_vm0, %v2020_v32, 0.0 }
 0xe68   : > { %2027 = vadd.xlane.f32.xlu1 %v2026_v34 }
 0xeed   : > { %v2025_v37 = vpop.xlane.xlu0 %2024 }
 0xeee   : > { %v2029_v38 = vmul.f32 0.03125, %v2025_v37 }
 0xef0   : > { %v2031_v39 = vsub.f32 %v2019_v29, %v2029_v38 }
 0xef1   : > { %v2028_v40 = vpop.xlane.xlu1 %2027 }
 0xef2   : > { %v2030_v41 = vmul.f32 0.03125, %v2028_v40  ;;  %v2033_v42 = vmul.f32 %v2031_v39, %v2031_v39 }
 0xef4   : > { %v2032_v43 = vsub.f32 %v2020_v32, %v2030_v41  ;;  %v2035_v44 = vsel %vm765_vm0, %v2033_v42, 0.0 }
 0xef5   : > { %2036 = vadd.xlane.f32.xlu1 %v2035_v44 }
 0xef6   : > { %v2034_v51 = vmul.f32 %v2032_v43, %v2032_v43 }
 0xef8   : > { %v2038_v45 = vsel %vm765_vm0, %v2034_v51, 0.0 }
 0xef9   : > { %2039 = vadd.xlane.f32.xlu0 %v2038_v45  ;;  %v2465_v45 = vld [vmem:[%s628_s3] ss:$0 sm:$0xff]  ;;  %s2168_s3 = scalar_lea.sflag [#allocation4], %s3443_s17 }
 0xefd   : > { %2097 = vadd.xlane.f32.xlu0 %v2096_v52 }
 0xf06   : > { %2077 = vbcast.lane.b32.xlu1 %v2075_v47, 256 }
 0xf13   : > { %2070 = vbcast.lane.b32.xlu0 %v2068_v48, 256  ;;  %v2466_v48 = vld [vmem:[%s636_s8] ss:$0 sm:$0xff]  ;;  %s3156_s8 = smov [#allocation14]  }
 0xf14   : > { %s3042_s18 = sshll.u32 %s3156_s8, 4  ;;  %s3043_s18 = int_to_ptr.vmem [resolvable:$false] %s3042_s18 }
 0xf15   : > { %s3044_s5 = scalar_lea.vmem %s3043_s18, 64  ;;  %p3045_p10 = scmp.lt.s32.totalorder %s2183_s22, %s3043_s18 }
 0xf16   : > { %p3046_p1 = scmp.lt.s32.totalorder %s3044_s5, %s3038_s13 }
 0xf18   : > { %p3047_p8 = por %p3046_p1, %p3045_p10 }
 0xf1a   : > { %p3048_p11 = pnand %p3047_p8, %p3041_p4 }
 0xf7e   : > { %v2037_v49 = vpop.xlane.xlu1 %2036 }
 0xf7f   : > { %v2041_v50 = vmul.f32 0.03125, %v2037_v49 }
 0xf81   : > { %v2043_v53 = vadd.f32 1e-12, %v2041_v50 }
 0xf82   : > { %v2040_v54 = vpop.xlane.xlu0 %2039  ;;  %v2078_v62 = vpop.permute.xlu1 %2077 }
 0xf83   : > { %2823 = vrsqrt.f32 %v2043_v53  ;;  %v2042_v55 = vmul.f32 0.03125, %v2040_v54 }
 0xf85   : > { %v2044_v56 = vadd.f32 1e-12, %v2042_v55 }
 0xf86   : > { %v2098_v13 = vpop.xlane.xlu0 %2097 }
 0xf87   : > { %2825 = vrsqrt.f32 %v2044_v56  ;;  %v2099_v36 = vmax.f32 %v2098_v13, 1e-09 }
 0xf89   : > { %2827 = vrcp.f32 %v2099_v36 }
 0xf8a   : > { %v2071_v59 = vpop.permute.xlu0 %2070 }
 0xf90   : > { %v2824_v9 = vpop.eup %2823 }
 0xf91   : > { %v2047_v57 = vmul.f32 %v2824_v9, %v2031_v39 }
 0xf93   : > { %v2055_v6 = vmul.f32 %v2463_v33, %v2047_v57 }
 0xf94   : > { %v2826_v14 = vpop.eup %2825 }
 0xf95   : > { %v2063_v60 = vadd.f32 %v2464_v18, %v2055_v6  ;;  %v2048_v22 = vmul.f32 %v2826_v14, %v2032_v43 }
 0xf96   : > { %v2828_v17 = vpop.eup %2827 }
 0xf97   : > { %v2079_v61 = vmul.f32 %v2071_v59, %v2063_v60  ;;  %v2056_v63 = vmul.f32 %v2463_v33, %v2048_v22  ;;  %v2102_v35 = vrot.slane %v2828_v17, 1 }
 0xf99   : > { %v2081_v0 = vsel %vm765_vm0, %v2079_v61, 0.0  ;;  %v2064_v1 = vadd.f32 %v2464_v18, %v2056_v63 }
 0xf9a   : > { %v2082_v2 = vrot.slane %v2081_v0, 4 }
 0xf9b   : > { %v2080_v58 = vmul.f32 %v2078_v62, %v2064_v1 }
 0xf9c   : > { %v2083_v3 = vadd.f32 %v2082_v2, %v2081_v0 }
 0xf9d   : > { %v2088_v4 = vsel %vm765_vm0, %v2080_v58, 0.0 }
 0xf9e   : > { %v2084_v5 = vrot.slane %v2083_v3, 2  ;;  %v2089_v7 = vrot.slane %v2088_v4, 4 }
 0xfa0   : > { %v2085_v8 = vadd.f32 %v2084_v5, %v2083_v3  ;;  %v2090_v10 = vadd.f32 %v2089_v7, %v2088_v4 }
 0xfa2   : > { %v2091_v11 = vrot.slane %v2090_v10, 2  ;;  %v2086_v12 = vrot.slane %v2085_v8, 1 }
 0xfa4   : > { %v2092_v15 = vadd.f32 %v2091_v11, %v2090_v10  ;;  %v2087_v20 = vadd.f32 %v2086_v12, %v2085_v8 }
 0xfa6   : > { %v2093_v19 = vrot.slane %v2092_v15, 1  ;;  %v2105_v24 = vmul.f32 %v2828_v17, %v2087_v20 }
 0xfa8   : > { %v2094_v21 = vadd.f32 %v2093_v19, %v2092_v15 }
 0xfaa   : > { %v2106_v23 = vmul.f32 %v2102_v35, %v2094_v21 }
 0xfac   : > { %v2111_v25 = vrot.slane %v2106_v23, 7 }
 0xfae   : > { %v2113_v26 = vsel %vm2112_vm5, %v2111_v25, %v2105_v24 }
 0xfaf   : > { %v2116_v27 = vsel %vm2115_vm6, %v2113_v26, 0.0 }
 0xfb0   : > { %2117 = vadd.xlane.f32.xlu1 %v2116_v27 }
0x1039   : > { %v2118_v28 = vpop.xlane.xlu1 %2117 }
0x103a   : > { %v2119_v29 = vmul.f32 0.03125, %v2118_v28 }
0x103c   : > { %v2121_v30 = vrot.slane %v2119_v29, 1  ;;  %v2124_v16 = vsub.f32 %v2105_v24, %v2119_v29 }
0x103e   : > { %v2125_v31 = vsub.f32 %v2106_v23, %v2121_v30  ;;  %v2126_v34 = vmul.f32 %v2124_v16, %v2124_v16 }
0x1040   : > { %v2127_v32 = vmul.f32 %v2125_v31, %v2125_v31 }
0x1042   : > { %v2130_v37 = vrot.slane %v2127_v32, 7 }
0x1044   : > { %v2131_v38 = vsel %vm2112_vm5, %v2130_v37, %v2126_v34 }
0x1045   : > { %v2133_v39 = vsel %vm2115_vm6, %v2131_v38, 0.0 }
0x1046   : > { %2134 = vadd.xlane.f32.xlu0 %v2133_v39 }
0x10cf   : > { %v2135_v40 = vpop.xlane.xlu0 %2134 }
0x10d0   : > { %v2136_v41 = vmul.f32 0.03125, %v2135_v40 }
0x10d2   : > { %v2137_v42 = vadd.f32 1e-07, %v2136_v41 }
0x10d4   : > { %2829 = vrsqrt.f32 %v2137_v42 }
0x10e1   : > { %v2830_v43 = vpop.eup %2829 }
0x10e2   : > { %v2140_v44 = vrot.slane %v2830_v43, 1  ;;  %v2143_v51 = vmul.f32 %v2830_v43, %v2124_v16 }
0x10e4   : > { %v2144_v52 = vmul.f32 %v2140_v44, %v2125_v31  ;;  %v2151_v46 = vmul.f32 %v2465_v45, %v2143_v51 }
0x10e6   : > { %v2152_v47 = vmul.f32 %v2465_v45, %v2144_v52  ;;  %v2159_v50 = vadd.f32 %v2466_v48, %v2151_v46 }
0x10e8   : > { %v2160_v49 = vadd.f32 %v2466_v48, %v2152_v47 }
0x10ea   : > { %v2163_v53 = vrot.slane %v2160_v49, 7 }
0x10ec   : > { %v2164_v54 = vsel %vm2112_vm5, %v2163_v53, %v2159_v50 }
0x10ed   : > { %2166 = vst.msk [vmem:[%s711_s23] sm:$0x3] %vm2115_vm6, %v2164_v54 }
0x10ee   : > { %3051 = shalt.err (!%p3048_p11)
}
0x10ef   : > { %s3052_s1 = scalar_lea.hbm %s3723_s19, 32  ;;  %s3056_s28 = scalar_lea.hbm %s3846_s20, 192 }
0x10f0   : > { %p3053_p12 = scmp.ne.s32.totalorder %s3723_s19, %s3052_s1  ;;  %p3057_p2 = scmp.lt.s32.totalorder %s3723_s19, %s3846_s20 }
0x10f1   : > { %p3058_p9 = scmp.lt.s32.totalorder %s3056_s28, %s3052_s1 }
0x10f2   : > { %p3054_p13 = pnand %p3053_p12, %p3847_p6 }
0x10f3   : > { %p3059_p3 = por %p3058_p9, %p3057_p2 }
0x10f4   : > { %p3055_p5 = pneg %p3054_p13 }
0x10f6   : > { %p3060_p0 = pnand %p3059_p3, %p3055_p5 }
0x10f8   : > { %3063 = shalt.err (!%p3060_p0)
}
0x10f9   : > { %2678 = dma.vmem_to_hbm [thread:$0]  (%p3847_p6), %s2183_s22, 32, %s3723_s19, %s2168_s3  }
0x10fa PF: > { %s3848_s6 = sld [smem:[#allocation20_spill]]  ;;  %p2717_p7 = scmp.ge.s32.totalorder %s3130_s30, 2 }
0x10fb   : > { %s3849_s16 = sld [smem:[#allocation26_spill]] }
0x1100   : > { %s2194_s14 = sand.u32 1, %s3848_s6  }
0x1101   : > { %p3850_p4 = scmp.ne.s32.totalorder %s3849_s16, 0  ;;  %s2195_s24 = scalar_lea.sflag [#allocation4], %s2194_s14 }
0x1103   : > { %p2707_p10 = pnand %p2717_p7, %p3850_p4 }
0x1105   : > { %p2708_p1 = pneg %p2707_p10 }
0x1107   : > { %3105 = dma.done.wait (%p2708_p1), %s2195_s24, 32  }
0x1108   : > { %3107 = vsyncadd (%p2708_p1), %s2195_s24, 4294967264  ;;  %s29_s30 = sadd.s32 1, %s3130_s30   ;;  %s3851_s25 = sld [smem:[#allocation21_spill]] }
0x1109   : > { %p26_p8 = scmp.ge.s32.totalorder %s29_s30, 8   ;;  %s3852_s23 = sld [smem:[#allocation28_spill]] }
0x110a   : > { %s3853_s22 = sld [smem:[#allocation27_spill]]  ;;  %s3854_s26 = smov %s3118_s27 }
0x110b   : > { %s3856_s28 = smov %s3126_s29 }
0x110c   :  { %28 = sbr.rel (!%p26_p8) target bundleno = 16 (0x10), region = 192 }
0x110f   : > { %s3855_s27 = smov %s3852_s23 }
0x1110   : > { %s3857_s29 = smov %s3853_s22 }
0x1111   :  { %2200 = vsyncpa [#allocation3], 1 }
0x1112   :  { %2202 = vsyncpa [#allocation3 + $0x1], 1 }
0x1113   :  { %2203 = vsyncpa [#allocation8], 1 }
0x1114   :  { %2204 = vsyncpa [#allocation4], 1 }
0x1115   :  { %2206 = vsyncpa [#allocation4 + $0x1], 1 }
0x1116   :  { %2207 = vsyncpa [#allocation5], 1 }
0x1117   :  { %2209 = vsyncpa [#allocation5 + $0x1], 1 }

</bundles_post_ra>
